<compile_context>
chip_gen: v6e
topology: v6e:2x2x1
jax: 0.10.0
libtpu: 0.0.40
codegen_flags: <defaults>
</compile_context>

<pallas_src>
import functools

import jax
import jax.numpy as jnp
from jax import lax
from jax.experimental import pallas as pl
from jax.experimental.pallas import tpu as pltpu


LEAKY_SLOPE = 0.2
BN_EPS = 1e-5

CFG = dict(n_bodies=7, n_shirts=4, n_pants=5, n_hairstyles=6, n_actions=3,
           num_frames=8, in_size=64, channels=8, code_dim=128, hidden_dim=64)
HEAD_NAMES = ("body", "shirt", "pants", "hairstyles", "action")


# ----------------------------------------------------------------------------
# Shared in-kernel math (f32).
# ----------------------------------------------------------------------------
def _leaky_relu(y):
    return jnp.where(y >= 0, y, LEAKY_SLOPE * y)


def _batchnorm(y, gamma, beta):
    # PyTorch training-mode BN: biased batch statistics per feature/channel.
    mean = jnp.mean(y, axis=0, keepdims=True)
    var = jnp.mean(jnp.square(y - mean), axis=0, keepdims=True)
    return (y - mean) * lax.rsqrt(var + BN_EPS) * gamma + beta


# ----------------------------------------------------------------------------
# Kernel 1: conv1 = im2col rows @ weight -> LeakyReLU (no BN -> M-tiled).
# ----------------------------------------------------------------------------
def _conv_act_kernel(x_ref, w_ref, o_ref):
    y = jnp.dot(x_ref[...], w_ref[...], preferred_element_type=jnp.float32)
    o_ref[...] = _leaky_relu(y).astype(o_ref.dtype)


def conv_act(patches, w, *, block_m):
    M, K = patches.shape
    _, N = w.shape
    return pl.pallas_call(
        _conv_act_kernel,
        out_shape=jax.ShapeDtypeStruct((M, N), patches.dtype),
        grid_spec=pltpu.PrefetchScalarGridSpec(
            num_scalar_prefetch=0,
            grid=(M // block_m,),
            in_specs=[pl.BlockSpec((block_m, K), lambda i: (i, 0)),
                      pl.BlockSpec((K, N), lambda i: (0, 0))],
            out_specs=pl.BlockSpec((block_m, N), lambda i: (i, 0))),
        compiler_params=pltpu.CompilerParams(
            dimension_semantics=("parallel",)),       # second TC on v7x
    )(patches, w)


# ----------------------------------------------------------------------------
# Kernel 2: fused tail — conv2+BN2d+LReLU, fc+BN1d+LReLU, LSTM, 5 heads.
# All sizes are tiny (<= 256x256), so one launch beats five.
# ----------------------------------------------------------------------------
def _tail_kernel(p2_ref, wc2_ref, g2_ref, be2_ref,
                 wfc_ref, bfc_ref, gfc_ref, befc_ref,
                 wih_ref, blstm_ref, whh_ref,
                 wh1_ref, bh1_ref, gh_ref, beh_ref, wh2_ref, bh2_ref,
                 o_ref):
    # Static sizes derived from ref shapes (Python ints at trace time).
    C2 = wc2_ref.shape[1]                  # conv2 output channels
    P = wfc_ref.shape[0] // C2             # conv2 spatial positions (Ho2*Wo2)
    TB = p2_ref.shape[0] // P              # frames = B*T, time-major
    G = wih_ref.shape[1]                   # 4*hidden_dim
    H = G // 4
    B = o_ref.shape[0]
    T = TB // B

    # ---- conv2: rows ordered (p, frame) -> matmul -> BN2d -> LeakyReLU -----
    y2 = jnp.dot(p2_ref[...], wc2_ref[...], preferred_element_type=jnp.float32)
    y2 = _leaky_relu(_batchnorm(y2, g2_ref[...], be2_ref[...]))
    y2 = y2.astype(jnp.bfloat16)

    # ---- encoding_fc: PyTorch (C,H,W) flatten absorbed into P block-row dots
    #   code[frame] = sum_p  act[p-block, frame, :] @ Wfc[p-block, :]  (+ bias)
    code = jnp.zeros((TB, wfc_ref.shape[1]), jnp.float32)
    for p in range(P):
        code = code + jnp.dot(y2[p * TB:(p + 1) * TB, :],
                              wfc_ref[p * C2:(p + 1) * C2, :],
                              preferred_element_type=jnp.float32)
    code = code + bfc_ref[...]
    code = _leaky_relu(_batchnorm(code, gfc_ref[...], befc_ref[...]))

    # ---- LSTM: hoisted input projection + unrolled recurrence --------------
    gates = jnp.dot(code.astype(jnp.bfloat16), wih_ref[...],
                    preferred_element_type=jnp.float32) + blstm_ref[...]
    whh = whh_ref[...]
    h = jnp.zeros((B, H), jnp.float32)
    c = jnp.zeros((B, H), jnp.float32)
    for t in range(T):                      # static unroll, T = num_frames
        g_t = gates[t * B:(t + 1) * B, :] + jnp.dot(
            h.astype(jnp.bfloat16), whh, preferred_element_type=jnp.float32)
        sg = jax.nn.sigmoid(g_t)            # full-width EUP pushes, slice after
        th = jnp.tanh(g_t)
        i_g, f_g, o_g = sg[:, 0:H], sg[:, H:2 * H], sg[:, 3 * H:4 * H]
        g_g = th[:, 2 * H:3 * H]            # PyTorch gate order i, f, g, o
        c = f_g * c + i_g * g_g
        h = o_g * jnp.tanh(c)

    # ---- five classifier heads: concatenated W1 / block-diagonal W2 --------
    y = jnp.dot(h.astype(jnp.bfloat16), wh1_ref[...],
                preferred_element_type=jnp.float32) + bh1_ref[...]
    y = _leaky_relu(_batchnorm(y, gh_ref[...], beh_ref[...]))
    z = jnp.dot(y.astype(jnp.bfloat16), wh2_ref[...],
                preferred_element_type=jnp.float32) + bh2_ref[...]
    o_ref[...] = z.astype(o_ref.dtype)


def _full_spec(shape):
    nd = len(shape)
    return pl.BlockSpec(shape, lambda i: (0,) * nd)


def tail_fused(args, out_rows, out_cols):
    return pl.pallas_call(
        _tail_kernel,
        out_shape=jax.ShapeDtypeStruct((out_rows, out_cols), jnp.float32),
        grid_spec=pltpu.PrefetchScalarGridSpec(
            num_scalar_prefetch=0,
            grid=(1,),
            in_specs=[_full_spec(a.shape) for a in args],
            out_specs=_full_spec((out_rows, out_cols))),
        compiler_params=pltpu.CompilerParams(
            dimension_semantics=("arbitrary",)),
    )(*args)


# ----------------------------------------------------------------------------
# Glue: two-stage NHWC im2col (feature order (kw, kh, cin); weight permuted to
# match at prep time).  ~14 XLA ops per conv layer, wider intermediates.
# ----------------------------------------------------------------------------
def _im2col_nhwc(x, k, stride, pad, pad_k_to):
    N, H, W, C = x.shape
    xp = jnp.pad(x, ((0, 0), (pad, pad), (pad, pad), (0, 0)))
    Ho = (H + 2 * pad - k) // stride + 1
    Wo = (W + 2 * pad - k) // stride + 1
    rows = [xp[:, i:i + stride * (Ho - 1) + 1:stride, :, :] for i in range(k)]
    xh = jnp.concatenate(rows, axis=-1)             # (N, Ho, W+2p, k*C): (kh,c)
    cols = [xh[:, :, j:j + stride * (Wo - 1) + 1:stride, :] for j in range(k)]
    patches = jnp.concatenate(cols, axis=-1)        # (N, Ho, Wo, k*k*C): (kw,kh,c)
    patches = patches.reshape(N * Ho * Wo, k * k * C)
    if pad_k_to > k * k * C:                        # align contraction dim
        patches = jnp.pad(patches, ((0, 0), (0, pad_k_to - k * k * C)))
    return patches, Ho, Wo


# ----------------------------------------------------------------------------
# Parameters: PyTorch-layout init + one-time conversion to kernel layouts.
# ----------------------------------------------------------------------------
def init_params(key, cfg):
    """Parameters in PyTorch layout (as the nn.Module would hold them)."""
    ks = iter(jax.random.split(key, 64))
    nrm = lambda shape, s=0.1: s * jax.random.normal(next(ks), shape, jnp.float32)

    ch, size = cfg["channels"], cfg["in_size"] // 4
    p = {"conv": [dict(w=nrm((ch, 3, 5, 5)), bn=None)]}      # Conv2d(3,ch,5,4,1)
    while size > 4:
        p["conv"].append(dict(w=nrm((ch * 2, ch, 5, 5)),
                              bn=dict(gamma=1.0 + nrm((ch * 2,)),
                                      beta=nrm((ch * 2,)))))
        size //= 4
        ch *= 2
    p["final_channels"], p["final_size"] = ch, size

    feat = size * size * ch
    cd, hd = cfg["code_dim"], cfg["hidden_dim"]
    p["fc"] = dict(w=nrm((cd, feat)), b=nrm((cd,)),
                   gamma=1.0 + nrm((cd,)), beta=nrm((cd,)))
    p["lstm"] = dict(w_ih=nrm((4 * hd, cd)), w_hh=nrm((4 * hd, hd)),
                     b_ih=nrm((4 * hd,)), b_hh=nrm((4 * hd,)))
    p["heads"] = {}
    for name, n_out in [("body", cfg["n_bodies"]), ("shirt", cfg["n_shirts"]),
                        ("pants", cfg["n_pants"]),
                        ("hairstyles", cfg["n_hairstyles"]),
                        ("action", cfg["n_actions"])]:
        p["heads"][name] = dict(w1=nrm((hd // 2, hd)), b1=nrm((hd // 2,)),
                                gamma=1.0 + nrm((hd // 2,)), beta=nrm((hd // 2,)),
                                w2=nrm((n_out, hd // 2)), b2=nrm((n_out,)))
    return p


def _round_up(v, m):
    return ((v + m - 1) // m) * m


def prepare_kernel_params(p, cfg):
    """One-time conversion (transposes, permutations, concatenations, K padding,
    bf16 casts) so the jitted forward traces to just glue + two pallas_calls."""
    convs = p["conv"]
    # TODO(synk): only the default in_size=64 stack (1 plain conv + 1 BN conv)
    # is fused; deeper conv stacks would need extra standalone conv kernels.
    assert len(convs) == 2 and convs[0]["bn"] is None and convs[1]["bn"] is not None

    def conv_w(w):                                    # (Cout,Cin,kh,kw) -> (K,Cout)
        cout, cin, k, _ = w.shape
        wm = jnp.transpose(w, (3, 2, 1, 0)).reshape(k * k * cin, cout)
        kpad = _round_up(k * k * cin, 128)            # 75->128, 200->256
        return jnp.pad(wm, ((0, kpad - k * k * cin), (0, 0))).astype(jnp.bfloat16)

    kp = {"conv1_w": conv_w(convs[0]["w"]), "conv2_w": conv_w(convs[1]["w"])}
    c2 = convs[1]["w"].shape[0]
    kp["conv2_gamma"] = convs[1]["bn"]["gamma"].reshape(1, c2).astype(jnp.float32)
    kp["conv2_beta"] = convs[1]["bn"]["beta"].reshape(1, c2).astype(jnp.float32)

    # encoding_fc: PyTorch flattens conv features in (c, h, w) order; rows of the
    # prepared weight are ordered (p=h*S+w, c) so the kernel can consume the
    # spatial-major conv2 output with P block-row dots.
    S, C = p["final_size"], p["final_channels"]
    cd, hd = cfg["code_dim"], cfg["hidden_dim"]
    fc_w = p["fc"]["w"].reshape(cd, C, S, S).transpose(2, 3, 1, 0).reshape(S * S * C, cd)
    kp["fc_w"] = fc_w.astype(jnp.bfloat16)                       # (S*S*C, cd)
    kp["fc_b"] = p["fc"]["b"].reshape(1, cd).astype(jnp.float32)
    kp["fc_gamma"] = p["fc"]["gamma"].reshape(1, cd).astype(jnp.float32)
    kp["fc_beta"] = p["fc"]["beta"].reshape(1, cd).astype(jnp.float32)

    # LSTM: input projection hoisted out of the recurrence (fused with the fc).
    l = p["lstm"]
    kp["lstm_wih_t"] = l["w_ih"].T.astype(jnp.bfloat16)          # (cd, 4H)
    kp["lstm_whh_t"] = l["w_hh"].T.astype(jnp.bfloat16)          # (H, 4H)
    kp["lstm_b"] = (l["b_ih"] + l["b_hh"]).reshape(1, 4 * hd).astype(jnp.float32)

    # Classifier heads: concatenated first layers + block-diagonal second layer.
    hh = hd // 2
    dims = [p["heads"][n]["w2"].shape[0] for n in HEAD_NAMES]
    n_tot = sum(dims)
    w1s, b1s, gs, bes, b2s = [], [], [], [], []
    w2_bd = jnp.zeros((len(HEAD_NAMES) * hh, n_tot), jnp.float32)
    off = 0
    for idx, name in enumerate(HEAD_NAMES):
        hp = p["heads"][name]
        w1s.append(hp["w1"].T)                                   # (H, H/2)
        b1s.append(hp["b1"]); gs.append(hp["gamma"]); bes.append(hp["beta"])
        b2s.append(hp["b2"])
        w2_bd = w2_bd.at[idx * hh:(idx + 1) * hh, off:off + dims[idx]].set(hp["w2"].T)
        off += dims[idx]
    kp["heads_w1"] = jnp.concatenate(w1s, axis=1).astype(jnp.bfloat16)   # (H, 5*H/2)
    kp["heads_b1"] = jnp.concatenate(b1s).reshape(1, -1).astype(jnp.float32)
    kp["heads_gamma"] = jnp.concatenate(gs).reshape(1, -1).astype(jnp.float32)
    kp["heads_beta"] = jnp.concatenate(bes).reshape(1, -1).astype(jnp.float32)
    kp["heads_w2"] = w2_bd.astype(jnp.bfloat16)                  # (5*H/2, sum n_out)
    kp["heads_b2"] = jnp.concatenate(b2s).reshape(1, -1).astype(jnp.float32)
    return kp


# ----------------------------------------------------------------------------
# Forward pass: 2 pallas_calls.
# ----------------------------------------------------------------------------
def sprite_classifier_forward(kp, x, cfg):
    B, T = x.shape[0], x.shape[1]

    # Frames in TIME-MAJOR order (t*B + b): each LSTM step then reads a
    # contiguous B-row block; conv/BN/fc are row-order invariant.
    h = jnp.transpose(x.astype(jnp.bfloat16), (1, 0, 3, 4, 2)).reshape(
        T * B, x.shape[3], x.shape[4], x.shape[2])

    # conv1: XLA im2col + M-tiled Pallas matmul+LeakyReLU kernel.
    w1 = kp["conv1_w"]
    patches, Ho, Wo = _im2col_nhwc(h, k=5, stride=4, pad=1, pad_k_to=w1.shape[0])
    M = patches.shape[0]
    block_m = 2048 if M % 2048 == 0 else M            # M = 2048*B at T=8
    y1 = conv_act(patches, w1, block_m=block_m)       # (M, ch) bf16
    h1 = y1.reshape(T * B, Ho, Wo, w1.shape[1])

    # conv2 patches, re-ordered spatial-major (p, frame) so the fused tail
    # kernel can absorb BatchNorm2d and the PyTorch (C,H,W) flatten.
    w2 = kp["conv2_w"]
    p2, Ho2, Wo2 = _im2col_nhwc(h1, k=5, stride=4, pad=1, pad_k_to=w2.shape[0])
    P, K2 = Ho2 * Wo2, p2.shape[1]
    p2 = p2.reshape(T * B, P, K2).transpose(1, 0, 2).reshape(P * T * B, K2)

    head_dims = (cfg["n_bodies"], cfg["n_shirts"], cfg["n_pants"],
                 cfg["n_hairstyles"], cfg["n_actions"])
    args = (p2, w2, kp["conv2_gamma"], kp["conv2_beta"],
            kp["fc_w"], kp["fc_b"], kp["fc_gamma"], kp["fc_beta"],
            kp["lstm_wih_t"], kp["lstm_b"], kp["lstm_whh_t"],
            kp["heads_w1"], kp["heads_b1"], kp["heads_gamma"],
            kp["heads_beta"], kp["heads_w2"], kp["heads_b2"])
    logits = tail_fused(args, B, sum(head_dims))      # (B, 25) packed logits

    outs, off = [], 0
    for n in head_dims:
        outs.append(logits[:, off:off + n])
        off += n
    return tuple(outs)


if __name__ == "__main__":
    key = jax.random.PRNGKey(0)
    pkey, xkey = jax.random.split(key)
    params = init_params(pkey, CFG)
    kparams = prepare_kernel_params(params, CFG)

    B = 2
    x = jax.random.normal(
        xkey, (B, CFG["num_frames"], 3, CFG["in_size"], CFG["in_size"]),
        jnp.float32)

    fwd = jax.jit(functools.partial(sprite_classifier_forward, cfg=CFG))
    body, shirt, pants, hairstyles, action = fwd(kparams, x)
    jax.block_until_ready((body, shirt, pants, hairstyles, action))

    assert body.shape == (B, CFG["n_bodies"])
    assert shirt.shape == (B, CFG["n_shirts"])
    assert pants.shape == (B, CFG["n_pants"])
    assert hairstyles.shape == (B, CFG["n_hairstyles"])
    assert action.shape == (B, CFG["n_actions"])
    print("KERNEL_OK")
</pallas_src>

<mosaic_0001>
module attributes {stable_mosaic.version = 11 : i64} {
  func.func @_conv_act_kernel(%arg0: i32, %arg1: memref<2048x128xbf16, #tpu.memory_space<vmem>>, %arg2: memref<128x8xbf16, #tpu.memory_space<vmem>>, %arg3: memref<2048x8xbf16, #tpu.memory_space<vmem>>) attributes {dimension_semantics = [#tpu.dimension_semantics<parallel>], iteration_bounds = array<i64: 2>, scalar_prefetch = 0 : i64, scratch_operands = 0 : i64, tpu.core_type = #tpu.core_type<tc>, window_params = [{transform_indices = @transform_0, window_bounds = array<i64: 2048, 128>}, {pipeline_mode = #tpu.pipeline_mode<synchronous>, transform_indices = @transform_1, window_bounds = array<i64: 128, 8>}, {transform_indices = @transform_2, window_bounds = array<i64: 2048, 8>}]} {
    %c0 = arith.constant 0 : index
    %c0_0 = arith.constant 0 : index
    %0 = vector.load %arg1[%c0, %c0_0] : memref<2048x128xbf16, #tpu.memory_space<vmem>>, vector<2048x128xbf16>
    %c0_1 = arith.constant 0 : index
    %c0_2 = arith.constant 0 : index
    %1 = vector.load %arg2[%c0_1, %c0_2] : memref<128x8xbf16, #tpu.memory_space<vmem>>, vector<128x8xbf16>
    %cst = arith.constant dense<0.000000e+00> : vector<2048x8xf32>
    %2 = tpu.matmul %0, %1, %cst {dimension_numbers = #tpu.dot_dimension_numbers<[1], [0], [0], [1], [0, 0, 1, 1], [], []>} : vector<2048x128xbf16>, vector<128x8xbf16>, vector<2048x8xf32> -> vector<2048x8xf32>
    %cst_3 = arith.constant 0.000000e+00 : f32
    %3 = vector.broadcast %cst_3 : f32 to vector<2048x8xf32>
    %4 = arith.cmpf oge, %2, %3 : vector<2048x8xf32>
    %cst_4 = arith.constant 2.000000e-01 : f32
    %5 = vector.broadcast %cst_4 : f32 to vector<2048x8xf32>
    %6 = arith.mulf %5, %2 : vector<2048x8xf32>
    %7 = arith.select %4, %2, %6 : vector<2048x8xi1>, vector<2048x8xf32>
    %8 = arith.truncf %7 : vector<2048x8xf32> to vector<2048x8xbf16>
    %c0_5 = arith.constant 0 : index
    %c0_6 = arith.constant 0 : index
    %9 = vector.load %arg3[%c0_5, %c0_6] : memref<2048x8xbf16, #tpu.memory_space<vmem>>, vector<2048x8xbf16>
    tpu.vector_store %arg3[%c0_5, %c0_6], %8 {strides = array<i32>} : memref<2048x8xbf16, #tpu.memory_space<vmem>>, vector<2048x8xbf16>,
    return
  }
  func.func @transform_0(%arg0: i32) -> (i32, i32) {
    %c0_i32 = arith.constant 0 : i32
    %c0_i32_0 = arith.constant 0 : i32
    return %arg0, %c0_i32 : i32, i32
  }
  func.func @transform_1(%arg0: i32) -> (i32, i32) {
    %c0_i32 = arith.constant 0 : i32
    %c0_i32_0 = arith.constant 0 : i32
    %c0_i32_1 = arith.constant 0 : i32
    return %c0_i32, %c0_i32_0 : i32, i32
  }
  func.func @transform_2(%arg0: i32) -> (i32, i32) {
    %c0_i32 = arith.constant 0 : i32
    %c0_i32_0 = arith.constant 0 : i32
    return %arg0, %c0_i32 : i32, i32
  }
}

module attributes {stable_mosaic.version = 11 : i64} {
  func.func @_tail_kernel(%arg0: i32, %arg1: memref<256x256xbf16, #tpu.memory_space<vmem>>, %arg2: memref<256x16xbf16, #tpu.memory_space<vmem>>, %arg3: memref<1x16xf32, #tpu.memory_space<vmem>>, %arg4: memref<1x16xf32, #tpu.memory_space<vmem>>, %arg5: memref<256x128xbf16, #tpu.memory_space<vmem>>, %arg6: memref<1x128xf32, #tpu.memory_space<vmem>>, %arg7: memref<1x128xf32, #tpu.memory_space<vmem>>, %arg8: memref<1x128xf32, #tpu.memory_space<vmem>>, %arg9: memref<128x256xbf16, #tpu.memory_space<vmem>>, %arg10: memref<1x256xf32, #tpu.memory_space<vmem>>, %arg11: memref<64x256xbf16, #tpu.memory_space<vmem>>, %arg12: memref<64x160xbf16, #tpu.memory_space<vmem>>, %arg13: memref<1x160xf32, #tpu.memory_space<vmem>>, %arg14: memref<1x160xf32, #tpu.memory_space<vmem>>, %arg15: memref<1x160xf32, #tpu.memory_space<vmem>>, %arg16: memref<160x25xbf16, #tpu.memory_space<vmem>>, %arg17: memref<1x25xf32, #tpu.memory_space<vmem>>, %arg18: memref<2x25xf32, #tpu.memory_space<vmem>>) attributes {dimension_semantics = [#tpu.dimension_semantics<arbitrary>], iteration_bounds = array<i64: 1>, scalar_prefetch = 0 : i64, scratch_operands = 0 : i64, tpu.core_type = #tpu.core_type<tc>, window_params = [{pipeline_mode = #tpu.pipeline_mode<synchronous>, transform_indices = @transform_0, window_bounds = array<i64: 256, 256>}, {pipeline_mode = #tpu.pipeline_mode<synchronous>, transform_indices = @transform_1, window_bounds = array<i64: 256, 16>}, {pipeline_mode = #tpu.pipeline_mode<synchronous>, transform_indices = @transform_2, window_bounds = array<i64: 1, 16>}, {pipeline_mode = #tpu.pipeline_mode<synchronous>, transform_indices = @transform_3, window_bounds = array<i64: 1, 16>}, {pipeline_mode = #tpu.pipeline_mode<synchronous>, transform_indices = @transform_4, window_bounds = array<i64: 256, 128>}, {pipeline_mode = #tpu.pipeline_mode<synchronous>, transform_indices = @transform_5, window_bounds = array<i64: 1, 128>}, {pipeline_mode = #tpu.pipeline_mode<synchronous>, transform_indices = @transform_6, window_bounds = array<i64: 1, 128>}, {pipeline_mode = #tpu.pipeline_mode<synchronous>, transform_indices = @transform_7, window_bounds = array<i64: 1, 128>}, {pipeline_mode = #tpu.pipeline_mode<synchronous>, transform_indices = @transform_8, window_bounds = array<i64: 128, 256>}, {pipeline_mode = #tpu.pipeline_mode<synchronous>, transform_indices = @transform_9, window_bounds = array<i64: 1, 256>}, {pipeline_mode = #tpu.pipeline_mode<synchronous>, transform_indices = @transform_10, window_bounds = array<i64: 64, 256>}, {pipeline_mode = #tpu.pipeline_mode<synchronous>, transform_indices = @transform_11, window_bounds = array<i64: 64, 160>}, {pipeline_mode = #tpu.pipeline_mode<synchronous>, transform_indices = @transform_12, window_bounds = array<i64: 1, 160>}, {pipeline_mode = #tpu.pipeline_mode<synchronous>, transform_indices = @transform_13, window_bounds = array<i64: 1, 160>}, {pipeline_mode = #tpu.pipeline_mode<synchronous>, transform_indices = @transform_14, window_bounds = array<i64: 1, 160>}, {pipeline_mode = #tpu.pipeline_mode<synchronous>, transform_indices = @transform_15, window_bounds = array<i64: 160, 25>}, {pipeline_mode = #tpu.pipeline_mode<synchronous>, transform_indices = @transform_16, window_bounds = array<i64: 1, 25>}, {pipeline_mode = #tpu.pipeline_mode<synchronous>, transform_indices = @transform_17, window_bounds = array<i64: 2, 25>}]} {
    %c0 = arith.constant 0 : index
    %c0_0 = arith.constant 0 : index
    %0 = vector.load %arg1[%c0, %c0_0] : memref<256x256xbf16, #tpu.memory_space<vmem>>, vector<256x256xbf16>
    %c0_1 = arith.constant 0 : index
    %c0_2 = arith.constant 0 : index
    %1 = vector.load %arg2[%c0_1, %c0_2] : memref<256x16xbf16, #tpu.memory_space<vmem>>, vector<256x16xbf16>
    %cst = arith.constant dense<0.000000e+00> : vector<256x16xf32>
    %2 = tpu.matmul %0, %1, %cst {dimension_numbers = #tpu.dot_dimension_numbers<[1], [0], [0], [1], [0, 0, 1, 1], [], []>} : vector<256x256xbf16>, vector<256x16xbf16>, vector<256x16xf32> -> vector<256x16xf32>
    %c0_3 = arith.constant 0 : index
    %c0_4 = arith.constant 0 : index
    %3 = vector.load %arg3[%c0_3, %c0_4] : memref<1x16xf32, #tpu.memory_space<vmem>>, vector<1x16xf32>
    %c0_5 = arith.constant 0 : index
    %c0_6 = arith.constant 0 : index
    %4 = vector.load %arg4[%c0_5, %c0_6] : memref<1x16xf32, #tpu.memory_space<vmem>>, vector<1x16xf32>
    %cst_7 = arith.constant dense<0.000000e+00> : vector<16xf32>
    %5 = vector.multi_reduction <add>, %2, %cst_7 [0] : vector<256x16xf32> to vector<16xf32>
    %6 = vector.shape_cast %5 : vector<16xf32> to vector<1x16xf32>
    %cst_8 = arith.constant 2.560000e+02 : f32
    %7 = vector.broadcast %cst_8 : f32 to vector<1x16xf32>
    %8 = arith.divf %6, %7 : vector<1x16xf32>
    %9 = vector.broadcast %8 : vector<1x16xf32> to vector<256x16xf32>
    %10 = arith.subf %2, %9 : vector<256x16xf32>
    %11 = arith.mulf %10, %10 : vector<256x16xf32>
    %cst_9 = arith.constant dense<0.000000e+00> : vector<16xf32>
    %12 = vector.multi_reduction <add>, %11, %cst_9 [0] : vector<256x16xf32> to vector<16xf32>
    %13 = vector.shape_cast %12 : vector<16xf32> to vector<1x16xf32>
    %cst_10 = arith.constant 2.560000e+02 : f32
    %14 = vector.broadcast %cst_10 : f32 to vector<1x16xf32>
    %15 = arith.divf %13, %14 : vector<1x16xf32>
    %16 = vector.broadcast %8 : vector<1x16xf32> to vector<256x16xf32>
    %17 = arith.subf %2, %16 : vector<256x16xf32>
    %cst_11 = arith.constant 9.99999974E-6 : f32
    %18 = vector.broadcast %cst_11 : f32 to vector<1x16xf32>
    %19 = arith.addf %15, %18 : vector<1x16xf32>
    %20 = math.rsqrt %19 : vector<1x16xf32>
    %21 = vector.broadcast %20 : vector<1x16xf32> to vector<256x16xf32>
    %22 = arith.mulf %17, %21 : vector<256x16xf32>
    %23 = vector.broadcast %3 : vector<1x16xf32> to vector<256x16xf32>
    %24 = arith.mulf %22, %23 : vector<256x16xf32>
    %25 = vector.broadcast %4 : vector<1x16xf32> to vector<256x16xf32>
    %26 = arith.addf %24, %25 : vector<256x16xf32>
    %cst_12 = arith.constant 0.000000e+00 : f32
    %27 = vector.broadcast %cst_12 : f32 to vector<256x16xf32>
    %28 = arith.cmpf oge, %26, %27 : vector<256x16xf32>
    %cst_13 = arith.constant 2.000000e-01 : f32
    %29 = vector.broadcast %cst_13 : f32 to vector<256x16xf32>
    %30 = arith.mulf %29, %26 : vector<256x16xf32>
    %31 = arith.select %28, %26, %30 : vector<256x16xi1>, vector<256x16xf32>
    %32 = arith.truncf %31 : vector<256x16xf32> to vector<256x16xbf16>
    %cst_14 = arith.constant 0.000000e+00 : f32
    %33 = vector.broadcast %cst_14 : f32 to vector<16x128xf32>
    %34 = vector.extract_strided_slice %32 {offsets = [0, 0], sizes = [16, 16], strides = [1, 1]} : vector<256x16xbf16> to vector<16x16xbf16>
    %c0_15 = arith.constant 0 : index
    %c0_16 = arith.constant 0 : index
    %35 = vector.load %arg5[%c0_15, %c0_16] : memref<256x128xbf16, #tpu.memory_space<vmem>>, vector<16x128xbf16>
    %cst_17 = arith.constant dense<0.000000e+00> : vector<16x128xf32>
    %36 = tpu.matmul %34, %35, %cst_17 {dimension_numbers = #tpu.dot_dimension_numbers<[1], [0], [0], [1], [0, 0, 1, 1], [], []>} : vector<16x16xbf16>, vector<16x128xbf16>, vector<16x128xf32> -> vector<16x128xf32>
    %37 = arith.addf %33, %36 : vector<16x128xf32>
    %38 = vector.extract_strided_slice %32 {offsets = [16, 0], sizes = [16, 16], strides = [1, 1]} : vector<256x16xbf16> to vector<16x16xbf16>
    %c16 = arith.constant 16 : index
    %c0_18 = arith.constant 0 : index
    %39 = vector.load %arg5[%c16, %c0_18] : memref<256x128xbf16, #tpu.memory_space<vmem>>, vector<16x128xbf16>
    %cst_19 = arith.constant dense<0.000000e+00> : vector<16x128xf32>
    %40 = tpu.matmul %38, %39, %cst_19 {dimension_numbers = #tpu.dot_dimension_numbers<[1], [0], [0], [1], [0, 0, 1, 1], [], []>} : vector<16x16xbf16>, vector<16x128xbf16>, vector<16x128xf32> -> vector<16x128xf32>
    %41 = arith.addf %37, %40 : vector<16x128xf32>
    %42 = vector.extract_strided_slice %32 {offsets = [32, 0], sizes = [16, 16], strides = [1, 1]} : vector<256x16xbf16> to vector<16x16xbf16>
    %c32 = arith.constant 32 : index
    %c0_20 = arith.constant 0 : index
    %43 = vector.load %arg5[%c32, %c0_20] : memref<256x128xbf16, #tpu.memory_space<vmem>>, vector<16x128xbf16>
    %cst_21 = arith.constant dense<0.000000e+00> : vector<16x128xf32>
    %44 = tpu.matmul %42, %43, %cst_21 {dimension_numbers = #tpu.dot_dimension_numbers<[1], [0], [0], [1], [0, 0, 1, 1], [], []>} : vector<16x16xbf16>, vector<16x128xbf16>, vector<16x128xf32> -> vector<16x128xf32>
    %45 = arith.addf %41, %44 : vector<16x128xf32>
    %46 = vector.extract_strided_slice %32 {offsets = [48, 0], sizes = [16, 16], strides = [1, 1]} : vector<256x16xbf16> to vector<16x16xbf16>
    %c48 = arith.constant 48 : index
    %c0_22 = arith.constant 0 : index
    %47 = vector.load %arg5[%c48, %c0_22] : memref<256x128xbf16, #tpu.memory_space<vmem>>, vector<16x128xbf16>
    %cst_23 = arith.constant dense<0.000000e+00> : vector<16x128xf32>
    %48 = tpu.matmul %46, %47, %cst_23 {dimension_numbers = #tpu.dot_dimension_numbers<[1], [0], [0], [1], [0, 0, 1, 1], [], []>} : vector<16x16xbf16>, vector<16x128xbf16>, vector<16x128xf32> -> vector<16x128xf32>
    %49 = arith.addf %45, %48 : vector<16x128xf32>
    %50 = vector.extract_strided_slice %32 {offsets = [64, 0], sizes = [16, 16], strides = [1, 1]} : vector<256x16xbf16> to vector<16x16xbf16>
    %c64 = arith.constant 64 : index
    %c0_24 = arith.constant 0 : index
    %51 = vector.load %arg5[%c64, %c0_24] : memref<256x128xbf16, #tpu.memory_space<vmem>>, vector<16x128xbf16>
    %cst_25 = arith.constant dense<0.000000e+00> : vector<16x128xf32>
    %52 = tpu.matmul %50, %51, %cst_25 {dimension_numbers = #tpu.dot_dimension_numbers<[1], [0], [0], [1], [0, 0, 1, 1], [], []>} : vector<16x16xbf16>, vector<16x128xbf16>, vector<16x128xf32> -> vector<16x128xf32>
    %53 = arith.addf %49, %52 : vector<16x128xf32>
    %54 = vector.extract_strided_slice %32 {offsets = [80, 0], sizes = [16, 16], strides = [1, 1]} : vector<256x16xbf16> to vector<16x16xbf16>
    %c80 = arith.constant 80 : index
    %c0_26 = arith.constant 0 : index
    %55 = vector.load %arg5[%c80, %c0_26] : memref<256x128xbf16, #tpu.memory_space<vmem>>, vector<16x128xbf16>
    %cst_27 = arith.constant dense<0.000000e+00> : vector<16x128xf32>
    %56 = tpu.matmul %54, %55, %cst_27 {dimension_numbers = #tpu.dot_dimension_numbers<[1], [0], [0], [1], [0, 0, 1, 1], [], []>} : vector<16x16xbf16>, vector<16x128xbf16>, vector<16x128xf32> -> vector<16x128xf32>
    %57 = arith.addf %53, %56 : vector<16x128xf32>
    %58 = vector.extract_strided_slice %32 {offsets = [96, 0], sizes = [16, 16], strides = [1, 1]} : vector<256x16xbf16> to vector<16x16xbf16>
    %c96 = arith.constant 96 : index
    %c0_28 = arith.constant 0 : index
    %59 = vector.load %arg5[%c96, %c0_28] : memref<256x128xbf16, #tpu.memory_space<vmem>>, vector<16x128xbf16>
    %cst_29 = arith.constant dense<0.000000e+00> : vector<16x128xf32>
    %60 = tpu.matmul %58, %59, %cst_29 {dimension_numbers = #tpu.dot_dimension_numbers<[1], [0], [0], [1], [0, 0, 1, 1], [], []>} : vector<16x16xbf16>, vector<16x128xbf16>, vector<16x128xf32> -> vector<16x128xf32>
    %61 = arith.addf %57, %60 : vector<16x128xf32>
    %62 = vector.extract_strided_slice %32 {offsets = [112, 0], sizes = [16, 16], strides = [1, 1]} : vector<256x16xbf16> to vector<16x16xbf16>
    %c112 = arith.constant 112 : index
    %c0_30 = arith.constant 0 : index
    %63 = vector.load %arg5[%c112, %c0_30] : memref<256x128xbf16, #tpu.memory_space<vmem>>, vector<16x128xbf16>
    %cst_31 = arith.constant dense<0.000000e+00> : vector<16x128xf32>
    %64 = tpu.matmul %62, %63, %cst_31 {dimension_numbers = #tpu.dot_dimension_numbers<[1], [0], [0], [1], [0, 0, 1, 1], [], []>} : vector<16x16xbf16>, vector<16x128xbf16>, vector<16x128xf32> -> vector<16x128xf32>
    %65 = arith.addf %61, %64 : vector<16x128xf32>
    %66 = vector.extract_strided_slice %32 {offsets = [128, 0], sizes = [16, 16], strides = [1, 1]} : vector<256x16xbf16> to vector<16x16xbf16>
    %c128 = arith.constant 128 : index
    %c0_32 = arith.constant 0 : index
    %67 = vector.load %arg5[%c128, %c0_32] : memref<256x128xbf16, #tpu.memory_space<vmem>>, vector<16x128xbf16>
    %cst_33 = arith.constant dense<0.000000e+00> : vector<16x128xf32>
    %68 = tpu.matmul %66, %67, %cst_33 {dimension_numbers = #tpu.dot_dimension_numbers<[1], [0], [0], [1], [0, 0, 1, 1], [], []>} : vector<16x16xbf16>, vector<16x128xbf16>, vector<16x128xf32> -> vector<16x128xf32>
    %69 = arith.addf %65, %68 : vector<16x128xf32>
    %70 = vector.extract_strided_slice %32 {offsets = [144, 0], sizes = [16, 16], strides = [1, 1]} : vector<256x16xbf16> to vector<16x16xbf16>
    %c144 = arith.constant 144 : index
    %c0_34 = arith.constant 0 : index
    %71 = vector.load %arg5[%c144, %c0_34] : memref<256x128xbf16, #tpu.memory_space<vmem>>, vector<16x128xbf16>
    %cst_35 = arith.constant dense<0.000000e+00> : vector<16x128xf32>
    %72 = tpu.matmul %70, %71, %cst_35 {dimension_numbers = #tpu.dot_dimension_numbers<[1], [0], [0], [1], [0, 0, 1, 1], [], []>} : vector<16x16xbf16>, vector<16x128xbf16>, vector<16x128xf32> -> vector<16x128xf32>
    %73 = arith.addf %69, %72 : vector<16x128xf32>
    %74 = vector.extract_strided_slice %32 {offsets = [160, 0], sizes = [16, 16], strides = [1, 1]} : vector<256x16xbf16> to vector<16x16xbf16>
    %c160 = arith.constant 160 : index
    %c0_36 = arith.constant 0 : index
    %75 = vector.load %arg5[%c160, %c0_36] : memref<256x128xbf16, #tpu.memory_space<vmem>>, vector<16x128xbf16>
    %cst_37 = arith.constant dense<0.000000e+00> : vector<16x128xf32>
    %76 = tpu.matmul %74, %75, %cst_37 {dimension_numbers = #tpu.dot_dimension_numbers<[1], [0], [0], [1], [0, 0, 1, 1], [], []>} : vector<16x16xbf16>, vector<16x128xbf16>, vector<16x128xf32> -> vector<16x128xf32>
    %77 = arith.addf %73, %76 : vector<16x128xf32>
    %78 = vector.extract_strided_slice %32 {offsets = [176, 0], sizes = [16, 16], strides = [1, 1]} : vector<256x16xbf16> to vector<16x16xbf16>
    %c176 = arith.constant 176 : index
    %c0_38 = arith.constant 0 : index
    %79 = vector.load %arg5[%c176, %c0_38] : memref<256x128xbf16, #tpu.memory_space<vmem>>, vector<16x128xbf16>
    %cst_39 = arith.constant dense<0.000000e+00> : vector<16x128xf32>
    %80 = tpu.matmul %78, %79, %cst_39 {dimension_numbers = #tpu.dot_dimension_numbers<[1], [0], [0], [1], [0, 0, 1, 1], [], []>} : vector<16x16xbf16>, vector<16x128xbf16>, vector<16x128xf32> -> vector<16x128xf32>
    %81 = arith.addf %77, %80 : vector<16x128xf32>
    %82 = vector.extract_strided_slice %32 {offsets = [192, 0], sizes = [16, 16], strides = [1, 1]} : vector<256x16xbf16> to vector<16x16xbf16>
    %c192 = arith.constant 192 : index
    %c0_40 = arith.constant 0 : index
    %83 = vector.load %arg5[%c192, %c0_40] : memref<256x128xbf16, #tpu.memory_space<vmem>>, vector<16x128xbf16>
    %cst_41 = arith.constant dense<0.000000e+00> : vector<16x128xf32>
    %84 = tpu.matmul %82, %83, %cst_41 {dimension_numbers = #tpu.dot_dimension_numbers<[1], [0], [0], [1], [0, 0, 1, 1], [], []>} : vector<16x16xbf16>, vector<16x128xbf16>, vector<16x128xf32> -> vector<16x128xf32>
    %85 = arith.addf %81, %84 : vector<16x128xf32>
    %86 = vector.extract_strided_slice %32 {offsets = [208, 0], sizes = [16, 16], strides = [1, 1]} : vector<256x16xbf16> to vector<16x16xbf16>
    %c208 = arith.constant 208 : index
    %c0_42 = arith.constant 0 : index
    %87 = vector.load %arg5[%c208, %c0_42] : memref<256x128xbf16, #tpu.memory_space<vmem>>, vector<16x128xbf16>
    %cst_43 = arith.constant dense<0.000000e+00> : vector<16x128xf32>
    %88 = tpu.matmul %86, %87, %cst_43 {dimension_numbers = #tpu.dot_dimension_numbers<[1], [0], [0], [1], [0, 0, 1, 1], [], []>} : vector<16x16xbf16>, vector<16x128xbf16>, vector<16x128xf32> -> vector<16x128xf32>
    %89 = arith.addf %85, %88 : vector<16x128xf32>
    %90 = vector.extract_strided_slice %32 {offsets = [224, 0], sizes = [16, 16], strides = [1, 1]} : vector<256x16xbf16> to vector<16x16xbf16>
    %c224 = arith.constant 224 : index
    %c0_44 = arith.constant 0 : index
    %91 = vector.load %arg5[%c224, %c0_44] : memref<256x128xbf16, #tpu.memory_space<vmem>>, vector<16x128xbf16>
    %cst_45 = arith.constant dense<0.000000e+00> : vector<16x128xf32>
    %92 = tpu.matmul %90, %91, %cst_45 {dimension_numbers = #tpu.dot_dimension_numbers<[1], [0], [0], [1], [0, 0, 1, 1], [], []>} : vector<16x16xbf16>, vector<16x128xbf16>, vector<16x128xf32> -> vector<16x128xf32>
    %93 = arith.addf %89, %92 : vector<16x128xf32>
    %94 = vector.extract_strided_slice %32 {offsets = [240, 0], sizes = [16, 16], strides = [1, 1]} : vector<256x16xbf16> to vector<16x16xbf16>
    %c240 = arith.constant 240 : index
    %c0_46 = arith.constant 0 : index
    %95 = vector.load %arg5[%c240, %c0_46] : memref<256x128xbf16, #tpu.memory_space<vmem>>, vector<16x128xbf16>
    %cst_47 = arith.constant dense<0.000000e+00> : vector<16x128xf32>
    %96 = tpu.matmul %94, %95, %cst_47 {dimension_numbers = #tpu.dot_dimension_numbers<[1], [0], [0], [1], [0, 0, 1, 1], [], []>} : vector<16x16xbf16>, vector<16x128xbf16>, vector<16x128xf32> -> vector<16x128xf32>
    %97 = arith.addf %93, %96 : vector<16x128xf32>
    %c0_48 = arith.constant 0 : index
    %c0_49 = arith.constant 0 : index
    %98 = vector.load %arg6[%c0_48, %c0_49] : memref<1x128xf32, #tpu.memory_space<vmem>>, vector<1x128xf32>
    %99 = vector.broadcast %98 : vector<1x128xf32> to vector<16x128xf32>
    %100 = arith.addf %97, %99 : vector<16x128xf32>
    %c0_50 = arith.constant 0 : index
    %c0_51 = arith.constant 0 : index
    %101 = vector.load %arg7[%c0_50, %c0_51] : memref<1x128xf32, #tpu.memory_space<vmem>>, vector<1x128xf32>
    %c0_52 = arith.constant 0 : index
    %c0_53 = arith.constant 0 : index
    %102 = vector.load %arg8[%c0_52, %c0_53] : memref<1x128xf32, #tpu.memory_space<vmem>>, vector<1x128xf32>
    %cst_54 = arith.constant dense<0.000000e+00> : vector<128xf32>
    %103 = vector.multi_reduction <add>, %100, %cst_54 [0] : vector<16x128xf32> to vector<128xf32>
    %104 = vector.shape_cast %103 : vector<128xf32> to vector<1x128xf32>
    %cst_55 = arith.constant 1.600000e+01 : f32
    %105 = vector.broadcast %cst_55 : f32 to vector<1x128xf32>
    %106 = arith.divf %104, %105 : vector<1x128xf32>
    %107 = vector.broadcast %106 : vector<1x128xf32> to vector<16x128xf32>
    %108 = arith.subf %100, %107 : vector<16x128xf32>
    %109 = arith.mulf %108, %108 : vector<16x128xf32>
    %cst_56 = arith.constant dense<0.000000e+00> : vector<128xf32>
    %110 = vector.multi_reduction <add>, %109, %cst_56 [0] : vector<16x128xf32> to vector<128xf32>
    %111 = vector.shape_cast %110 : vector<128xf32> to vector<1x128xf32>
    %cst_57 = arith.constant 1.600000e+01 : f32
    %112 = vector.broadcast %cst_57 : f32 to vector<1x128xf32>
    %113 = arith.divf %111, %112 : vector<1x128xf32>
    %114 = vector.broadcast %106 : vector<1x128xf32> to vector<16x128xf32>
    %115 = arith.subf %100, %114 : vector<16x128xf32>
    %cst_58 = arith.constant 9.99999974E-6 : f32
    %116 = vector.broadcast %cst_58 : f32 to vector<1x128xf32>
    %117 = arith.addf %113, %116 : vector<1x128xf32>
    %118 = math.rsqrt %117 : vector<1x128xf32>
    %119 = vector.broadcast %118 : vector<1x128xf32> to vector<16x128xf32>
    %120 = arith.mulf %115, %119 : vector<16x128xf32>
    %121 = vector.broadcast %101 : vector<1x128xf32> to vector<16x128xf32>
    %122 = arith.mulf %120, %121 : vector<16x128xf32>
    %123 = vector.broadcast %102 : vector<1x128xf32> to vector<16x128xf32>
    %124 = arith.addf %122, %123 : vector<16x128xf32>
    %cst_59 = arith.constant 0.000000e+00 : f32
    %125 = vector.broadcast %cst_59 : f32 to vector<16x128xf32>
    %126 = arith.cmpf oge, %124, %125 : vector<16x128xf32>
    %cst_60 = arith.constant 2.000000e-01 : f32
    %127 = vector.broadcast %cst_60 : f32 to vector<16x128xf32>
    %128 = arith.mulf %127, %124 : vector<16x128xf32>
    %129 = arith.select %126, %124, %128 : vector<16x128xi1>, vector<16x128xf32>
    %130 = arith.truncf %129 : vector<16x128xf32> to vector<16x128xbf16>
    %c0_61 = arith.constant 0 : index
    %c0_62 = arith.constant 0 : index
    %131 = vector.load %arg9[%c0_61, %c0_62] : memref<128x256xbf16, #tpu.memory_space<vmem>>, vector<128x256xbf16>
    %cst_63 = arith.constant dense<0.000000e+00> : vector<16x256xf32>
    %132 = tpu.matmul %130, %131, %cst_63 {dimension_numbers = #tpu.dot_dimension_numbers<[1], [0], [0], [1], [0, 0, 1, 1], [], []>} : vector<16x128xbf16>, vector<128x256xbf16>, vector<16x256xf32> -> vector<16x256xf32>
    %c0_64 = arith.constant 0 : index
    %c0_65 = arith.constant 0 : index
    %133 = vector.load %arg10[%c0_64, %c0_65] : memref<1x256xf32, #tpu.memory_space<vmem>>, vector<1x256xf32>
    %134 = vector.broadcast %133 : vector<1x256xf32> to vector<16x256xf32>
    %135 = arith.addf %132, %134 : vector<16x256xf32>
    %c0_66 = arith.constant 0 : index
    %c0_67 = arith.constant 0 : index
    %136 = vector.load %arg11[%c0_66, %c0_67] : memref<64x256xbf16, #tpu.memory_space<vmem>>, vector<64x256xbf16>
    %cst_68 = arith.constant 0.000000e+00 : f32
    %137 = vector.broadcast %cst_68 : f32 to vector<2x64xf32>
    %cst_69 = arith.constant 0.000000e+00 : f32
    %138 = vector.broadcast %cst_69 : f32 to vector<2x64xf32>
    %139 = vector.extract_strided_slice %135 {offsets = [0, 0], sizes = [2, 256], strides = [1, 1]} : vector<16x256xf32> to vector<2x256xf32>
    %140 = arith.truncf %137 : vector<2x64xf32> to vector<2x64xbf16>
    %cst_70 = arith.constant dense<0.000000e+00> : vector<2x256xf32>
    %141 = tpu.matmul %140, %136, %cst_70 {dimension_numbers = #tpu.dot_dimension_numbers<[1], [0], [0], [1], [0, 0, 1, 1], [], []>} : vector<2x64xbf16>, vector<64x256xbf16>, vector<2x256xf32> -> vector<2x256xf32>
    %142 = arith.addf %139, %141 : vector<2x256xf32>
    %143 = arith.negf %142 : vector<2x256xf32>
    %144 = math.exp %143 : vector<2x256xf32>
    %cst_71 = arith.constant 1.000000e+00 : f32
    %145 = vector.broadcast %cst_71 : f32 to vector<2x256xf32>
    %146 = arith.addf %145, %144 : vector<2x256xf32>
    %147 = arith.divf %145, %146 : vector<2x256xf32>
    %148 = math.tanh %142 : vector<2x256xf32>
    %149 = vector.extract_strided_slice %147 {offsets = [0, 0], sizes = [2, 64], strides = [1, 1]} : vector<2x256xf32> to vector<2x64xf32>
    %150 = vector.extract_strided_slice %147 {offsets = [0, 64], sizes = [2, 64], strides = [1, 1]} : vector<2x256xf32> to vector<2x64xf32>
    %151 = vector.extract_strided_slice %147 {offsets = [0, 192], sizes = [2, 64], strides = [1, 1]} : vector<2x256xf32> to vector<2x64xf32>
    %152 = vector.extract_strided_slice %148 {offsets = [0, 128], sizes = [2, 64], strides = [1, 1]} : vector<2x256xf32> to vector<2x64xf32>
    %153 = arith.mulf %150, %138 : vector<2x64xf32>
    %154 = arith.mulf %149, %152 : vector<2x64xf32>
    %155 = arith.addf %153, %154 : vector<2x64xf32>
    %156 = math.tanh %155 : vector<2x64xf32>
    %157 = arith.mulf %151, %156 : vector<2x64xf32>
    %158 = vector.extract_strided_slice %135 {offsets = [2, 0], sizes = [2, 256], strides = [1, 1]} : vector<16x256xf32> to vector<2x256xf32>
    %159 = arith.truncf %157 : vector<2x64xf32> to vector<2x64xbf16>
    %cst_72 = arith.constant dense<0.000000e+00> : vector<2x256xf32>
    %160 = tpu.matmul %159, %136, %cst_72 {dimension_numbers = #tpu.dot_dimension_numbers<[1], [0], [0], [1], [0, 0, 1, 1], [], []>} : vector<2x64xbf16>, vector<64x256xbf16>, vector<2x256xf32> -> vector<2x256xf32>
    %161 = arith.addf %158, %160 : vector<2x256xf32>
    %162 = arith.negf %161 : vector<2x256xf32>
    %163 = math.exp %162 : vector<2x256xf32>
    %cst_73 = arith.constant 1.000000e+00 : f32
    %164 = vector.broadcast %cst_73 : f32 to vector<2x256xf32>
    %165 = arith.addf %164, %163 : vector<2x256xf32>
    %166 = arith.divf %164, %165 : vector<2x256xf32>
    %167 = math.tanh %161 : vector<2x256xf32>
    %168 = vector.extract_strided_slice %166 {offsets = [0, 0], sizes = [2, 64], strides = [1, 1]} : vector<2x256xf32> to vector<2x64xf32>
    %169 = vector.extract_strided_slice %166 {offsets = [0, 64], sizes = [2, 64], strides = [1, 1]} : vector<2x256xf32> to vector<2x64xf32>
    %170 = vector.extract_strided_slice %166 {offsets = [0, 192], sizes = [2, 64], strides = [1, 1]} : vector<2x256xf32> to vector<2x64xf32>
    %171 = vector.extract_strided_slice %167 {offsets = [0, 128], sizes = [2, 64], strides = [1, 1]} : vector<2x256xf32> to vector<2x64xf32>
    %172 = arith.mulf %169, %155 : vector<2x64xf32>
    %173 = arith.mulf %168, %171 : vector<2x64xf32>
    %174 = arith.addf %172, %173 : vector<2x64xf32>
    %175 = math.tanh %174 : vector<2x64xf32>
    %176 = arith.mulf %170, %175 : vector<2x64xf32>
    %177 = vector.extract_strided_slice %135 {offsets = [4, 0], sizes = [2, 256], strides = [1, 1]} : vector<16x256xf32> to vector<2x256xf32>
    %178 = arith.truncf %176 : vector<2x64xf32> to vector<2x64xbf16>
    %cst_74 = arith.constant dense<0.000000e+00> : vector<2x256xf32>
    %179 = tpu.matmul %178, %136, %cst_74 {dimension_numbers = #tpu.dot_dimension_numbers<[1], [0], [0], [1], [0, 0, 1, 1], [], []>} : vector<2x64xbf16>, vector<64x256xbf16>, vector<2x256xf32> -> vector<2x256xf32>
    %180 = arith.addf %177, %179 : vector<2x256xf32>
    %181 = arith.negf %180 : vector<2x256xf32>
    %182 = math.exp %181 : vector<2x256xf32>
    %cst_75 = arith.constant 1.000000e+00 : f32
    %183 = vector.broadcast %cst_75 : f32 to vector<2x256xf32>
    %184 = arith.addf %183, %182 : vector<2x256xf32>
    %185 = arith.divf %183, %184 : vector<2x256xf32>
    %186 = math.tanh %180 : vector<2x256xf32>
    %187 = vector.extract_strided_slice %185 {offsets = [0, 0], sizes = [2, 64], strides = [1, 1]} : vector<2x256xf32> to vector<2x64xf32>
    %188 = vector.extract_strided_slice %185 {offsets = [0, 64], sizes = [2, 64], strides = [1, 1]} : vector<2x256xf32> to vector<2x64xf32>
    %189 = vector.extract_strided_slice %185 {offsets = [0, 192], sizes = [2, 64], strides = [1, 1]} : vector<2x256xf32> to vector<2x64xf32>
    %190 = vector.extract_strided_slice %186 {offsets = [0, 128], sizes = [2, 64], strides = [1, 1]} : vector<2x256xf32> to vector<2x64xf32>
    %191 = arith.mulf %188, %174 : vector<2x64xf32>
    %192 = arith.mulf %187, %190 : vector<2x64xf32>
    %193 = arith.addf %191, %192 : vector<2x64xf32>
    %194 = math.tanh %193 : vector<2x64xf32>
    %195 = arith.mulf %189, %194 : vector<2x64xf32>
    %196 = vector.extract_strided_slice %135 {offsets = [6, 0], sizes = [2, 256], strides = [1, 1]} : vector<16x256xf32> to vector<2x256xf32>
    %197 = arith.truncf %195 : vector<2x64xf32> to vector<2x64xbf16>
    %cst_76 = arith.constant dense<0.000000e+00> : vector<2x256xf32>
    %198 = tpu.matmul %197, %136, %cst_76 {dimension_numbers = #tpu.dot_dimension_numbers<[1], [0], [0], [1], [0, 0, 1, 1], [], []>} : vector<2x64xbf16>, vector<64x256xbf16>, vector<2x256xf32> -> vector<2x256xf32>
    %199 = arith.addf %196, %198 : vector<2x256xf32>
    %200 = arith.negf %199 : vector<2x256xf32>
    %201 = math.exp %200 : vector<2x256xf32>
    %cst_77 = arith.constant 1.000000e+00 : f32
    %202 = vector.broadcast %cst_77 : f32 to vector<2x256xf32>
    %203 = arith.addf %202, %201 : vector<2x256xf32>
    %204 = arith.divf %202, %203 : vector<2x256xf32>
    %205 = math.tanh %199 : vector<2x256xf32>
    %206 = vector.extract_strided_slice %204 {offsets = [0, 0], sizes = [2, 64], strides = [1, 1]} : vector<2x256xf32> to vector<2x64xf32>
    %207 = vector.extract_strided_slice %204 {offsets = [0, 64], sizes = [2, 64], strides = [1, 1]} : vector<2x256xf32> to vector<2x64xf32>
    %208 = vector.extract_strided_slice %204 {offsets = [0, 192], sizes = [2, 64], strides = [1, 1]} : vector<2x256xf32> to vector<2x64xf32>
    %209 = vector.extract_strided_slice %205 {offsets = [0, 128], sizes = [2, 64], strides = [1, 1]} : vector<2x256xf32> to vector<2x64xf32>
    %210 = arith.mulf %207, %193 : vector<2x64xf32>
    %211 = arith.mulf %206, %209 : vector<2x64xf32>
    %212 = arith.addf %210, %211 : vector<2x64xf32>
    %213 = math.tanh %212 : vector<2x64xf32>
    %214 = arith.mulf %208, %213 : vector<2x64xf32>
    %215 = vector.extract_strided_slice %135 {offsets = [8, 0], sizes = [2, 256], strides = [1, 1]} : vector<16x256xf32> to vector<2x256xf32>
    %216 = arith.truncf %214 : vector<2x64xf32> to vector<2x64xbf16>
    %cst_78 = arith.constant dense<0.000000e+00> : vector<2x256xf32>
    %217 = tpu.matmul %216, %136, %cst_78 {dimension_numbers = #tpu.dot_dimension_numbers<[1], [0], [0], [1], [0, 0, 1, 1], [], []>} : vector<2x64xbf16>, vector<64x256xbf16>, vector<2x256xf32> -> vector<2x256xf32>
    %218 = arith.addf %215, %217 : vector<2x256xf32>
    %219 = arith.negf %218 : vector<2x256xf32>
    %220 = math.exp %219 : vector<2x256xf32>
    %cst_79 = arith.constant 1.000000e+00 : f32
    %221 = vector.broadcast %cst_79 : f32 to vector<2x256xf32>
    %222 = arith.addf %221, %220 : vector<2x256xf32>
    %223 = arith.divf %221, %222 : vector<2x256xf32>
    %224 = math.tanh %218 : vector<2x256xf32>
    %225 = vector.extract_strided_slice %223 {offsets = [0, 0], sizes = [2, 64], strides = [1, 1]} : vector<2x256xf32> to vector<2x64xf32>
    %226 = vector.extract_strided_slice %223 {offsets = [0, 64], sizes = [2, 64], strides = [1, 1]} : vector<2x256xf32> to vector<2x64xf32>
    %227 = vector.extract_strided_slice %223 {offsets = [0, 192], sizes = [2, 64], strides = [1, 1]} : vector<2x256xf32> to vector<2x64xf32>
    %228 = vector.extract_strided_slice %224 {offsets = [0, 128], sizes = [2, 64], strides = [1, 1]} : vector<2x256xf32> to vector<2x64xf32>
    %229 = arith.mulf %226, %212 : vector<2x64xf32>
    %230 = arith.mulf %225, %228 : vector<2x64xf32>
    %231 = arith.addf %229, %230 : vector<2x64xf32>
    %232 = math.tanh %231 : vector<2x64xf32>
    %233 = arith.mulf %227, %232 : vector<2x64xf32>
    %234 = vector.extract_strided_slice %135 {offsets = [10, 0], sizes = [2, 256], strides = [1, 1]} : vector<16x256xf32> to vector<2x256xf32>
    %235 = arith.truncf %233 : vector<2x64xf32> to vector<2x64xbf16>
    %cst_80 = arith.constant dense<0.000000e+00> : vector<2x256xf32>
    %236 = tpu.matmul %235, %136, %cst_80 {dimension_numbers = #tpu.dot_dimension_numbers<[1], [0], [0], [1], [0, 0, 1, 1], [], []>} : vector<2x64xbf16>, vector<64x256xbf16>, vector<2x256xf32> -> vector<2x256xf32>
    %237 = arith.addf %234, %236 : vector<2x256xf32>
    %238 = arith.negf %237 : vector<2x256xf32>
    %239 = math.exp %238 : vector<2x256xf32>
    %cst_81 = arith.constant 1.000000e+00 : f32
    %240 = vector.broadcast %cst_81 : f32 to vector<2x256xf32>
    %241 = arith.addf %240, %239 : vector<2x256xf32>
    %242 = arith.divf %240, %241 : vector<2x256xf32>
    %243 = math.tanh %237 : vector<2x256xf32>
    %244 = vector.extract_strided_slice %242 {offsets = [0, 0], sizes = [2, 64], strides = [1, 1]} : vector<2x256xf32> to vector<2x64xf32>
    %245 = vector.extract_strided_slice %242 {offsets = [0, 64], sizes = [2, 64], strides = [1, 1]} : vector<2x256xf32> to vector<2x64xf32>
    %246 = vector.extract_strided_slice %242 {offsets = [0, 192], sizes = [2, 64], strides = [1, 1]} : vector<2x256xf32> to vector<2x64xf32>
    %247 = vector.extract_strided_slice %243 {offsets = [0, 128], sizes = [2, 64], strides = [1, 1]} : vector<2x256xf32> to vector<2x64xf32>
    %248 = arith.mulf %245, %231 : vector<2x64xf32>
    %249 = arith.mulf %244, %247 : vector<2x64xf32>
    %250 = arith.addf %248, %249 : vector<2x64xf32>
    %251 = math.tanh %250 : vector<2x64xf32>
    %252 = arith.mulf %246, %251 : vector<2x64xf32>
    %253 = vector.extract_strided_slice %135 {offsets = [12, 0], sizes = [2, 256], strides = [1, 1]} : vector<16x256xf32> to vector<2x256xf32>
    %254 = arith.truncf %252 : vector<2x64xf32> to vector<2x64xbf16>
    %cst_82 = arith.constant dense<0.000000e+00> : vector<2x256xf32>
    %255 = tpu.matmul %254, %136, %cst_82 {dimension_numbers = #tpu.dot_dimension_numbers<[1], [0], [0], [1], [0, 0, 1, 1], [], []>} : vector<2x64xbf16>, vector<64x256xbf16>, vector<2x256xf32> -> vector<2x256xf32>
    %256 = arith.addf %253, %255 : vector<2x256xf32>
    %257 = arith.negf %256 : vector<2x256xf32>
    %258 = math.exp %257 : vector<2x256xf32>
    %cst_83 = arith.constant 1.000000e+00 : f32
    %259 = vector.broadcast %cst_83 : f32 to vector<2x256xf32>
    %260 = arith.addf %259, %258 : vector<2x256xf32>
    %261 = arith.divf %259, %260 : vector<2x256xf32>
    %262 = math.tanh %256 : vector<2x256xf32>
    %263 = vector.extract_strided_slice %261 {offsets = [0, 0], sizes = [2, 64], strides = [1, 1]} : vector<2x256xf32> to vector<2x64xf32>
    %264 = vector.extract_strided_slice %261 {offsets = [0, 64], sizes = [2, 64], strides = [1, 1]} : vector<2x256xf32> to vector<2x64xf32>
    %265 = vector.extract_strided_slice %261 {offsets = [0, 192], sizes = [2, 64], strides = [1, 1]} : vector<2x256xf32> to vector<2x64xf32>
    %266 = vector.extract_strided_slice %262 {offsets = [0, 128], sizes = [2, 64], strides = [1, 1]} : vector<2x256xf32> to vector<2x64xf32>
    %267 = arith.mulf %264, %250 : vector<2x64xf32>
    %268 = arith.mulf %263, %266 : vector<2x64xf32>
    %269 = arith.addf %267, %268 : vector<2x64xf32>
    %270 = math.tanh %269 : vector<2x64xf32>
    %271 = arith.mulf %265, %270 : vector<2x64xf32>
    %272 = vector.extract_strided_slice %135 {offsets = [14, 0], sizes = [2, 256], strides = [1, 1]} : vector<16x256xf32> to vector<2x256xf32>
    %273 = arith.truncf %271 : vector<2x64xf32> to vector<2x64xbf16>
    %cst_84 = arith.constant dense<0.000000e+00> : vector<2x256xf32>
    %274 = tpu.matmul %273, %136, %cst_84 {dimension_numbers = #tpu.dot_dimension_numbers<[1], [0], [0], [1], [0, 0, 1, 1], [], []>} : vector<2x64xbf16>, vector<64x256xbf16>, vector<2x256xf32> -> vector<2x256xf32>
    %275 = arith.addf %272, %274 : vector<2x256xf32>
    %276 = arith.negf %275 : vector<2x256xf32>
    %277 = math.exp %276 : vector<2x256xf32>
    %cst_85 = arith.constant 1.000000e+00 : f32
    %278 = vector.broadcast %cst_85 : f32 to vector<2x256xf32>
    %279 = arith.addf %278, %277 : vector<2x256xf32>
    %280 = arith.divf %278, %279 : vector<2x256xf32>
    %281 = math.tanh %275 : vector<2x256xf32>
    %282 = vector.extract_strided_slice %280 {offsets = [0, 0], sizes = [2, 64], strides = [1, 1]} : vector<2x256xf32> to vector<2x64xf32>
    %283 = vector.extract_strided_slice %280 {offsets = [0, 64], sizes = [2, 64], strides = [1, 1]} : vector<2x256xf32> to vector<2x64xf32>
    %284 = vector.extract_strided_slice %280 {offsets = [0, 192], sizes = [2, 64], strides = [1, 1]} : vector<2x256xf32> to vector<2x64xf32>
    %285 = vector.extract_strided_slice %281 {offsets = [0, 128], sizes = [2, 64], strides = [1, 1]} : vector<2x256xf32> to vector<2x64xf32>
    %286 = arith.mulf %283, %269 : vector<2x64xf32>
    %287 = arith.mulf %282, %285 : vector<2x64xf32>
    %288 = arith.addf %286, %287 : vector<2x64xf32>
    %289 = math.tanh %288 : vector<2x64xf32>
    %290 = arith.mulf %284, %289 : vector<2x64xf32>
    %291 = arith.truncf %290 : vector<2x64xf32> to vector<2x64xbf16>
    %c0_86 = arith.constant 0 : index
    %c0_87 = arith.constant 0 : index
    %292 = vector.load %arg12[%c0_86, %c0_87] : memref<64x160xbf16, #tpu.memory_space<vmem>>, vector<64x160xbf16>
    %cst_88 = arith.constant dense<0.000000e+00> : vector<2x160xf32>
    %293 = tpu.matmul %291, %292, %cst_88 {dimension_numbers = #tpu.dot_dimension_numbers<[1], [0], [0], [1], [0, 0, 1, 1], [], []>} : vector<2x64xbf16>, vector<64x160xbf16>, vector<2x160xf32> -> vector<2x160xf32>
    %c0_89 = arith.constant 0 : index
    %c0_90 = arith.constant 0 : index
    %294 = vector.load %arg13[%c0_89, %c0_90] : memref<1x160xf32, #tpu.memory_space<vmem>>, vector<1x160xf32>
    %295 = vector.broadcast %294 : vector<1x160xf32> to vector<2x160xf32>
    %296 = arith.addf %293, %295 : vector<2x160xf32>
    %c0_91 = arith.constant 0 : index
    %c0_92 = arith.constant 0 : index
    %297 = vector.load %arg14[%c0_91, %c0_92] : memref<1x160xf32, #tpu.memory_space<vmem>>, vector<1x160xf32>
    %c0_93 = arith.constant 0 : index
    %c0_94 = arith.constant 0 : index
    %298 = vector.load %arg15[%c0_93, %c0_94] : memref<1x160xf32, #tpu.memory_space<vmem>>, vector<1x160xf32>
    %cst_95 = arith.constant dense<0.000000e+00> : vector<160xf32>
    %299 = vector.multi_reduction <add>, %296, %cst_95 [0] : vector<2x160xf32> to vector<160xf32>
    %300 = vector.shape_cast %299 : vector<160xf32> to vector<1x160xf32>
    %cst_96 = arith.constant 2.000000e+00 : f32
    %301 = vector.broadcast %cst_96 : f32 to vector<1x160xf32>
    %302 = arith.divf %300, %301 : vector<1x160xf32>
    %303 = vector.broadcast %302 : vector<1x160xf32> to vector<2x160xf32>
    %304 = arith.subf %296, %303 : vector<2x160xf32>
    %305 = arith.mulf %304, %304 : vector<2x160xf32>
    %cst_97 = arith.constant dense<0.000000e+00> : vector<160xf32>
    %306 = vector.multi_reduction <add>, %305, %cst_97 [0] : vector<2x160xf32> to vector<160xf32>
    %307 = vector.shape_cast %306 : vector<160xf32> to vector<1x160xf32>
    %cst_98 = arith.constant 2.000000e+00 : f32
    %308 = vector.broadcast %cst_98 : f32 to vector<1x160xf32>
    %309 = arith.divf %307, %308 : vector<1x160xf32>
    %310 = vector.broadcast %302 : vector<1x160xf32> to vector<2x160xf32>
    %311 = arith.subf %296, %310 : vector<2x160xf32>
    %cst_99 = arith.constant 9.99999974E-6 : f32
    %312 = vector.broadcast %cst_99 : f32 to vector<1x160xf32>
    %313 = arith.addf %309, %312 : vector<1x160xf32>
    %314 = math.rsqrt %313 : vector<1x160xf32>
    %315 = vector.broadcast %314 : vector<1x160xf32> to vector<2x160xf32>
    %316 = arith.mulf %311, %315 : vector<2x160xf32>
    %317 = vector.broadcast %297 : vector<1x160xf32> to vector<2x160xf32>
    %318 = arith.mulf %316, %317 : vector<2x160xf32>
    %319 = vector.broadcast %298 : vector<1x160xf32> to vector<2x160xf32>
    %320 = arith.addf %318, %319 : vector<2x160xf32>
    %cst_100 = arith.constant 0.000000e+00 : f32
    %321 = vector.broadcast %cst_100 : f32 to vector<2x160xf32>
    %322 = arith.cmpf oge, %320, %321 : vector<2x160xf32>
    %cst_101 = arith.constant 2.000000e-01 : f32
    %323 = vector.broadcast %cst_101 : f32 to vector<2x160xf32>
    %324 = arith.mulf %323, %320 : vector<2x160xf32>
    %325 = arith.select %322, %320, %324 : vector<2x160xi1>, vector<2x160xf32>
    %326 = arith.truncf %325 : vector<2x160xf32> to vector<2x160xbf16>
    %c0_102 = arith.constant 0 : index
    %c0_103 = arith.constant 0 : index
    %327 = vector.load %arg16[%c0_102, %c0_103] : memref<160x25xbf16, #tpu.memory_space<vmem>>, vector<160x25xbf16>
    %cst_104 = arith.constant dense<0.000000e+00> : vector<2x25xf32>
    %328 = tpu.matmul %326, %327, %cst_104 {dimension_numbers = #tpu.dot_dimension_numbers<[1], [0], [0], [1], [0, 0, 1, 1], [], []>} : vector<2x160xbf16>, vector<160x25xbf16>, vector<2x25xf32> -> vector<2x25xf32>
    %c0_105 = arith.constant 0 : index
    %c0_106 = arith.constant 0 : index
    %329 = vector.load %arg17[%c0_105, %c0_106] : memref<1x25xf32, #tpu.memory_space<vmem>>, vector<1x25xf32>
    %330 = vector.broadcast %329 : vector<1x25xf32> to vector<2x25xf32>
    %331 = arith.addf %328, %330 : vector<2x25xf32>
    %c0_107 = arith.constant 0 : index
    %c0_108 = arith.constant 0 : index
    %332 = vector.load %arg18[%c0_107, %c0_108] : memref<2x25xf32, #tpu.memory_space<vmem>>, vector<2x25xf32>
    tpu.vector_store %arg18[%c0_107, %c0_108], %331 {strides = array<i32>} : memref<2x25xf32, #tpu.memory_space<vmem>>, vector<2x25xf32>,
    return
  }
  func.func @transform_0(%arg0: i32) -> (i32, i32) {
    %c0_i32 = arith.constant 0 : i32
    %c0_i32_0 = arith.constant 0 : i32
    %c0_i32_1 = arith.constant 0 : i32
    return %c0_i32, %c0_i32_0 : i32, i32
  }
  func.func @transform_1(%arg0: i32) -> (i32, i32) {
    %c0_i32 = arith.constant 0 : i32
    %c0_i32_0 = arith.constant 0 : i32
    %c0_i32_1 = arith.constant 0 : i32
    return %c0_i32, %c0_i32_0 : i32, i32
  }
  func.func @transform_2(%arg0: i32) -> (i32, i32) {
    %c0_i32 = arith.constant 0 : i32
    %c0_i32_0 = arith.constant 0 : i32
    %c0_i32_1 = arith.constant 0 : i32
    return %c0_i32, %c0_i32_0 : i32, i32
  }
  func.func @transform_3(%arg0: i32) -> (i32, i32) {
    %c0_i32 = arith.constant 0 : i32
    %c0_i32_0 = arith.constant 0 : i32
    %c0_i32_1 = arith.constant 0 : i32
    return %c0_i32, %c0_i32_0 : i32, i32
  }
  func.func @transform_4(%arg0: i32) -> (i32, i32) {
    %c0_i32 = arith.constant 0 : i32
    %c0_i32_0 = arith.constant 0 : i32
    %c0_i32_1 = arith.constant 0 : i32
    return %c0_i32, %c0_i32_0 : i32, i32
  }
  func.func @transform_5(%arg0: i32) -> (i32, i32) {
    %c0_i32 = arith.constant 0 : i32
    %c0_i32_0 = arith.constant 0 : i32
    %c0_i32_1 = arith.constant 0 : i32
    return %c0_i32, %c0_i32_0 : i32, i32
  }
  func.func @transform_6(%arg0: i32) -> (i32, i32) {
    %c0_i32 = arith.constant 0 : i32
    %c0_i32_0 = arith.constant 0 : i32
    %c0_i32_1 = arith.constant 0 : i32
    return %c0_i32, %c0_i32_0 : i32, i32
  }
  func.func @transform_7(%arg0: i32) -> (i32, i32) {
    %c0_i32 = arith.constant 0 : i32
    %c0_i32_0 = arith.constant 0 : i32
    %c0_i32_1 = arith.constant 0 : i32
    return %c0_i32, %c0_i32_0 : i32, i32
  }
  func.func @transform_8(%arg0: i32) -> (i32, i32) {
    %c0_i32 = arith.constant 0 : i32
    %c0_i32_0 = arith.constant 0 : i32
    %c0_i32_1 = arith.constant 0 : i32
    return %c0_i32, %c0_i32_0 : i32, i32
  }
  func.func @transform_9(%arg0: i32) -> (i32, i32) {
    %c0_i32 = arith.constant 0 : i32
    %c0_i32_0 = arith.constant 0 : i32
    %c0_i32_1 = arith.constant 0 : i32
    return %c0_i32, %c0_i32_0 : i32, i32
  }
  func.func @transform_10(%arg0: i32) -> (i32, i32) {
    %c0_i32 = arith.constant 0 : i32
    %c0_i32_0 = arith.constant 0 : i32
    %c0_i32_1 = arith.constant 0 : i32
    return %c0_i32, %c0_i32_0 : i32, i32
  }
  func.func @transform_11(%arg0: i32) -> (i32, i32) {
    %c0_i32 = arith.constant 0 : i32
    %c0_i32_0 = arith.constant 0 : i32
    %c0_i32_1 = arith.constant 0 : i32
    return %c0_i32, %c0_i32_0 : i32, i32
  }
  func.func @transform_12(%arg0: i32) -> (i32, i32) {
    %c0_i32 = arith.constant 0 : i32
    %c0_i32_0 = arith.constant 0 : i32
    %c0_i32_1 = arith.constant 0 : i32
    return %c0_i32, %c0_i32_0 : i32, i32
  }
  func.func @transform_13(%arg0: i32) -> (i32, i32) {
    %c0_i32 = arith.constant 0 : i32
    %c0_i32_0 = arith.constant 0 : i32
    %c0_i32_1 = arith.constant 0 : i32
    return %c0_i32, %c0_i32_0 : i32, i32
  }
  func.func @transform_14(%arg0: i32) -> (i32, i32) {
    %c0_i32 = arith.constant 0 : i32
    %c0_i32_0 = arith.constant 0 : i32
    %c0_i32_1 = arith.constant 0 : i32
    return %c0_i32, %c0_i32_0 : i32, i32
  }
  func.func @transform_15(%arg0: i32) -> (i32, i32) {
    %c0_i32 = arith.constant 0 : i32
    %c0_i32_0 = arith.constant 0 : i32
    %c0_i32_1 = arith.constant 0 : i32
    return %c0_i32, %c0_i32_0 : i32, i32
  }
  func.func @transform_16(%arg0: i32) -> (i32, i32) {
    %c0_i32 = arith.constant 0 : i32
    %c0_i32_0 = arith.constant 0 : i32
    %c0_i32_1 = arith.constant 0 : i32
    return %c0_i32, %c0_i32_0 : i32, i32
  }
  func.func @transform_17(%arg0: i32) -> (i32, i32) {
    %c0_i32 = arith.constant 0 : i32
    %c0_i32_0 = arith.constant 0 : i32
    %c0_i32_1 = arith.constant 0 : i32
    return %c0_i32, %c0_i32_0 : i32, i32
  }
}

</mosaic_0001>

<bundles_post_ra>
// kernel: sprite_classifier_forward.2
= control target key start
LH: loop header
LB: loop body
LE: loop exit
PB: predicated region body
PF: predicated region fallthrough
CT: control target
= control target key end

     0   :  { %s5648_s9 = smov 0   ;;  %s6341_s0 = inlined_call_operand.vmem [shape: bf16[4096,128], index: 0, kind: input, shape index: {}]   ;;  %s6342_s1 = inlined_call_operand.vmem [shape: bf16[128,8], index: 1, kind: input, shape index: {}]   ;;  %s6343_s2 = inlined_call_operand.vmem [shape: bf16[4096,8], index: 2, kind: output, shape index: {}]  }
   0x1 LB: > { %s4398_s10 = sadd.s32 4294967295, %s5631_s9   ;;  %p4402_p0 = scmp.ge.s32.totalorder %s5631_s9, 1  ;;  %s5631_s9 = sphi %s5648_s9, %s12_s9  }
   0x2   : > { %p113_p1 = scmp.lt.s32.totalorder %s5631_s9, 3 }
   0x4   : > { %p114_p2 = pnand %p4402_p0, %p113_p1 }
   0x5   : > { %s4403_s13 = sshll.u32 (!%p114_p2), %s4398_s10, 8 }
   0x6   : > { %117 = sbr.rel (%p114_p2) target bundleno = 498 (0x1f2), region = 28  ;;  %p136_p3 = scmp.lt.s32.totalorder (!%p114_p2), %s4403_s13, 511 }
   0xb   : > { %v5489_v0 = vld [vmem:[%s6342_s1 + $0x38] sm:$0xff]   ;;  %v5490_v1 = vld [vmem:[%s6342_s1 + $0x30] sm:$0xff]   ;;  %s6345_s13 = smov (!%p136_p3, %s4403_s13), 511  ;;  %v5491_v2 = vld [vmem:[%s6342_s1 + $0x28] sm:$0xff]   ;;  %vm4085_vm2 = vcmask 60416  }
   0xc   : > { %5193 = vmatprep.subr.bf16.mxu0 %v5489_v0  ;;  %5465 = vmatprep.subr.bf16.mxu1 %v5489_v0  ;;  %s4404_s18 = sshll.u32 %s6345_s13, 2  ;;  %v5492_v3 = vld [vmem:[%s6342_s1 + $0x20] sm:$0xff]   ;;  %v5493_v6 = vld [vmem:[%s6342_s1 + $0x18] sm:$0xff]   ;;  %v5494_v7 = vld [vmem:[%s6342_s1 + $0x10] sm:$0xff]  }
   0xd   : > { %5194 = vmatpush3.bf16.msra.mxu0 %v5489_v0  ;;  %5473 = vmatpush3.bf16.msra.mxu1 %v5489_v0  ;;  %s5673_s21 = scalar_lea.vmem %s6341_s0, %s4404_s18  ;;  %v5495_v8 = vld [vmem:[%s6342_s1 + $0x8] sm:$0xff]   ;;  %v5496_v9 = vld [vmem:[%s6342_s1] sm:$0xff]   ;;  %s5797_s6 = scalar_lea.vmem %s6343_s2, %s4404_s18 }
   0xe   : > { %5195 = vmatprep.subr.bf16.mxu0 %v5490_v1  ;;  %5466 = vmatprep.subr.bf16.mxu1 %v5490_v1  ;;  %v5497_v4 = vld [vmem:[%s5673_s21] sm:$0xff]   ;;  %v5499_v10 = vld [vmem:[%s5673_s21 + $0x8] sm:$0xff]   ;;  %v5501_v12 = vld [vmem:[%s5673_s21 + $0x10] sm:$0xff]  }
   0xf   : > { %v5498_v5 = vld [vmem:[%s5673_s21 + $0x200] sm:$0xff]   ;;  %5209 = vmatprep.mubr.bf16.mxu0 %v5497_v4  ;;  %v5500_v11 = vld [vmem:[%s5673_s21 + $0x208] sm:$0xff]   ;;  %v5502_v13 = vld [vmem:[%s5673_s21 + $0x210] sm:$0xff]  }
  0x10   : > { %5337 = vmatprep.mubr.bf16.mxu1 %v5498_v5  ;;  %v5503_v14 = vld [vmem:[%s5673_s21 + $0x18] sm:$0xff]   ;;  %v5505_v16 = vld [vmem:[%s5673_s21 + $0x20] sm:$0xff]   ;;  %v5507_v18 = vld [vmem:[%s5673_s21 + $0x28] sm:$0xff]  }
  0x11   : > { %5196 = vmatpush3.bf16.msra.mxu0 %v5490_v1  ;;  %5474 = vmatpush3.bf16.msra.mxu1 %v5490_v1  ;;  %v5504_v15 = vld [vmem:[%s5673_s21 + $0x218] sm:$0xff]   ;;  %v5506_v17 = vld [vmem:[%s5673_s21 + $0x220] sm:$0xff]   ;;  %v5508_v19 = vld [vmem:[%s5673_s21 + $0x228] sm:$0xff]  }
  0x12   : > { %5197 = vmatprep.subr.bf16.mxu0 %v5491_v2  ;;  %5467 = vmatprep.subr.bf16.mxu1 %v5491_v2  ;;  %v5509_v20 = vld [vmem:[%s5673_s21 + $0x30] sm:$0xff]   ;;  %v5511_v22 = vld [vmem:[%s5673_s21 + $0x38] sm:$0xff]   ;;  %v5513_v24 = vld [vmem:[%s5673_s21 + $0x40] sm:$0xff]  }
  0x13   : > { %v5510_v21 = vld [vmem:[%s5673_s21 + $0x230] sm:$0xff]   ;;  %v5512_v23 = vld [vmem:[%s5673_s21 + $0x238] sm:$0xff]   ;;  %v5514_v25 = vld [vmem:[%s5673_s21 + $0x240] sm:$0xff]  }
  0x14   : > { %v5515_v26 = vld [vmem:[%s5673_s21 + $0x48] sm:$0xff]   ;;  %v5517_v28 = vld [vmem:[%s5673_s21 + $0x50] sm:$0xff]   ;;  %v5519_v30 = vld [vmem:[%s5673_s21 + $0x58] sm:$0xff]  }
  0x15   : > { %5198 = vmatpush3.bf16.msra.mxu0 %v5491_v2  ;;  %5475 = vmatpush3.bf16.msra.mxu1 %v5491_v2  ;;  %v5516_v27 = vld [vmem:[%s5673_s21 + $0x248] sm:$0xff]   ;;  %v5518_v29 = vld [vmem:[%s5673_s21 + $0x250] sm:$0xff]   ;;  %v5520_v31 = vld [vmem:[%s5673_s21 + $0x258] sm:$0xff]  }
  0x16   : > { %5199 = vmatprep.subr.bf16.mxu0 %v5492_v3  ;;  %5468 = vmatprep.subr.bf16.mxu1 %v5492_v3  ;;  %v5521_v32 = vld [vmem:[%s5673_s21 + $0x60] sm:$0xff]   ;;  %v5523_v34 = vld [vmem:[%s5673_s21 + $0x68] sm:$0xff]   ;;  %v5525_v36 = vld [vmem:[%s5673_s21 + $0x70] sm:$0xff]  }
  0x17   : > { %v5522_v33 = vld [vmem:[%s5673_s21 + $0x260] sm:$0xff]   ;;  %v5524_v35 = vld [vmem:[%s5673_s21 + $0x268] sm:$0xff]   ;;  %v5526_v37 = vld [vmem:[%s5673_s21 + $0x270] sm:$0xff]  }
  0x18   : > { %v5527_v38 = vld [vmem:[%s5673_s21 + $0x78] sm:$0xff]   ;;  %v5529_v40 = vld [vmem:[%s5673_s21 + $0x80] sm:$0xff]   ;;  %v5531_v42 = vld [vmem:[%s5673_s21 + $0x88] sm:$0xff]  }
  0x19   : > { %5200 = vmatpush3.bf16.msra.mxu0 %v5492_v3  ;;  %5476 = vmatpush3.bf16.msra.mxu1 %v5492_v3  ;;  %v5528_v39 = vld [vmem:[%s5673_s21 + $0x278] sm:$0xff]   ;;  %v5530_v41 = vld [vmem:[%s5673_s21 + $0x280] sm:$0xff]   ;;  %v5532_v43 = vld [vmem:[%s5673_s21 + $0x288] sm:$0xff]  }
  0x1a   : > { %5201 = vmatprep.subr.bf16.mxu0 %v5493_v6  ;;  %5469 = vmatprep.subr.bf16.mxu1 %v5493_v6  ;;  %v5533_v44 = vld [vmem:[%s5673_s21 + $0x90] sm:$0xff]   ;;  %v5535_v46 = vld [vmem:[%s5673_s21 + $0x98] sm:$0xff]   ;;  %v5537_v48 = vld [vmem:[%s5673_s21 + $0xa0] sm:$0xff]  }
  0x1b   : > { %v5534_v45 = vld [vmem:[%s5673_s21 + $0x290] sm:$0xff]   ;;  %v5536_v47 = vld [vmem:[%s5673_s21 + $0x298] sm:$0xff]   ;;  %v5538_v49 = vld [vmem:[%s5673_s21 + $0x2a0] sm:$0xff]  }
  0x1c   : > { %v5539_v50 = vld [vmem:[%s5673_s21 + $0xa8] sm:$0xff]   ;;  %v5541_v52 = vld [vmem:[%s5673_s21 + $0xb0] sm:$0xff]   ;;  %v5543_v54 = vld [vmem:[%s5673_s21 + $0xb8] sm:$0xff]  }
  0x1d   : > { %5202 = vmatpush3.bf16.msra.mxu0 %v5493_v6  ;;  %5477 = vmatpush3.bf16.msra.mxu1 %v5493_v6  ;;  %v5540_v51 = vld [vmem:[%s5673_s21 + $0x2a8] sm:$0xff]   ;;  %v5542_v53 = vld [vmem:[%s5673_s21 + $0x2b0] sm:$0xff]   ;;  %v5544_v55 = vld [vmem:[%s5673_s21 + $0x2b8] sm:$0xff]  }
  0x1e   : > { %5203 = vmatprep.subr.bf16.mxu0 %v5494_v7  ;;  %5470 = vmatprep.subr.bf16.mxu1 %v5494_v7  ;;  %v5545_v56 = vld [vmem:[%s5673_s21 + $0xc0] sm:$0xff]   ;;  %v5547_v58 = vld [vmem:[%s5673_s21 + $0xc8] sm:$0xff]   ;;  %v5549_v60 = vld [vmem:[%s5673_s21 + $0xd0] sm:$0xff]  }
  0x1f   : > { %v5546_v57 = vld [vmem:[%s5673_s21 + $0x2c0] sm:$0xff]   ;;  %v5548_v59 = vld [vmem:[%s5673_s21 + $0x2c8] sm:$0xff]   ;;  %v5550_v61 = vld [vmem:[%s5673_s21 + $0x2d0] sm:$0xff]  }
  0x20   : > { %v5551_v62 = vld [vmem:[%s5673_s21 + $0xd8] sm:$0xff]   ;;  %v5553_v0 = vld [vmem:[%s5673_s21 + $0xe0] sm:$0xff]   ;;  %v5555_v2 = vld [vmem:[%s5673_s21 + $0xe8] sm:$0xff]  }
  0x21   : > { %5204 = vmatpush3.bf16.msra.mxu0 %v5494_v7  ;;  %5478 = vmatpush3.bf16.msra.mxu1 %v5494_v7  ;;  %v5552_v63 = vld [vmem:[%s5673_s21 + $0x2d8] sm:$0xff]   ;;  %v5554_v1 = vld [vmem:[%s5673_s21 + $0x2e0] sm:$0xff]   ;;  %v5556_v3 = vld [vmem:[%s5673_s21 + $0x2e8] sm:$0xff]  }
  0x22   : > { %5205 = vmatprep.subr.bf16.mxu0 %v5495_v8  ;;  %5471 = vmatprep.subr.bf16.mxu1 %v5495_v8  ;;  %v5557_v4 = vld [vmem:[%s5673_s21 + $0xf0] sm:$0xff]   ;;  %v5559_v6 = vld [vmem:[%s5673_s21 + $0xf8] sm:$0xff]  }
  0x23   : > { %v5558_v5 = vld [vmem:[%s5673_s21 + $0x2f0] sm:$0xff]   ;;  %v5560_v7 = vld [vmem:[%s5673_s21 + $0x2f8] sm:$0xff]  }
  0x25   : > { %5206 = vmatpush3.bf16.msra.mxu0 %v5495_v8  ;;  %5479 = vmatpush3.bf16.msra.mxu1 %v5495_v8  ;;  %v5561_v8 = vld [vmem:[%s5673_s21 + $0x100] sm:$0xff]  }
  0x26   : > { %5207 = vmatprep.subr.bf16.mxu0 %v5496_v9  ;;  %5472 = vmatprep.subr.bf16.mxu1 %v5496_v9 }
  0x29   : > { %5208 = vmatpush3.bf16.msra.mxu0 %v5496_v9  ;;  %5480 = vmatpush3.bf16.msra.mxu1 %v5496_v9  ;;  %v5562_v9 = vld [vmem:[%s5673_s21 + $0x300] sm:$0xff]  }
  0x2c   : > { %5210 = vmatmul.mubr.bf16.vlgmr.msra.gmra.mxu0 %v5499_v10  ;;  %5338 = vmatmul.mubr.bf16.vlgmr.msra.gmra.mxu1 %v5500_v11  ;;  %v5563_v10 = vld [vmem:[%s5673_s21 + $0x108] sm:$0xff]  }
  0x2d   : > { %5213 = vmatprep.mubr.bf16.mxu0 %v5501_v12  ;;  %5341 = vmatprep.mubr.bf16.mxu1 %v5502_v13  ;;  %v5564_v11 = vld [vmem:[%s5673_s21 + $0x308] sm:$0xff]   ;;  %v5565_v12 = vld [vmem:[%s5673_s21 + $0x110] sm:$0xff]  }
  0x2e   : > { %v5566_v13 = vld [vmem:[%s5673_s21 + $0x310] sm:$0xff]  }
  0x34   : > { %5214 = vmatmul.mubr.bf16.gmra.mxu0 %v5503_v14  ;;  %5342 = vmatmul.mubr.bf16.gmra.mxu1 %v5504_v15  ;;  %v5567_v14 = vld [vmem:[%s5673_s21 + $0x118] sm:$0xff]  }
  0x35   : > { %5217 = vmatprep.mubr.bf16.mxu0 %v5505_v16  ;;  %5345 = vmatprep.mubr.bf16.mxu1 %v5506_v17  ;;  %v5568_v15 = vld [vmem:[%s5673_s21 + $0x318] sm:$0xff]   ;;  %v5569_v16 = vld [vmem:[%s5673_s21 + $0x120] sm:$0xff]  }
  0x36   : > { %v5570_v17 = vld [vmem:[%s5673_s21 + $0x320] sm:$0xff]  }
  0x3c   : > { %5218 = vmatmul.mubr.bf16.gmra.mxu0 %v5507_v18  ;;  %5346 = vmatmul.mubr.bf16.gmra.mxu1 %v5508_v19  ;;  %v5571_v18 = vld [vmem:[%s5673_s21 + $0x128] sm:$0xff]  }
  0x3d   : > { %5221 = vmatprep.mubr.bf16.mxu0 %v5509_v20  ;;  %5349 = vmatprep.mubr.bf16.mxu1 %v5510_v21  ;;  %v5572_v19 = vld [vmem:[%s5673_s21 + $0x328] sm:$0xff]   ;;  %v5573_v20 = vld [vmem:[%s5673_s21 + $0x130] sm:$0xff]  }
  0x3e   : > { %v5574_v21 = vld [vmem:[%s5673_s21 + $0x330] sm:$0xff]  }
  0x44   : > { %5222 = vmatmul.mubr.bf16.gmra.mxu0 %v5511_v22  ;;  %5350 = vmatmul.mubr.bf16.gmra.mxu1 %v5512_v23  ;;  %v5575_v22 = vld [vmem:[%s5673_s21 + $0x138] sm:$0xff]  }
  0x45   : > { %5225 = vmatprep.mubr.bf16.mxu0 %v5513_v24  ;;  %5353 = vmatprep.mubr.bf16.mxu1 %v5514_v25  ;;  %v5576_v23 = vld [vmem:[%s5673_s21 + $0x338] sm:$0xff]   ;;  %v5577_v24 = vld [vmem:[%s5673_s21 + $0x140] sm:$0xff]  }
  0x46   : > { %v5578_v25 = vld [vmem:[%s5673_s21 + $0x340] sm:$0xff]  }
  0x4c   : > { %5226 = vmatmul.mubr.bf16.gmra.mxu0 %v5515_v26  ;;  %5354 = vmatmul.mubr.bf16.gmra.mxu1 %v5516_v27  ;;  %v5579_v26 = vld [vmem:[%s5673_s21 + $0x148] sm:$0xff]  }
  0x4d   : > { %5229 = vmatprep.mubr.bf16.mxu0 %v5517_v28  ;;  %5357 = vmatprep.mubr.bf16.mxu1 %v5518_v29  ;;  %v5580_v27 = vld [vmem:[%s5673_s21 + $0x348] sm:$0xff]   ;;  %v5581_v28 = vld [vmem:[%s5673_s21 + $0x150] sm:$0xff]  }
  0x4e   : > { %v5582_v29 = vld [vmem:[%s5673_s21 + $0x350] sm:$0xff]  }
  0x54   : > { %5230 = vmatmul.mubr.bf16.gmra.mxu0 %v5519_v30  ;;  %5358 = vmatmul.mubr.bf16.gmra.mxu1 %v5520_v31  ;;  %v5583_v30 = vld [vmem:[%s5673_s21 + $0x158] sm:$0xff]  }
  0x55   : > { %5233 = vmatprep.mubr.bf16.mxu0 %v5521_v32  ;;  %5361 = vmatprep.mubr.bf16.mxu1 %v5522_v33  ;;  %v5584_v31 = vld [vmem:[%s5673_s21 + $0x358] sm:$0xff]   ;;  %v5585_v32 = vld [vmem:[%s5673_s21 + $0x160] sm:$0xff]  }
  0x56   : > { %v5586_v33 = vld [vmem:[%s5673_s21 + $0x360] sm:$0xff]  }
  0x5c   : > { %5234 = vmatmul.mubr.bf16.gmra.mxu0 %v5523_v34  ;;  %5362 = vmatmul.mubr.bf16.gmra.mxu1 %v5524_v35  ;;  %v5587_v34 = vld [vmem:[%s5673_s21 + $0x168] sm:$0xff]  }
  0x5d   : > { %5237 = vmatprep.mubr.bf16.mxu0 %v5525_v36  ;;  %5365 = vmatprep.mubr.bf16.mxu1 %v5526_v37  ;;  %v5588_v35 = vld [vmem:[%s5673_s21 + $0x368] sm:$0xff]   ;;  %v5589_v36 = vld [vmem:[%s5673_s21 + $0x170] sm:$0xff]  }
  0x5e   : > { %v5590_v37 = vld [vmem:[%s5673_s21 + $0x370] sm:$0xff]  }
  0x64   : > { %5238 = vmatmul.mubr.bf16.gmra.mxu0 %v5527_v38  ;;  %5366 = vmatmul.mubr.bf16.gmra.mxu1 %v5528_v39  ;;  %v5591_v38 = vld [vmem:[%s5673_s21 + $0x178] sm:$0xff]  }
  0x65   : > { %5241 = vmatprep.mubr.bf16.mxu0 %v5529_v40  ;;  %5369 = vmatprep.mubr.bf16.mxu1 %v5530_v41  ;;  %v5592_v39 = vld [vmem:[%s5673_s21 + $0x378] sm:$0xff]   ;;  %v5593_v40 = vld [vmem:[%s5673_s21 + $0x180] sm:$0xff]  }
  0x66   : > { %v5594_v41 = vld [vmem:[%s5673_s21 + $0x380] sm:$0xff]  }
  0x6c   : > { %5242 = vmatmul.mubr.bf16.gmra.mxu0 %v5531_v42  ;;  %5370 = vmatmul.mubr.bf16.gmra.mxu1 %v5532_v43  ;;  %v5595_v42 = vld [vmem:[%s5673_s21 + $0x188] sm:$0xff]  }
  0x6d   : > { %5245 = vmatprep.mubr.bf16.mxu0 %v5533_v44  ;;  %5373 = vmatprep.mubr.bf16.mxu1 %v5534_v45  ;;  %v5596_v43 = vld [vmem:[%s5673_s21 + $0x388] sm:$0xff]   ;;  %v5597_v44 = vld [vmem:[%s5673_s21 + $0x190] sm:$0xff]  }
  0x6e   : > { %v5598_v45 = vld [vmem:[%s5673_s21 + $0x390] sm:$0xff]  }
  0x74   : > { %5246 = vmatmul.mubr.bf16.gmra.mxu0 %v5535_v46  ;;  %5374 = vmatmul.mubr.bf16.gmra.mxu1 %v5536_v47 }
  0x75   : > { %5249 = vmatprep.mubr.bf16.mxu0 %v5537_v48  ;;  %5377 = vmatprep.mubr.bf16.mxu1 %v5538_v49 }
  0x7c   : > { %5250 = vmatmul.mubr.bf16.gmra.mxu0 %v5539_v50  ;;  %5378 = vmatmul.mubr.bf16.gmra.mxu1 %v5540_v51 }
  0x7d   : > { %5253 = vmatprep.mubr.bf16.mxu0 %v5541_v52  ;;  %5381 = vmatprep.mubr.bf16.mxu1 %v5542_v53 }
  0x84   : > { %5254 = vmatmul.mubr.bf16.gmra.mxu0 %v5543_v54  ;;  %5382 = vmatmul.mubr.bf16.gmra.mxu1 %v5544_v55 }
  0x85   : > { %5257 = vmatprep.mubr.bf16.mxu0 %v5545_v56  ;;  %5385 = vmatprep.mubr.bf16.mxu1 %v5546_v57 }
  0x8c   : > { %5258 = vmatmul.mubr.bf16.gmra.mxu0 %v5547_v58  ;;  %5386 = vmatmul.mubr.bf16.gmra.mxu1 %v5548_v59 }
  0x8d   : > { %5261 = vmatprep.mubr.bf16.mxu0 %v5549_v60  ;;  %5389 = vmatprep.mubr.bf16.mxu1 %v5550_v61  ;;  %v5599_v60 = vld [vmem:[%s5673_s21 + $0x198] sm:$0xff]  }
  0x8e   : > { %v5600_v61 = vld [vmem:[%s5673_s21 + $0x398] sm:$0xff]  }
  0x94   : > { %5262 = vmatmul.mubr.bf16.gmra.mxu0 %v5551_v62  ;;  %5390 = vmatmul.mubr.bf16.gmra.mxu1 %v5552_v63 }
  0x95   : > { %5265 = vmatprep.mubr.bf16.mxu0 %v5553_v0  ;;  %5393 = vmatprep.mubr.bf16.mxu1 %v5554_v1  ;;  %v5601_v0 = vld [vmem:[%s5673_s21 + $0x1a0] sm:$0xff]  }
  0x96   : > { %v5602_v1 = vld [vmem:[%s5673_s21 + $0x3a0] sm:$0xff]  }
  0x9c   : > { %5266 = vmatmul.mubr.bf16.gmra.mxu0 %v5555_v2  ;;  %5394 = vmatmul.mubr.bf16.gmra.mxu1 %v5556_v3 }
  0x9d   : > { %5269 = vmatprep.mubr.bf16.mxu0 %v5557_v4  ;;  %5397 = vmatprep.mubr.bf16.mxu1 %v5558_v5 }
  0xa4   : > { %5270 = vmatmul.mubr.bf16.gmra.mxu0 %v5559_v6  ;;  %5398 = vmatmul.mubr.bf16.gmra.mxu1 %v5560_v7 }
  0xa5   : > { %5273 = vmatprep.mubr.bf16.mxu0 %v5561_v8  ;;  %5401 = vmatprep.mubr.bf16.mxu1 %v5562_v9 }
  0xac   : > { %5274 = vmatmul.mubr.bf16.gmra.mxu0 %v5563_v10  ;;  %5402 = vmatmul.mubr.bf16.gmra.mxu1 %v5564_v11 }
  0xad   : > { %5277 = vmatprep.mubr.bf16.mxu0 %v5565_v12  ;;  %5405 = vmatprep.mubr.bf16.mxu1 %v5566_v13 }
  0xb4   : > { %5278 = vmatmul.mubr.bf16.gmra.mxu0 %v5567_v14  ;;  %5406 = vmatmul.mubr.bf16.gmra.mxu1 %v5568_v15 }
  0xb5   : > { %5281 = vmatprep.mubr.bf16.mxu0 %v5569_v16  ;;  %5409 = vmatprep.mubr.bf16.mxu1 %v5570_v17 }
  0xbc   : > { %5282 = vmatmul.mubr.bf16.gmra.mxu0 %v5571_v18  ;;  %5410 = vmatmul.mubr.bf16.gmra.mxu1 %v5572_v19 }
  0xbd   : > { %5285 = vmatprep.mubr.bf16.mxu0 %v5573_v20  ;;  %5413 = vmatprep.mubr.bf16.mxu1 %v5574_v21 }
  0xc4   : > { %5286 = vmatmul.mubr.bf16.gmra.mxu0 %v5575_v22  ;;  %5414 = vmatmul.mubr.bf16.gmra.mxu1 %v5576_v23 }
  0xc5   : > { %5289 = vmatprep.mubr.bf16.mxu0 %v5577_v24  ;;  %5417 = vmatprep.mubr.bf16.mxu1 %v5578_v25 }
  0xcc   : > { %5290 = vmatmul.mubr.bf16.gmra.mxu0 %v5579_v26  ;;  %5418 = vmatmul.mubr.bf16.gmra.mxu1 %v5580_v27 }
  0xcd   : > { %5293 = vmatprep.mubr.bf16.mxu0 %v5581_v28  ;;  %5421 = vmatprep.mubr.bf16.mxu1 %v5582_v29 }
  0xd4   : > { %5294 = vmatmul.mubr.bf16.gmra.mxu0 %v5583_v30  ;;  %5422 = vmatmul.mubr.bf16.gmra.mxu1 %v5584_v31  ;;  %v5603_v31 = vld [vmem:[%s5673_s21 + $0x1a8] sm:$0xff]  }
  0xd5   : > { %5297 = vmatprep.mubr.bf16.mxu0 %v5585_v32  ;;  %5425 = vmatprep.mubr.bf16.mxu1 %v5586_v33  ;;  %v5604_v32 = vld [vmem:[%s5673_s21 + $0x3a8] sm:$0xff]  }
  0xdc   : > { %5298 = vmatmul.mubr.bf16.gmra.mxu0 %v5587_v34  ;;  %5426 = vmatmul.mubr.bf16.gmra.mxu1 %v5588_v35 }
  0xdd   : > { %5301 = vmatprep.mubr.bf16.mxu0 %v5589_v36  ;;  %5429 = vmatprep.mubr.bf16.mxu1 %v5590_v37  ;;  %v5605_v36 = vld [vmem:[%s5673_s21 + $0x1b0] sm:$0xff]  }
  0xde   : > { %v5606_v37 = vld [vmem:[%s5673_s21 + $0x3b0] sm:$0xff]  }
  0xe4   : > { %5302 = vmatmul.mubr.bf16.gmra.mxu0 %v5591_v38  ;;  %5430 = vmatmul.mubr.bf16.gmra.mxu1 %v5592_v39 }
  0xe5   : > { %5305 = vmatprep.mubr.bf16.mxu0 %v5593_v40  ;;  %5433 = vmatprep.mubr.bf16.mxu1 %v5594_v41 }
  0xec   : > { %v5211_v46 = vpop.f32.mrf.mxu0  ;;  %5306 = vmatmul.mubr.bf16.gmra.mxu0 %v5595_v42  ;;  %v5339_v47 = vpop.f32.mrf.mxu1  ;;  %5434 = vmatmul.mubr.bf16.gmra.mxu1 %v5596_v43 }
  0xed   : > { %vm2295_vm0 = vcmp.ge.f32.partialorder %v5211_v46, 0.0  ;;  %v2551_v48 = vmul.f32 0.2, %v5211_v46  ;;  %vm2423_vm1 = vcmp.ge.f32.partialorder %v5339_v47, 0.0  ;;  %v2679_v49 = vmul.f32 0.2, %v5339_v47  ;;  %5309 = vmatprep.mubr.bf16.mxu0 %v5597_v44  ;;  %5437 = vmatprep.mubr.bf16.mxu1 %v5598_v45 }
  0xee   : > { %v1270_v50 = vpop.f32.mrf.mxu0  ;;  %v1782_v51 = vpop.f32.mrf.mxu1 }
  0xef   : > { %v2807_v52 = vsel %vm2295_vm0, %v5211_v46, %v2551_v48  ;;  %v2935_v53 = vsel %vm2423_vm1, %v5339_v47, %v2679_v49  ;;  %vm2293_vm3 = vcmp.ge.f32.partialorder %v1270_v50, 0.0  ;;  %v2549_v54 = vmul.f32 0.2, %v1270_v50 }
  0xf0   : > { %v4803_v55 = vpack.c.bf16 %v2807_v52, %v2807_v52  ;;  %v4931_v56 = vpack.c.bf16 %v2935_v53, %v2935_v53  ;;  %vm2421_vm4 = vcmp.ge.f32.partialorder %v1782_v51, 0.0  ;;  %v2677_v57 = vmul.f32 0.2, %v1782_v51  ;;  %v5212_v58 = vpop.f32.mrf.mxu0  ;;  %v5340_v59 = vpop.f32.mrf.mxu1 }
  0xf1   : > { %v2805_v62 = vsel %vm2293_vm3, %v1270_v50, %v2549_v54  ;;  %vm2296_vm5 = vcmp.ge.f32.partialorder %v5212_v58, 0.0  ;;  %v2552_v63 = vmul.f32 0.2, %v5212_v58  ;;  %vm2424_vm6 = vcmp.ge.f32.partialorder %v5340_v59, 0.0 }
  0xf2   : > { %4088 = vst.msk [vmem:[%s5797_s6 + $0x8] sm:$0xf] %vm4085_vm2, %v4803_v55  ;;  %4216 = vst.msk [vmem:[%s5797_s6 + $0x208] sm:$0xf] %vm4085_vm2, %v4931_v56  ;;  %v4801_v2 = vpack.c.bf16 %v2805_v62, %v2805_v62  ;;  %v2933_v3 = vsel %vm2421_vm4, %v1782_v51, %v2677_v57  ;;  %v2680_v4 = vmul.f32 0.2, %v5340_v59  ;;  %v1273_v5 = vpop.f32.mrf.mxu0  ;;  %v1785_v6 = vpop.f32.mrf.mxu1 }
  0xf3   : > { %v4929_v7 = vpack.c.bf16 %v2933_v3, %v2933_v3  ;;  %v2808_v8 = vsel %vm2296_vm5, %v5212_v58, %v2552_v63  ;;  %vm2294_vm7 = vcmp.ge.f32.partialorder %v1273_v5, 0.0  ;;  %v2550_v9 = vmul.f32 0.2, %v1273_v5  ;;  %v5607_v3 = vld [vmem:[%s5673_s21 + $0x1b8] sm:$0xff]  }
  0xf4   : > { %4086 = vst.msk [vmem:[%s5797_s6] sm:$0xf] %vm4085_vm2, %v4801_v2  ;;  %v4804_v10 = vpack.c.bf16 %v2808_v8, %v2808_v8  ;;  %v2936_v11 = vsel %vm2424_vm6, %v5340_v59, %v2680_v4  ;;  %vm2422_vm8 = vcmp.ge.f32.partialorder %v1785_v6, 0.0  ;;  %v2678_v12 = vmul.f32 0.2, %v1785_v6  ;;  %v5215_v13 = vpop.f32.mrf.mxu0  ;;  %5310 = vmatmul.mubr.bf16.gmra.mxu0 %v5599_v60  ;;  %v5343_v14 = vpop.f32.mrf.mxu1  ;;  %5438 = vmatmul.mubr.bf16.gmra.mxu1 %v5600_v61  ;;  %v5608_v4 = vld [vmem:[%s5673_s21 + $0x3b8] sm:$0xff]  }
  0xf5   : > { %4214 = vst.msk [vmem:[%s5797_s6 + $0x200] sm:$0xf] %vm4085_vm2, %v4929_v7  ;;  %v4932_v15 = vpack.c.bf16 %v2936_v11, %v2936_v11  ;;  %v2806_v16 = vsel %vm2294_vm7, %v1273_v5, %v2550_v9  ;;  %vm2299_vm9 = vcmp.ge.f32.partialorder %v5215_v13, 0.0  ;;  %v2555_v17 = vmul.f32 0.2, %v5215_v13  ;;  %5313 = vmatprep.mubr.bf16.mxu0 %v5601_v0  ;;  %5441 = vmatprep.mubr.bf16.mxu1 %v5602_v1  ;;  %v5609_v8 = vld [vmem:[%s5673_s21 + $0x1c0] sm:$0xff]  }
  0xf6   : > { %4089 = vst.msk [vmem:[%s5797_s6 + $0xc] sm:$0xf] %vm4085_vm2, %v4804_v10  ;;  %v4802_v18 = vpack.c.bf16 %v2806_v16, %v2806_v16  ;;  %v2934_v19 = vsel %vm2422_vm8, %v1785_v6, %v2678_v12  ;;  %vm2427_vm10 = vcmp.ge.f32.partialorder %v5343_v14, 0.0  ;;  %v2683_v20 = vmul.f32 0.2, %v5343_v14  ;;  %v1286_v21 = vpop.f32.mrf.mxu0  ;;  %v1798_v22 = vpop.f32.mrf.mxu1  ;;  %v5610_v9 = vld [vmem:[%s5673_s21 + $0x3c0] sm:$0xff]  }
  0xf7   : > { %4217 = vst.msk [vmem:[%s5797_s6 + $0x20c] sm:$0xf] %vm4085_vm2, %v4932_v15  ;;  %v4930_v23 = vpack.c.bf16 %v2934_v19, %v2934_v19  ;;  %v2811_v24 = vsel %vm2299_vm9, %v5215_v13, %v2555_v17  ;;  %vm2297_vm11 = vcmp.ge.f32.partialorder %v1286_v21, 0.0  ;;  %v2553_v25 = vmul.f32 0.2, %v1286_v21 }
  0xf8   : > { %4087 = vst.msk [vmem:[%s5797_s6 + $0x4] sm:$0xf] %vm4085_vm2, %v4802_v18  ;;  %v4807_v26 = vpack.c.bf16 %v2811_v24, %v2811_v24  ;;  %v2939_v27 = vsel %vm2427_vm10, %v5343_v14, %v2683_v20  ;;  %vm2425_vm12 = vcmp.ge.f32.partialorder %v1798_v22, 0.0  ;;  %v2681_v28 = vmul.f32 0.2, %v1798_v22  ;;  %v5216_v29 = vpop.f32.mrf.mxu0  ;;  %v5344_v30 = vpop.f32.mrf.mxu1 }
  0xf9   : > { %4215 = vst.msk [vmem:[%s5797_s6 + $0x204] sm:$0xf] %vm4085_vm2, %v4930_v23  ;;  %v4935_v33 = vpack.c.bf16 %v2939_v27, %v2939_v27  ;;  %v2809_v34 = vsel %vm2297_vm11, %v1286_v21, %v2553_v25  ;;  %vm2300_vm13 = vcmp.ge.f32.partialorder %v5216_v29, 0.0  ;;  %v2556_v35 = vmul.f32 0.2, %v5216_v29 }
  0xfa   : > { %4092 = vst.msk [vmem:[%s5797_s6 + $0x18] sm:$0xf] %vm4085_vm2, %v4807_v26  ;;  %v4805_v38 = vpack.c.bf16 %v2809_v34, %v2809_v34  ;;  %v2937_v39 = vsel %vm2425_vm12, %v1798_v22, %v2681_v28  ;;  %vm2428_vm14 = vcmp.ge.f32.partialorder %v5344_v30, 0.0  ;;  %v2684_v40 = vmul.f32 0.2, %v5344_v30  ;;  %v1289_v41 = vpop.f32.mrf.mxu0  ;;  %v1801_v42 = vpop.f32.mrf.mxu1 }
  0xfb   : > { %4220 = vst.msk [vmem:[%s5797_s6 + $0x218] sm:$0xf] %vm4085_vm2, %v4935_v33  ;;  %v4933_v43 = vpack.c.bf16 %v2937_v39, %v2937_v39  ;;  %v2812_v44 = vsel %vm2300_vm13, %v5216_v29, %v2556_v35  ;;  %vm2298_vm15 = vcmp.ge.f32.partialorder %v1289_v41, 0.0  ;;  %v2554_v45 = vmul.f32 0.2, %v1289_v41  ;;  %v5611_v39 = vld [vmem:[%s5673_s21 + $0x1c8] sm:$0xff]  }
  0xfc   : > { %4090 = vst.msk [vmem:[%s5797_s6 + $0x10] sm:$0xf] %vm4085_vm2, %v4805_v38  ;;  %v4808_v46 = vpack.c.bf16 %v2812_v44, %v2812_v44  ;;  %v2940_v47 = vsel %vm2428_vm14, %v5344_v30, %v2684_v40  ;;  %vm2426_vm0 = vcmp.ge.f32.partialorder %v1801_v42, 0.0  ;;  %v2682_v48 = vmul.f32 0.2, %v1801_v42  ;;  %v5219_v49 = vpop.f32.mrf.mxu0  ;;  %5314 = vmatmul.mubr.bf16.gmra.mxu0 %v5603_v31  ;;  %v5347_v50 = vpop.f32.mrf.mxu1  ;;  %5442 = vmatmul.mubr.bf16.gmra.mxu1 %v5604_v32  ;;  %v5612_v40 = vld [vmem:[%s5673_s21 + $0x3c8] sm:$0xff]  }
  0xfd   : > { %4218 = vst.msk [vmem:[%s5797_s6 + $0x210] sm:$0xf] %vm4085_vm2, %v4933_v43  ;;  %v4936_v51 = vpack.c.bf16 %v2940_v47, %v2940_v47  ;;  %v2810_v52 = vsel %vm2298_vm15, %v1289_v41, %v2554_v45  ;;  %vm2303_vm1 = vcmp.ge.f32.partialorder %v5219_v49, 0.0  ;;  %v2559_v53 = vmul.f32 0.2, %v5219_v49  ;;  %5317 = vmatprep.mubr.bf16.mxu0 %v5605_v36  ;;  %5445 = vmatprep.mubr.bf16.mxu1 %v5606_v37  ;;  %v5613_v44 = vld [vmem:[%s5673_s21 + $0x1d0] sm:$0xff]  }
  0xfe   : > { %4093 = vst.msk [vmem:[%s5797_s6 + $0x1c] sm:$0xf] %vm4085_vm2, %v4808_v46  ;;  %v4806_v54 = vpack.c.bf16 %v2810_v52, %v2810_v52  ;;  %v2938_v55 = vsel %vm2426_vm0, %v1801_v42, %v2682_v48  ;;  %vm2431_vm3 = vcmp.ge.f32.partialorder %v5347_v50, 0.0  ;;  %v2687_v56 = vmul.f32 0.2, %v5347_v50  ;;  %v1302_v57 = vpop.f32.mrf.mxu0  ;;  %v1814_v58 = vpop.f32.mrf.mxu1  ;;  %v5614_v45 = vld [vmem:[%s5673_s21 + $0x3d0] sm:$0xff]  }
  0xff   : > { %4221 = vst.msk [vmem:[%s5797_s6 + $0x21c] sm:$0xf] %vm4085_vm2, %v4936_v51  ;;  %v4934_v59 = vpack.c.bf16 %v2938_v55, %v2938_v55  ;;  %v2815_v60 = vsel %vm2303_vm1, %v5219_v49, %v2559_v53  ;;  %vm2301_vm4 = vcmp.ge.f32.partialorder %v1302_v57, 0.0  ;;  %v2557_v61 = vmul.f32 0.2, %v1302_v57 }
 0x100   : > { %4091 = vst.msk [vmem:[%s5797_s6 + $0x14] sm:$0xf] %vm4085_vm2, %v4806_v54  ;;  %v4811_v62 = vpack.c.bf16 %v2815_v60, %v2815_v60  ;;  %v2943_v63 = vsel %vm2431_vm3, %v5347_v50, %v2687_v56  ;;  %vm2429_vm5 = vcmp.ge.f32.partialorder %v1814_v58, 0.0  ;;  %v2685_v0 = vmul.f32 0.2, %v1814_v58  ;;  %v5220_v1 = vpop.f32.mrf.mxu0  ;;  %v5348_v2 = vpop.f32.mrf.mxu1 }
 0x101   : > { %4219 = vst.msk [vmem:[%s5797_s6 + $0x214] sm:$0xf] %vm4085_vm2, %v4934_v59  ;;  %v4939_v5 = vpack.c.bf16 %v2943_v63, %v2943_v63  ;;  %v2813_v6 = vsel %vm2301_vm4, %v1302_v57, %v2557_v61  ;;  %vm2304_vm6 = vcmp.ge.f32.partialorder %v5220_v1, 0.0  ;;  %v2560_v7 = vmul.f32 0.2, %v5220_v1 }
 0x102   : > { %4096 = vst.msk [vmem:[%s5797_s6 + $0x28] sm:$0xf] %vm4085_vm2, %v4811_v62  ;;  %v4809_v10 = vpack.c.bf16 %v2813_v6, %v2813_v6  ;;  %v2941_v11 = vsel %vm2429_vm5, %v1814_v58, %v2685_v0  ;;  %vm2432_vm7 = vcmp.ge.f32.partialorder %v5348_v2, 0.0  ;;  %v2688_v12 = vmul.f32 0.2, %v5348_v2  ;;  %v1305_v13 = vpop.f32.mrf.mxu0  ;;  %v1817_v14 = vpop.f32.mrf.mxu1 }
 0x103   : > { %4224 = vst.msk [vmem:[%s5797_s6 + $0x228] sm:$0xf] %vm4085_vm2, %v4939_v5  ;;  %v4937_v15 = vpack.c.bf16 %v2941_v11, %v2941_v11  ;;  %v2816_v16 = vsel %vm2304_vm6, %v5220_v1, %v2560_v7  ;;  %vm2302_vm8 = vcmp.ge.f32.partialorder %v1305_v13, 0.0  ;;  %v2558_v17 = vmul.f32 0.2, %v1305_v13  ;;  %v5615_v11 = vld [vmem:[%s5673_s21 + $0x1d8] sm:$0xff]  }
 0x104   : > { %4094 = vst.msk [vmem:[%s5797_s6 + $0x20] sm:$0xf] %vm4085_vm2, %v4809_v10  ;;  %v4812_v18 = vpack.c.bf16 %v2816_v16, %v2816_v16  ;;  %v2944_v19 = vsel %vm2432_vm7, %v5348_v2, %v2688_v12  ;;  %vm2430_vm9 = vcmp.ge.f32.partialorder %v1817_v14, 0.0  ;;  %v2686_v20 = vmul.f32 0.2, %v1817_v14  ;;  %v5223_v21 = vpop.f32.mrf.mxu0  ;;  %5318 = vmatmul.mubr.bf16.gmra.mxu0 %v5607_v3  ;;  %v5351_v22 = vpop.f32.mrf.mxu1  ;;  %5446 = vmatmul.mubr.bf16.gmra.mxu1 %v5608_v4  ;;  %v5616_v12 = vld [vmem:[%s5673_s21 + $0x3d8] sm:$0xff]  }
 0x105   : > { %4222 = vst.msk [vmem:[%s5797_s6 + $0x220] sm:$0xf] %vm4085_vm2, %v4937_v15  ;;  %v4940_v23 = vpack.c.bf16 %v2944_v19, %v2944_v19  ;;  %v2814_v24 = vsel %vm2302_vm8, %v1305_v13, %v2558_v17  ;;  %vm2307_vm10 = vcmp.ge.f32.partialorder %v5223_v21, 0.0  ;;  %v2563_v25 = vmul.f32 0.2, %v5223_v21  ;;  %5321 = vmatprep.mubr.bf16.mxu0 %v5609_v8  ;;  %5449 = vmatprep.mubr.bf16.mxu1 %v5610_v9  ;;  %v5617_v16 = vld [vmem:[%s5673_s21 + $0x1e0] sm:$0xff]  }
 0x106   : > { %4097 = vst.msk [vmem:[%s5797_s6 + $0x2c] sm:$0xf] %vm4085_vm2, %v4812_v18  ;;  %v4810_v26 = vpack.c.bf16 %v2814_v24, %v2814_v24  ;;  %v2942_v27 = vsel %vm2430_vm9, %v1817_v14, %v2686_v20  ;;  %vm2435_vm11 = vcmp.ge.f32.partialorder %v5351_v22, 0.0  ;;  %v2691_v28 = vmul.f32 0.2, %v5351_v22  ;;  %v1318_v29 = vpop.f32.mrf.mxu0  ;;  %v1830_v30 = vpop.f32.mrf.mxu1  ;;  %v5618_v17 = vld [vmem:[%s5673_s21 + $0x3e0] sm:$0xff]  }
 0x107   : > { %4225 = vst.msk [vmem:[%s5797_s6 + $0x22c] sm:$0xf] %vm4085_vm2, %v4940_v23  ;;  %v4938_v31 = vpack.c.bf16 %v2942_v27, %v2942_v27  ;;  %v2819_v32 = vsel %vm2307_vm10, %v5223_v21, %v2563_v25  ;;  %vm2305_vm12 = vcmp.ge.f32.partialorder %v1318_v29, 0.0  ;;  %v2561_v33 = vmul.f32 0.2, %v1318_v29 }
 0x108   : > { %4095 = vst.msk [vmem:[%s5797_s6 + $0x24] sm:$0xf] %vm4085_vm2, %v4810_v26  ;;  %v4815_v34 = vpack.c.bf16 %v2819_v32, %v2819_v32  ;;  %v2947_v35 = vsel %vm2435_vm11, %v5351_v22, %v2691_v28  ;;  %vm2433_vm13 = vcmp.ge.f32.partialorder %v1830_v30, 0.0  ;;  %v2689_v36 = vmul.f32 0.2, %v1830_v30  ;;  %v5224_v37 = vpop.f32.mrf.mxu0  ;;  %v5352_v38 = vpop.f32.mrf.mxu1 }
 0x109   : > { %4223 = vst.msk [vmem:[%s5797_s6 + $0x224] sm:$0xf] %vm4085_vm2, %v4938_v31  ;;  %v4943_v41 = vpack.c.bf16 %v2947_v35, %v2947_v35  ;;  %v2817_v42 = vsel %vm2305_vm12, %v1318_v29, %v2561_v33  ;;  %vm2308_vm14 = vcmp.ge.f32.partialorder %v5224_v37, 0.0  ;;  %v2564_v43 = vmul.f32 0.2, %v5224_v37 }
 0x10a   : > { %4100 = vst.msk [vmem:[%s5797_s6 + $0x38] sm:$0xf] %vm4085_vm2, %v4815_v34  ;;  %v4813_v46 = vpack.c.bf16 %v2817_v42, %v2817_v42  ;;  %v2945_v47 = vsel %vm2433_vm13, %v1830_v30, %v2689_v36  ;;  %vm2436_vm15 = vcmp.ge.f32.partialorder %v5352_v38, 0.0  ;;  %v2692_v48 = vmul.f32 0.2, %v5352_v38  ;;  %v1321_v49 = vpop.f32.mrf.mxu0  ;;  %v1833_v50 = vpop.f32.mrf.mxu1 }
 0x10b   : > { %4228 = vst.msk [vmem:[%s5797_s6 + $0x238] sm:$0xf] %vm4085_vm2, %v4943_v41  ;;  %v4941_v51 = vpack.c.bf16 %v2945_v47, %v2945_v47  ;;  %v2820_v52 = vsel %vm2308_vm14, %v5224_v37, %v2564_v43  ;;  %vm2306_vm0 = vcmp.ge.f32.partialorder %v1321_v49, 0.0  ;;  %v2562_v53 = vmul.f32 0.2, %v1321_v49  ;;  %v5619_v47 = vld [vmem:[%s5673_s21 + $0x1e8] sm:$0xff]  }
 0x10c   : > { %4098 = vst.msk [vmem:[%s5797_s6 + $0x30] sm:$0xf] %vm4085_vm2, %v4813_v46  ;;  %v4816_v54 = vpack.c.bf16 %v2820_v52, %v2820_v52  ;;  %v2948_v55 = vsel %vm2436_vm15, %v5352_v38, %v2692_v48  ;;  %vm2434_vm1 = vcmp.ge.f32.partialorder %v1833_v50, 0.0  ;;  %v2690_v56 = vmul.f32 0.2, %v1833_v50  ;;  %v5227_v57 = vpop.f32.mrf.mxu0  ;;  %5322 = vmatmul.mubr.bf16.gmra.mxu0 %v5611_v39  ;;  %v5355_v58 = vpop.f32.mrf.mxu1  ;;  %5450 = vmatmul.mubr.bf16.gmra.mxu1 %v5612_v40  ;;  %v5620_v48 = vld [vmem:[%s5673_s21 + $0x3e8] sm:$0xff]  }
 0x10d   : > { %4226 = vst.msk [vmem:[%s5797_s6 + $0x230] sm:$0xf] %vm4085_vm2, %v4941_v51  ;;  %v4944_v59 = vpack.c.bf16 %v2948_v55, %v2948_v55  ;;  %v2818_v60 = vsel %vm2306_vm0, %v1321_v49, %v2562_v53  ;;  %vm2311_vm3 = vcmp.ge.f32.partialorder %v5227_v57, 0.0  ;;  %v2567_v61 = vmul.f32 0.2, %v5227_v57  ;;  %5325 = vmatprep.mubr.bf16.mxu0 %v5613_v44  ;;  %5453 = vmatprep.mubr.bf16.mxu1 %v5614_v45  ;;  %v5621_v52 = vld [vmem:[%s5673_s21 + $0x1f0] sm:$0xff]  }
 0x10e   : > { %4101 = vst.msk [vmem:[%s5797_s6 + $0x3c] sm:$0xf] %vm4085_vm2, %v4816_v54  ;;  %v4814_v62 = vpack.c.bf16 %v2818_v60, %v2818_v60  ;;  %v2946_v63 = vsel %vm2434_vm1, %v1833_v50, %v2690_v56  ;;  %vm2439_vm4 = vcmp.ge.f32.partialorder %v5355_v58, 0.0  ;;  %v2695_v0 = vmul.f32 0.2, %v5355_v58  ;;  %v1334_v1 = vpop.f32.mrf.mxu0  ;;  %v1846_v2 = vpop.f32.mrf.mxu1  ;;  %v5622_v53 = vld [vmem:[%s5673_s21 + $0x3f0] sm:$0xff]  }
 0x10f   : > { %4229 = vst.msk [vmem:[%s5797_s6 + $0x23c] sm:$0xf] %vm4085_vm2, %v4944_v59  ;;  %v4942_v3 = vpack.c.bf16 %v2946_v63, %v2946_v63  ;;  %v2823_v4 = vsel %vm2311_vm3, %v5227_v57, %v2567_v61  ;;  %vm2309_vm5 = vcmp.ge.f32.partialorder %v1334_v1, 0.0  ;;  %v2565_v5 = vmul.f32 0.2, %v1334_v1 }
 0x110   : > { %4099 = vst.msk [vmem:[%s5797_s6 + $0x34] sm:$0xf] %vm4085_vm2, %v4814_v62  ;;  %v4819_v6 = vpack.c.bf16 %v2823_v4, %v2823_v4  ;;  %v2951_v7 = vsel %vm2439_vm4, %v5355_v58, %v2695_v0  ;;  %vm2437_vm6 = vcmp.ge.f32.partialorder %v1846_v2, 0.0  ;;  %v2693_v8 = vmul.f32 0.2, %v1846_v2  ;;  %v5228_v9 = vpop.f32.mrf.mxu0  ;;  %v5356_v10 = vpop.f32.mrf.mxu1 }
 0x111   : > { %4227 = vst.msk [vmem:[%s5797_s6 + $0x234] sm:$0xf] %vm4085_vm2, %v4942_v3  ;;  %v4947_v13 = vpack.c.bf16 %v2951_v7, %v2951_v7  ;;  %v2821_v14 = vsel %vm2309_vm5, %v1334_v1, %v2565_v5  ;;  %vm2312_vm7 = vcmp.ge.f32.partialorder %v5228_v9, 0.0  ;;  %v2568_v15 = vmul.f32 0.2, %v5228_v9 }
 0x112   : > { %4104 = vst.msk [vmem:[%s5797_s6 + $0x48] sm:$0xf] %vm4085_vm2, %v4819_v6  ;;  %v4817_v18 = vpack.c.bf16 %v2821_v14, %v2821_v14  ;;  %v2949_v19 = vsel %vm2437_vm6, %v1846_v2, %v2693_v8  ;;  %vm2440_vm8 = vcmp.ge.f32.partialorder %v5356_v10, 0.0  ;;  %v2696_v20 = vmul.f32 0.2, %v5356_v10  ;;  %v1337_v21 = vpop.f32.mrf.mxu0  ;;  %v1849_v22 = vpop.f32.mrf.mxu1 }
 0x113   : > { %4232 = vst.msk [vmem:[%s5797_s6 + $0x248] sm:$0xf] %vm4085_vm2, %v4947_v13  ;;  %v4945_v23 = vpack.c.bf16 %v2949_v19, %v2949_v19  ;;  %v2824_v24 = vsel %vm2312_vm7, %v5228_v9, %v2568_v15  ;;  %vm2310_vm9 = vcmp.ge.f32.partialorder %v1337_v21, 0.0  ;;  %v2566_v25 = vmul.f32 0.2, %v1337_v21  ;;  %v5623_v19 = vld [vmem:[%s5673_s21 + $0x1f8] sm:$0xff]  }
 0x114   : > { %4102 = vst.msk [vmem:[%s5797_s6 + $0x40] sm:$0xf] %vm4085_vm2, %v4817_v18  ;;  %v4820_v26 = vpack.c.bf16 %v2824_v24, %v2824_v24  ;;  %v2952_v27 = vsel %vm2440_vm8, %v5356_v10, %v2696_v20  ;;  %vm2438_vm10 = vcmp.ge.f32.partialorder %v1849_v22, 0.0  ;;  %v2694_v28 = vmul.f32 0.2, %v1849_v22  ;;  %v5231_v29 = vpop.f32.mrf.mxu0  ;;  %5326 = vmatmul.mubr.bf16.gmra.mxu0 %v5615_v11  ;;  %v5359_v30 = vpop.f32.mrf.mxu1  ;;  %5454 = vmatmul.mubr.bf16.gmra.mxu1 %v5616_v12  ;;  %v5624_v20 = vld [vmem:[%s5673_s21 + $0x3f8] sm:$0xff]  }
 0x115   : > { %4230 = vst.msk [vmem:[%s5797_s6 + $0x240] sm:$0xf] %vm4085_vm2, %v4945_v23  ;;  %v4948_v31 = vpack.c.bf16 %v2952_v27, %v2952_v27  ;;  %v2822_v32 = vsel %vm2310_vm9, %v1337_v21, %v2566_v25  ;;  %vm2315_vm11 = vcmp.ge.f32.partialorder %v5231_v29, 0.0  ;;  %v2571_v33 = vmul.f32 0.2, %v5231_v29  ;;  %5329 = vmatprep.mubr.bf16.mxu0 %v5617_v16  ;;  %5457 = vmatprep.mubr.bf16.mxu1 %v5618_v17 }
 0x116   : > { %4105 = vst.msk [vmem:[%s5797_s6 + $0x4c] sm:$0xf] %vm4085_vm2, %v4820_v26  ;;  %v4818_v34 = vpack.c.bf16 %v2822_v32, %v2822_v32  ;;  %v2950_v35 = vsel %vm2438_vm10, %v1849_v22, %v2694_v28  ;;  %vm2443_vm12 = vcmp.ge.f32.partialorder %v5359_v30, 0.0  ;;  %v2699_v36 = vmul.f32 0.2, %v5359_v30  ;;  %v1350_v37 = vpop.f32.mrf.mxu0  ;;  %v1862_v38 = vpop.f32.mrf.mxu1 }
 0x117   : > { %4233 = vst.msk [vmem:[%s5797_s6 + $0x24c] sm:$0xf] %vm4085_vm2, %v4948_v31  ;;  %v4946_v39 = vpack.c.bf16 %v2950_v35, %v2950_v35  ;;  %v2827_v40 = vsel %vm2315_vm11, %v5231_v29, %v2571_v33  ;;  %vm2313_vm13 = vcmp.ge.f32.partialorder %v1350_v37, 0.0  ;;  %v2569_v41 = vmul.f32 0.2, %v1350_v37 }
 0x118   : > { %4103 = vst.msk [vmem:[%s5797_s6 + $0x44] sm:$0xf] %vm4085_vm2, %v4818_v34  ;;  %v4823_v42 = vpack.c.bf16 %v2827_v40, %v2827_v40  ;;  %v2955_v43 = vsel %vm2443_vm12, %v5359_v30, %v2699_v36  ;;  %vm2441_vm14 = vcmp.ge.f32.partialorder %v1862_v38, 0.0  ;;  %v2697_v44 = vmul.f32 0.2, %v1862_v38  ;;  %v5232_v45 = vpop.f32.mrf.mxu0  ;;  %v5360_v46 = vpop.f32.mrf.mxu1 }
 0x119   : > { %4231 = vst.msk [vmem:[%s5797_s6 + $0x244] sm:$0xf] %vm4085_vm2, %v4946_v39  ;;  %v4951_v49 = vpack.c.bf16 %v2955_v43, %v2955_v43  ;;  %v2825_v50 = vsel %vm2313_vm13, %v1350_v37, %v2569_v41  ;;  %vm2316_vm15 = vcmp.ge.f32.partialorder %v5232_v45, 0.0  ;;  %v2572_v51 = vmul.f32 0.2, %v5232_v45 }
 0x11a   : > { %4108 = vst.msk [vmem:[%s5797_s6 + $0x58] sm:$0xf] %vm4085_vm2, %v4823_v42  ;;  %v4821_v54 = vpack.c.bf16 %v2825_v50, %v2825_v50  ;;  %v2953_v55 = vsel %vm2441_vm14, %v1862_v38, %v2697_v44  ;;  %vm2444_vm0 = vcmp.ge.f32.partialorder %v5360_v46, 0.0  ;;  %v2700_v56 = vmul.f32 0.2, %v5360_v46  ;;  %v1353_v57 = vpop.f32.mrf.mxu0  ;;  %v1865_v58 = vpop.f32.mrf.mxu1 }
 0x11b   : > { %4236 = vst.msk [vmem:[%s5797_s6 + $0x258] sm:$0xf] %vm4085_vm2, %v4951_v49  ;;  %v4949_v59 = vpack.c.bf16 %v2953_v55, %v2953_v55  ;;  %v2828_v60 = vsel %vm2316_vm15, %v5232_v45, %v2572_v51  ;;  %vm2314_vm1 = vcmp.ge.f32.partialorder %v1353_v57, 0.0  ;;  %v2570_v61 = vmul.f32 0.2, %v1353_v57 }
 0x11c   : > { %4106 = vst.msk [vmem:[%s5797_s6 + $0x50] sm:$0xf] %vm4085_vm2, %v4821_v54  ;;  %v4824_v62 = vpack.c.bf16 %v2828_v60, %v2828_v60  ;;  %v2956_v63 = vsel %vm2444_vm0, %v5360_v46, %v2700_v56  ;;  %vm2442_vm3 = vcmp.ge.f32.partialorder %v1865_v58, 0.0  ;;  %v2698_v0 = vmul.f32 0.2, %v1865_v58  ;;  %v5235_v1 = vpop.f32.mrf.mxu0  ;;  %5330 = vmatmul.mubr.bf16.gmra.mxu0 %v5619_v47  ;;  %v5363_v2 = vpop.f32.mrf.mxu1  ;;  %5458 = vmatmul.mubr.bf16.gmra.mxu1 %v5620_v48 }
 0x11d   : > { %4234 = vst.msk [vmem:[%s5797_s6 + $0x250] sm:$0xf] %vm4085_vm2, %v4949_v59  ;;  %v4952_v3 = vpack.c.bf16 %v2956_v63, %v2956_v63  ;;  %v2826_v4 = vsel %vm2314_vm1, %v1353_v57, %v2570_v61  ;;  %vm2319_vm4 = vcmp.ge.f32.partialorder %v5235_v1, 0.0  ;;  %v2575_v5 = vmul.f32 0.2, %v5235_v1  ;;  %5333 = vmatprep.mubr.bf16.mxu0 %v5621_v52  ;;  %5461 = vmatprep.mubr.bf16.mxu1 %v5622_v53 }
 0x11e   : > { %4109 = vst.msk [vmem:[%s5797_s6 + $0x5c] sm:$0xf] %vm4085_vm2, %v4824_v62  ;;  %v4822_v6 = vpack.c.bf16 %v2826_v4, %v2826_v4  ;;  %v2954_v7 = vsel %vm2442_vm3, %v1865_v58, %v2698_v0  ;;  %vm2447_vm5 = vcmp.ge.f32.partialorder %v5363_v2, 0.0  ;;  %v2703_v8 = vmul.f32 0.2, %v5363_v2  ;;  %v1366_v9 = vpop.f32.mrf.mxu0  ;;  %v1878_v10 = vpop.f32.mrf.mxu1 }
 0x11f   : > { %4237 = vst.msk [vmem:[%s5797_s6 + $0x25c] sm:$0xf] %vm4085_vm2, %v4952_v3  ;;  %v4950_v11 = vpack.c.bf16 %v2954_v7, %v2954_v7  ;;  %v2831_v12 = vsel %vm2319_vm4, %v5235_v1, %v2575_v5  ;;  %vm2317_vm6 = vcmp.ge.f32.partialorder %v1366_v9, 0.0  ;;  %v2573_v13 = vmul.f32 0.2, %v1366_v9 }
 0x120   : > { %4107 = vst.msk [vmem:[%s5797_s6 + $0x54] sm:$0xf] %vm4085_vm2, %v4822_v6  ;;  %v4827_v14 = vpack.c.bf16 %v2831_v12, %v2831_v12  ;;  %v2959_v15 = vsel %vm2447_vm5, %v5363_v2, %v2703_v8  ;;  %vm2445_vm7 = vcmp.ge.f32.partialorder %v1878_v10, 0.0  ;;  %v2701_v16 = vmul.f32 0.2, %v1878_v10  ;;  %v5236_v17 = vpop.f32.mrf.mxu0  ;;  %v5364_v18 = vpop.f32.mrf.mxu1 }
 0x121   : > { %4235 = vst.msk [vmem:[%s5797_s6 + $0x254] sm:$0xf] %vm4085_vm2, %v4950_v11  ;;  %v4955_v21 = vpack.c.bf16 %v2959_v15, %v2959_v15  ;;  %v2829_v22 = vsel %vm2317_vm6, %v1366_v9, %v2573_v13  ;;  %vm2320_vm8 = vcmp.ge.f32.partialorder %v5236_v17, 0.0  ;;  %v2576_v23 = vmul.f32 0.2, %v5236_v17 }
 0x122   : > { %4112 = vst.msk [vmem:[%s5797_s6 + $0x68] sm:$0xf] %vm4085_vm2, %v4827_v14  ;;  %v4825_v24 = vpack.c.bf16 %v2829_v22, %v2829_v22  ;;  %v2957_v25 = vsel %vm2445_vm7, %v1878_v10, %v2701_v16  ;;  %vm2448_vm9 = vcmp.ge.f32.partialorder %v5364_v18, 0.0  ;;  %v2704_v26 = vmul.f32 0.2, %v5364_v18  ;;  %v1369_v27 = vpop.f32.mrf.mxu0  ;;  %v1881_v28 = vpop.f32.mrf.mxu1 }
 0x123   : > { %4240 = vst.msk [vmem:[%s5797_s6 + $0x268] sm:$0xf] %vm4085_vm2, %v4955_v21  ;;  %v4953_v29 = vpack.c.bf16 %v2957_v25, %v2957_v25  ;;  %v2832_v30 = vsel %vm2320_vm8, %v5236_v17, %v2576_v23  ;;  %vm2318_vm10 = vcmp.ge.f32.partialorder %v1369_v27, 0.0  ;;  %v2574_v31 = vmul.f32 0.2, %v1369_v27 }
 0x124   : > { %4110 = vst.msk [vmem:[%s5797_s6 + $0x60] sm:$0xf] %vm4085_vm2, %v4825_v24  ;;  %v4828_v32 = vpack.c.bf16 %v2832_v30, %v2832_v30  ;;  %v2960_v33 = vsel %vm2448_vm9, %v5364_v18, %v2704_v26  ;;  %vm2446_vm11 = vcmp.ge.f32.partialorder %v1881_v28, 0.0  ;;  %v2702_v34 = vmul.f32 0.2, %v1881_v28  ;;  %v5239_v35 = vpop.f32.mrf.mxu0  ;;  %5334 = vmatmul.mubr.bf16.gmra.mxu0 %v5623_v19  ;;  %v5367_v36 = vpop.f32.mrf.mxu1  ;;  %5462 = vmatmul.mubr.bf16.gmra.mxu1 %v5624_v20 }
 0x125   : > { %4238 = vst.msk [vmem:[%s5797_s6 + $0x260] sm:$0xf] %vm4085_vm2, %v4953_v29  ;;  %v4956_v37 = vpack.c.bf16 %v2960_v33, %v2960_v33  ;;  %v2830_v38 = vsel %vm2318_vm10, %v1369_v27, %v2574_v31  ;;  %vm2323_vm12 = vcmp.ge.f32.partialorder %v5239_v35, 0.0  ;;  %v2579_v39 = vmul.f32 0.2, %v5239_v35 }
 0x126   : > { %4113 = vst.msk [vmem:[%s5797_s6 + $0x6c] sm:$0xf] %vm4085_vm2, %v4828_v32  ;;  %v4826_v40 = vpack.c.bf16 %v2830_v38, %v2830_v38  ;;  %v2958_v41 = vsel %vm2446_vm11, %v1881_v28, %v2702_v34  ;;  %vm2451_vm13 = vcmp.ge.f32.partialorder %v5367_v36, 0.0  ;;  %v2707_v42 = vmul.f32 0.2, %v5367_v36  ;;  %v1382_v43 = vpop.f32.mrf.mxu0  ;;  %v1894_v44 = vpop.f32.mrf.mxu1 }
 0x127   : > { %4241 = vst.msk [vmem:[%s5797_s6 + $0x26c] sm:$0xf] %vm4085_vm2, %v4956_v37  ;;  %v4954_v45 = vpack.c.bf16 %v2958_v41, %v2958_v41  ;;  %v2835_v46 = vsel %vm2323_vm12, %v5239_v35, %v2579_v39  ;;  %vm2321_vm14 = vcmp.ge.f32.partialorder %v1382_v43, 0.0  ;;  %v2577_v47 = vmul.f32 0.2, %v1382_v43 }
 0x128   : > { %4111 = vst.msk [vmem:[%s5797_s6 + $0x64] sm:$0xf] %vm4085_vm2, %v4826_v40  ;;  %v4831_v48 = vpack.c.bf16 %v2835_v46, %v2835_v46  ;;  %v2963_v49 = vsel %vm2451_vm13, %v5367_v36, %v2707_v42  ;;  %vm2449_vm15 = vcmp.ge.f32.partialorder %v1894_v44, 0.0  ;;  %v2705_v50 = vmul.f32 0.2, %v1894_v44  ;;  %v5240_v51 = vpop.f32.mrf.mxu0  ;;  %v5368_v52 = vpop.f32.mrf.mxu1 }
 0x129   : > { %4239 = vst.msk [vmem:[%s5797_s6 + $0x264] sm:$0xf] %vm4085_vm2, %v4954_v45  ;;  %v4959_v53 = vpack.c.bf16 %v2963_v49, %v2963_v49  ;;  %v2833_v54 = vsel %vm2321_vm14, %v1382_v43, %v2577_v47  ;;  %vm2324_vm0 = vcmp.ge.f32.partialorder %v5240_v51, 0.0  ;;  %v2580_v55 = vmul.f32 0.2, %v5240_v51 }
 0x12a   : > { %4116 = vst.msk [vmem:[%s5797_s6 + $0x78] sm:$0xf] %vm4085_vm2, %v4831_v48  ;;  %v4829_v56 = vpack.c.bf16 %v2833_v54, %v2833_v54  ;;  %v2961_v57 = vsel %vm2449_vm15, %v1894_v44, %v2705_v50  ;;  %vm2452_vm1 = vcmp.ge.f32.partialorder %v5368_v52, 0.0  ;;  %v2708_v58 = vmul.f32 0.2, %v5368_v52  ;;  %v1385_v59 = vpop.f32.mrf.mxu0  ;;  %v1897_v60 = vpop.f32.mrf.mxu1 }
 0x12b   : > { %4244 = vst.msk [vmem:[%s5797_s6 + $0x278] sm:$0xf] %vm4085_vm2, %v4959_v53  ;;  %v4957_v61 = vpack.c.bf16 %v2961_v57, %v2961_v57  ;;  %v2836_v62 = vsel %vm2324_vm0, %v5240_v51, %v2580_v55  ;;  %vm2322_vm3 = vcmp.ge.f32.partialorder %v1385_v59, 0.0  ;;  %v2578_v63 = vmul.f32 0.2, %v1385_v59 }
 0x12c   : > { %4114 = vst.msk [vmem:[%s5797_s6 + $0x70] sm:$0xf] %vm4085_vm2, %v4829_v56  ;;  %v4832_v0 = vpack.c.bf16 %v2836_v62, %v2836_v62  ;;  %v2964_v1 = vsel %vm2452_vm1, %v5368_v52, %v2708_v58  ;;  %vm2450_vm4 = vcmp.ge.f32.partialorder %v1897_v60, 0.0  ;;  %v2706_v2 = vmul.f32 0.2, %v1897_v60  ;;  %v5243_v3 = vpop.f32.mrf.mxu0  ;;  %v5371_v4 = vpop.f32.mrf.mxu1 }
 0x12d   : > { %4242 = vst.msk [vmem:[%s5797_s6 + $0x270] sm:$0xf] %vm4085_vm2, %v4957_v61  ;;  %v4960_v5 = vpack.c.bf16 %v2964_v1, %v2964_v1  ;;  %v2834_v6 = vsel %vm2322_vm3, %v1385_v59, %v2578_v63  ;;  %vm2327_vm5 = vcmp.ge.f32.partialorder %v5243_v3, 0.0  ;;  %v2583_v7 = vmul.f32 0.2, %v5243_v3 }
 0x12e   : > { %4117 = vst.msk [vmem:[%s5797_s6 + $0x7c] sm:$0xf] %vm4085_vm2, %v4832_v0  ;;  %v4830_v8 = vpack.c.bf16 %v2834_v6, %v2834_v6  ;;  %v2962_v9 = vsel %vm2450_vm4, %v1897_v60, %v2706_v2  ;;  %vm2455_vm6 = vcmp.ge.f32.partialorder %v5371_v4, 0.0  ;;  %v2711_v10 = vmul.f32 0.2, %v5371_v4  ;;  %v1398_v11 = vpop.f32.mrf.mxu0  ;;  %v1910_v12 = vpop.f32.mrf.mxu1 }
 0x12f   : > { %4245 = vst.msk [vmem:[%s5797_s6 + $0x27c] sm:$0xf] %vm4085_vm2, %v4960_v5  ;;  %v4958_v13 = vpack.c.bf16 %v2962_v9, %v2962_v9  ;;  %v2839_v14 = vsel %vm2327_vm5, %v5243_v3, %v2583_v7  ;;  %vm2325_vm7 = vcmp.ge.f32.partialorder %v1398_v11, 0.0  ;;  %v2581_v15 = vmul.f32 0.2, %v1398_v11 }
 0x130   : > { %4115 = vst.msk [vmem:[%s5797_s6 + $0x74] sm:$0xf] %vm4085_vm2, %v4830_v8  ;;  %v4835_v16 = vpack.c.bf16 %v2839_v14, %v2839_v14  ;;  %v2967_v17 = vsel %vm2455_vm6, %v5371_v4, %v2711_v10  ;;  %vm2453_vm8 = vcmp.ge.f32.partialorder %v1910_v12, 0.0  ;;  %v2709_v18 = vmul.f32 0.2, %v1910_v12  ;;  %v5244_v19 = vpop.f32.mrf.mxu0  ;;  %v5372_v20 = vpop.f32.mrf.mxu1 }
 0x131   : > { %4243 = vst.msk [vmem:[%s5797_s6 + $0x274] sm:$0xf] %vm4085_vm2, %v4958_v13  ;;  %v4963_v21 = vpack.c.bf16 %v2967_v17, %v2967_v17  ;;  %v2837_v22 = vsel %vm2325_vm7, %v1398_v11, %v2581_v15  ;;  %vm2328_vm9 = vcmp.ge.f32.partialorder %v5244_v19, 0.0  ;;  %v2584_v23 = vmul.f32 0.2, %v5244_v19 }
 0x132   : > { %4120 = vst.msk [vmem:[%s5797_s6 + $0x88] sm:$0xf] %vm4085_vm2, %v4835_v16  ;;  %v4833_v24 = vpack.c.bf16 %v2837_v22, %v2837_v22  ;;  %v2965_v25 = vsel %vm2453_vm8, %v1910_v12, %v2709_v18  ;;  %vm2456_vm10 = vcmp.ge.f32.partialorder %v5372_v20, 0.0  ;;  %v2712_v26 = vmul.f32 0.2, %v5372_v20  ;;  %v1401_v27 = vpop.f32.mrf.mxu0  ;;  %v1913_v28 = vpop.f32.mrf.mxu1 }
 0x133   : > { %4248 = vst.msk [vmem:[%s5797_s6 + $0x288] sm:$0xf] %vm4085_vm2, %v4963_v21  ;;  %v4961_v29 = vpack.c.bf16 %v2965_v25, %v2965_v25  ;;  %v2840_v30 = vsel %vm2328_vm9, %v5244_v19, %v2584_v23  ;;  %vm2326_vm11 = vcmp.ge.f32.partialorder %v1401_v27, 0.0  ;;  %v2582_v31 = vmul.f32 0.2, %v1401_v27 }
 0x134   : > { %4118 = vst.msk [vmem:[%s5797_s6 + $0x80] sm:$0xf] %vm4085_vm2, %v4833_v24  ;;  %v4836_v32 = vpack.c.bf16 %v2840_v30, %v2840_v30  ;;  %v2968_v33 = vsel %vm2456_vm10, %v5372_v20, %v2712_v26  ;;  %vm2454_vm12 = vcmp.ge.f32.partialorder %v1913_v28, 0.0  ;;  %v2710_v34 = vmul.f32 0.2, %v1913_v28  ;;  %v5247_v35 = vpop.f32.mrf.mxu0  ;;  %v5375_v36 = vpop.f32.mrf.mxu1 }
 0x135   : > { %4246 = vst.msk [vmem:[%s5797_s6 + $0x280] sm:$0xf] %vm4085_vm2, %v4961_v29  ;;  %v4964_v37 = vpack.c.bf16 %v2968_v33, %v2968_v33  ;;  %v2838_v38 = vsel %vm2326_vm11, %v1401_v27, %v2582_v31  ;;  %vm2331_vm13 = vcmp.ge.f32.partialorder %v5247_v35, 0.0  ;;  %v2587_v39 = vmul.f32 0.2, %v5247_v35 }
 0x136   : > { %4121 = vst.msk [vmem:[%s5797_s6 + $0x8c] sm:$0xf] %vm4085_vm2, %v4836_v32  ;;  %v4834_v40 = vpack.c.bf16 %v2838_v38, %v2838_v38  ;;  %v2966_v41 = vsel %vm2454_vm12, %v1913_v28, %v2710_v34  ;;  %vm2459_vm14 = vcmp.ge.f32.partialorder %v5375_v36, 0.0  ;;  %v2715_v42 = vmul.f32 0.2, %v5375_v36  ;;  %v1414_v43 = vpop.f32.mrf.mxu0  ;;  %v1926_v44 = vpop.f32.mrf.mxu1 }
 0x137   : > { %4249 = vst.msk [vmem:[%s5797_s6 + $0x28c] sm:$0xf] %vm4085_vm2, %v4964_v37  ;;  %v4962_v45 = vpack.c.bf16 %v2966_v41, %v2966_v41  ;;  %v2843_v46 = vsel %vm2331_vm13, %v5247_v35, %v2587_v39  ;;  %vm2329_vm15 = vcmp.ge.f32.partialorder %v1414_v43, 0.0  ;;  %v2585_v47 = vmul.f32 0.2, %v1414_v43 }
 0x138   : > { %4119 = vst.msk [vmem:[%s5797_s6 + $0x84] sm:$0xf] %vm4085_vm2, %v4834_v40  ;;  %v4839_v48 = vpack.c.bf16 %v2843_v46, %v2843_v46  ;;  %v2971_v49 = vsel %vm2459_vm14, %v5375_v36, %v2715_v42  ;;  %vm2457_vm0 = vcmp.ge.f32.partialorder %v1926_v44, 0.0  ;;  %v2713_v50 = vmul.f32 0.2, %v1926_v44  ;;  %v5248_v51 = vpop.f32.mrf.mxu0  ;;  %v5376_v52 = vpop.f32.mrf.mxu1 }
 0x139   : > { %4247 = vst.msk [vmem:[%s5797_s6 + $0x284] sm:$0xf] %vm4085_vm2, %v4962_v45  ;;  %v4967_v53 = vpack.c.bf16 %v2971_v49, %v2971_v49  ;;  %v2841_v54 = vsel %vm2329_vm15, %v1414_v43, %v2585_v47  ;;  %vm2332_vm1 = vcmp.ge.f32.partialorder %v5248_v51, 0.0  ;;  %v2588_v55 = vmul.f32 0.2, %v5248_v51 }
 0x13a   : > { %4124 = vst.msk [vmem:[%s5797_s6 + $0x98] sm:$0xf] %vm4085_vm2, %v4839_v48  ;;  %v4837_v56 = vpack.c.bf16 %v2841_v54, %v2841_v54  ;;  %v2969_v57 = vsel %vm2457_vm0, %v1926_v44, %v2713_v50  ;;  %vm2460_vm3 = vcmp.ge.f32.partialorder %v5376_v52, 0.0  ;;  %v2716_v58 = vmul.f32 0.2, %v5376_v52  ;;  %v1417_v59 = vpop.f32.mrf.mxu0  ;;  %v1929_v60 = vpop.f32.mrf.mxu1 }
 0x13b   : > { %4252 = vst.msk [vmem:[%s5797_s6 + $0x298] sm:$0xf] %vm4085_vm2, %v4967_v53  ;;  %v4965_v61 = vpack.c.bf16 %v2969_v57, %v2969_v57  ;;  %v2844_v62 = vsel %vm2332_vm1, %v5248_v51, %v2588_v55  ;;  %vm2330_vm4 = vcmp.ge.f32.partialorder %v1417_v59, 0.0  ;;  %v2586_v63 = vmul.f32 0.2, %v1417_v59 }
 0x13c   : > { %4122 = vst.msk [vmem:[%s5797_s6 + $0x90] sm:$0xf] %vm4085_vm2, %v4837_v56  ;;  %v4840_v0 = vpack.c.bf16 %v2844_v62, %v2844_v62  ;;  %v2972_v1 = vsel %vm2460_vm3, %v5376_v52, %v2716_v58  ;;  %vm2458_vm5 = vcmp.ge.f32.partialorder %v1929_v60, 0.0  ;;  %v2714_v2 = vmul.f32 0.2, %v1929_v60  ;;  %v5251_v3 = vpop.f32.mrf.mxu0  ;;  %v5379_v4 = vpop.f32.mrf.mxu1 }
 0x13d   : > { %4250 = vst.msk [vmem:[%s5797_s6 + $0x290] sm:$0xf] %vm4085_vm2, %v4965_v61  ;;  %v4968_v5 = vpack.c.bf16 %v2972_v1, %v2972_v1  ;;  %v2842_v6 = vsel %vm2330_vm4, %v1417_v59, %v2586_v63  ;;  %vm2335_vm6 = vcmp.ge.f32.partialorder %v5251_v3, 0.0  ;;  %v2591_v7 = vmul.f32 0.2, %v5251_v3 }
 0x13e   : > { %4125 = vst.msk [vmem:[%s5797_s6 + $0x9c] sm:$0xf] %vm4085_vm2, %v4840_v0  ;;  %v4838_v8 = vpack.c.bf16 %v2842_v6, %v2842_v6  ;;  %v2970_v9 = vsel %vm2458_vm5, %v1929_v60, %v2714_v2  ;;  %vm2463_vm7 = vcmp.ge.f32.partialorder %v5379_v4, 0.0  ;;  %v2719_v10 = vmul.f32 0.2, %v5379_v4  ;;  %v1430_v11 = vpop.f32.mrf.mxu0  ;;  %v1942_v12 = vpop.f32.mrf.mxu1 }
 0x13f   : > { %4253 = vst.msk [vmem:[%s5797_s6 + $0x29c] sm:$0xf] %vm4085_vm2, %v4968_v5  ;;  %v4966_v13 = vpack.c.bf16 %v2970_v9, %v2970_v9  ;;  %v2847_v14 = vsel %vm2335_vm6, %v5251_v3, %v2591_v7  ;;  %vm2333_vm8 = vcmp.ge.f32.partialorder %v1430_v11, 0.0  ;;  %v2589_v15 = vmul.f32 0.2, %v1430_v11 }
 0x140   : > { %4123 = vst.msk [vmem:[%s5797_s6 + $0x94] sm:$0xf] %vm4085_vm2, %v4838_v8  ;;  %v4843_v16 = vpack.c.bf16 %v2847_v14, %v2847_v14  ;;  %v2975_v17 = vsel %vm2463_vm7, %v5379_v4, %v2719_v10  ;;  %vm2461_vm9 = vcmp.ge.f32.partialorder %v1942_v12, 0.0  ;;  %v2717_v18 = vmul.f32 0.2, %v1942_v12  ;;  %v5252_v19 = vpop.f32.mrf.mxu0  ;;  %v5380_v20 = vpop.f32.mrf.mxu1 }
 0x141   : > { %4251 = vst.msk [vmem:[%s5797_s6 + $0x294] sm:$0xf] %vm4085_vm2, %v4966_v13  ;;  %v4971_v21 = vpack.c.bf16 %v2975_v17, %v2975_v17  ;;  %v2845_v22 = vsel %vm2333_vm8, %v1430_v11, %v2589_v15  ;;  %vm2336_vm10 = vcmp.ge.f32.partialorder %v5252_v19, 0.0  ;;  %v2592_v23 = vmul.f32 0.2, %v5252_v19 }
 0x142   : > { %4128 = vst.msk [vmem:[%s5797_s6 + $0xa8] sm:$0xf] %vm4085_vm2, %v4843_v16  ;;  %v4841_v24 = vpack.c.bf16 %v2845_v22, %v2845_v22  ;;  %v2973_v25 = vsel %vm2461_vm9, %v1942_v12, %v2717_v18  ;;  %vm2464_vm11 = vcmp.ge.f32.partialorder %v5380_v20, 0.0  ;;  %v2720_v26 = vmul.f32 0.2, %v5380_v20  ;;  %v1433_v27 = vpop.f32.mrf.mxu0  ;;  %v1945_v28 = vpop.f32.mrf.mxu1 }
 0x143   : > { %4256 = vst.msk [vmem:[%s5797_s6 + $0x2a8] sm:$0xf] %vm4085_vm2, %v4971_v21  ;;  %v4969_v29 = vpack.c.bf16 %v2973_v25, %v2973_v25  ;;  %v2848_v30 = vsel %vm2336_vm10, %v5252_v19, %v2592_v23  ;;  %vm2334_vm12 = vcmp.ge.f32.partialorder %v1433_v27, 0.0  ;;  %v2590_v31 = vmul.f32 0.2, %v1433_v27 }
 0x144   : > { %4126 = vst.msk [vmem:[%s5797_s6 + $0xa0] sm:$0xf] %vm4085_vm2, %v4841_v24  ;;  %v4844_v32 = vpack.c.bf16 %v2848_v30, %v2848_v30  ;;  %v2976_v33 = vsel %vm2464_vm11, %v5380_v20, %v2720_v26  ;;  %vm2462_vm13 = vcmp.ge.f32.partialorder %v1945_v28, 0.0  ;;  %v2718_v34 = vmul.f32 0.2, %v1945_v28  ;;  %v5255_v35 = vpop.f32.mrf.mxu0  ;;  %v5383_v36 = vpop.f32.mrf.mxu1 }
 0x145   : > { %4254 = vst.msk [vmem:[%s5797_s6 + $0x2a0] sm:$0xf] %vm4085_vm2, %v4969_v29  ;;  %v4972_v37 = vpack.c.bf16 %v2976_v33, %v2976_v33  ;;  %v2846_v38 = vsel %vm2334_vm12, %v1433_v27, %v2590_v31  ;;  %vm2339_vm14 = vcmp.ge.f32.partialorder %v5255_v35, 0.0  ;;  %v2595_v39 = vmul.f32 0.2, %v5255_v35 }
 0x146   : > { %4129 = vst.msk [vmem:[%s5797_s6 + $0xac] sm:$0xf] %vm4085_vm2, %v4844_v32  ;;  %v4842_v40 = vpack.c.bf16 %v2846_v38, %v2846_v38  ;;  %v2974_v41 = vsel %vm2462_vm13, %v1945_v28, %v2718_v34  ;;  %vm2467_vm15 = vcmp.ge.f32.partialorder %v5383_v36, 0.0  ;;  %v2723_v42 = vmul.f32 0.2, %v5383_v36  ;;  %v1446_v43 = vpop.f32.mrf.mxu0  ;;  %v1958_v44 = vpop.f32.mrf.mxu1 }
 0x147   : > { %4257 = vst.msk [vmem:[%s5797_s6 + $0x2ac] sm:$0xf] %vm4085_vm2, %v4972_v37  ;;  %v4970_v45 = vpack.c.bf16 %v2974_v41, %v2974_v41  ;;  %v2851_v46 = vsel %vm2339_vm14, %v5255_v35, %v2595_v39  ;;  %vm2337_vm0 = vcmp.ge.f32.partialorder %v1446_v43, 0.0  ;;  %v2593_v47 = vmul.f32 0.2, %v1446_v43 }
 0x148   : > { %4127 = vst.msk [vmem:[%s5797_s6 + $0xa4] sm:$0xf] %vm4085_vm2, %v4842_v40  ;;  %v4847_v48 = vpack.c.bf16 %v2851_v46, %v2851_v46  ;;  %v2979_v49 = vsel %vm2467_vm15, %v5383_v36, %v2723_v42  ;;  %vm2465_vm1 = vcmp.ge.f32.partialorder %v1958_v44, 0.0  ;;  %v2721_v50 = vmul.f32 0.2, %v1958_v44  ;;  %v5256_v51 = vpop.f32.mrf.mxu0  ;;  %v5384_v52 = vpop.f32.mrf.mxu1 }
 0x149   : > { %4255 = vst.msk [vmem:[%s5797_s6 + $0x2a4] sm:$0xf] %vm4085_vm2, %v4970_v45  ;;  %v4975_v53 = vpack.c.bf16 %v2979_v49, %v2979_v49  ;;  %v2849_v54 = vsel %vm2337_vm0, %v1446_v43, %v2593_v47  ;;  %vm2340_vm3 = vcmp.ge.f32.partialorder %v5256_v51, 0.0  ;;  %v2596_v55 = vmul.f32 0.2, %v5256_v51 }
 0x14a   : > { %4132 = vst.msk [vmem:[%s5797_s6 + $0xb8] sm:$0xf] %vm4085_vm2, %v4847_v48  ;;  %v4845_v56 = vpack.c.bf16 %v2849_v54, %v2849_v54  ;;  %v2977_v57 = vsel %vm2465_vm1, %v1958_v44, %v2721_v50  ;;  %vm2468_vm4 = vcmp.ge.f32.partialorder %v5384_v52, 0.0  ;;  %v2724_v58 = vmul.f32 0.2, %v5384_v52  ;;  %v1449_v59 = vpop.f32.mrf.mxu0  ;;  %v1961_v60 = vpop.f32.mrf.mxu1 }
 0x14b   : > { %4260 = vst.msk [vmem:[%s5797_s6 + $0x2b8] sm:$0xf] %vm4085_vm2, %v4975_v53  ;;  %v4973_v61 = vpack.c.bf16 %v2977_v57, %v2977_v57  ;;  %v2852_v62 = vsel %vm2340_vm3, %v5256_v51, %v2596_v55  ;;  %vm2338_vm5 = vcmp.ge.f32.partialorder %v1449_v59, 0.0  ;;  %v2594_v63 = vmul.f32 0.2, %v1449_v59 }
 0x14c   : > { %4130 = vst.msk [vmem:[%s5797_s6 + $0xb0] sm:$0xf] %vm4085_vm2, %v4845_v56  ;;  %v4848_v0 = vpack.c.bf16 %v2852_v62, %v2852_v62  ;;  %v2980_v1 = vsel %vm2468_vm4, %v5384_v52, %v2724_v58  ;;  %vm2466_vm6 = vcmp.ge.f32.partialorder %v1961_v60, 0.0  ;;  %v2722_v2 = vmul.f32 0.2, %v1961_v60  ;;  %v5259_v3 = vpop.f32.mrf.mxu0  ;;  %v5387_v4 = vpop.f32.mrf.mxu1 }
 0x14d   : > { %4258 = vst.msk [vmem:[%s5797_s6 + $0x2b0] sm:$0xf] %vm4085_vm2, %v4973_v61  ;;  %v4976_v5 = vpack.c.bf16 %v2980_v1, %v2980_v1  ;;  %v2850_v6 = vsel %vm2338_vm5, %v1449_v59, %v2594_v63  ;;  %vm2343_vm7 = vcmp.ge.f32.partialorder %v5259_v3, 0.0  ;;  %v2599_v7 = vmul.f32 0.2, %v5259_v3 }
 0x14e   : > { %4133 = vst.msk [vmem:[%s5797_s6 + $0xbc] sm:$0xf] %vm4085_vm2, %v4848_v0  ;;  %v4846_v8 = vpack.c.bf16 %v2850_v6, %v2850_v6  ;;  %v2978_v9 = vsel %vm2466_vm6, %v1961_v60, %v2722_v2  ;;  %vm2471_vm8 = vcmp.ge.f32.partialorder %v5387_v4, 0.0  ;;  %v2727_v10 = vmul.f32 0.2, %v5387_v4  ;;  %v1462_v11 = vpop.f32.mrf.mxu0  ;;  %v1974_v12 = vpop.f32.mrf.mxu1 }
 0x14f   : > { %4261 = vst.msk [vmem:[%s5797_s6 + $0x2bc] sm:$0xf] %vm4085_vm2, %v4976_v5  ;;  %v4974_v13 = vpack.c.bf16 %v2978_v9, %v2978_v9  ;;  %v2855_v14 = vsel %vm2343_vm7, %v5259_v3, %v2599_v7  ;;  %vm2341_vm9 = vcmp.ge.f32.partialorder %v1462_v11, 0.0  ;;  %v2597_v15 = vmul.f32 0.2, %v1462_v11 }
 0x150   : > { %4131 = vst.msk [vmem:[%s5797_s6 + $0xb4] sm:$0xf] %vm4085_vm2, %v4846_v8  ;;  %v4851_v16 = vpack.c.bf16 %v2855_v14, %v2855_v14  ;;  %v2983_v17 = vsel %vm2471_vm8, %v5387_v4, %v2727_v10  ;;  %vm2469_vm10 = vcmp.ge.f32.partialorder %v1974_v12, 0.0  ;;  %v2725_v18 = vmul.f32 0.2, %v1974_v12  ;;  %v5260_v19 = vpop.f32.mrf.mxu0  ;;  %v5388_v20 = vpop.f32.mrf.mxu1 }
 0x151   : > { %4259 = vst.msk [vmem:[%s5797_s6 + $0x2b4] sm:$0xf] %vm4085_vm2, %v4974_v13  ;;  %v4979_v21 = vpack.c.bf16 %v2983_v17, %v2983_v17  ;;  %v2853_v22 = vsel %vm2341_vm9, %v1462_v11, %v2597_v15  ;;  %vm2344_vm11 = vcmp.ge.f32.partialorder %v5260_v19, 0.0  ;;  %v2600_v23 = vmul.f32 0.2, %v5260_v19 }
 0x152   : > { %4136 = vst.msk [vmem:[%s5797_s6 + $0xc8] sm:$0xf] %vm4085_vm2, %v4851_v16  ;;  %v4849_v24 = vpack.c.bf16 %v2853_v22, %v2853_v22  ;;  %v2981_v25 = vsel %vm2469_vm10, %v1974_v12, %v2725_v18  ;;  %vm2472_vm12 = vcmp.ge.f32.partialorder %v5388_v20, 0.0  ;;  %v2728_v26 = vmul.f32 0.2, %v5388_v20  ;;  %v1465_v27 = vpop.f32.mrf.mxu0  ;;  %v1977_v28 = vpop.f32.mrf.mxu1 }
 0x153   : > { %4264 = vst.msk [vmem:[%s5797_s6 + $0x2c8] sm:$0xf] %vm4085_vm2, %v4979_v21  ;;  %v4977_v29 = vpack.c.bf16 %v2981_v25, %v2981_v25  ;;  %v2856_v30 = vsel %vm2344_vm11, %v5260_v19, %v2600_v23  ;;  %vm2342_vm13 = vcmp.ge.f32.partialorder %v1465_v27, 0.0  ;;  %v2598_v31 = vmul.f32 0.2, %v1465_v27 }
 0x154   : > { %4134 = vst.msk [vmem:[%s5797_s6 + $0xc0] sm:$0xf] %vm4085_vm2, %v4849_v24  ;;  %v4852_v32 = vpack.c.bf16 %v2856_v30, %v2856_v30  ;;  %v2984_v33 = vsel %vm2472_vm12, %v5388_v20, %v2728_v26  ;;  %vm2470_vm14 = vcmp.ge.f32.partialorder %v1977_v28, 0.0  ;;  %v2726_v34 = vmul.f32 0.2, %v1977_v28  ;;  %v5263_v35 = vpop.f32.mrf.mxu0  ;;  %v5391_v36 = vpop.f32.mrf.mxu1 }
 0x155   : > { %4262 = vst.msk [vmem:[%s5797_s6 + $0x2c0] sm:$0xf] %vm4085_vm2, %v4977_v29  ;;  %v4980_v37 = vpack.c.bf16 %v2984_v33, %v2984_v33  ;;  %v2854_v38 = vsel %vm2342_vm13, %v1465_v27, %v2598_v31  ;;  %vm2347_vm15 = vcmp.ge.f32.partialorder %v5263_v35, 0.0  ;;  %v2603_v39 = vmul.f32 0.2, %v5263_v35 }
 0x156   : > { %4137 = vst.msk [vmem:[%s5797_s6 + $0xcc] sm:$0xf] %vm4085_vm2, %v4852_v32  ;;  %v4850_v40 = vpack.c.bf16 %v2854_v38, %v2854_v38  ;;  %v2982_v41 = vsel %vm2470_vm14, %v1977_v28, %v2726_v34  ;;  %vm2475_vm0 = vcmp.ge.f32.partialorder %v5391_v36, 0.0  ;;  %v2731_v42 = vmul.f32 0.2, %v5391_v36  ;;  %v1478_v43 = vpop.f32.mrf.mxu0  ;;  %v1990_v44 = vpop.f32.mrf.mxu1 }
 0x157   : > { %4265 = vst.msk [vmem:[%s5797_s6 + $0x2cc] sm:$0xf] %vm4085_vm2, %v4980_v37  ;;  %v4978_v45 = vpack.c.bf16 %v2982_v41, %v2982_v41  ;;  %v2859_v46 = vsel %vm2347_vm15, %v5263_v35, %v2603_v39  ;;  %vm2345_vm1 = vcmp.ge.f32.partialorder %v1478_v43, 0.0  ;;  %v2601_v47 = vmul.f32 0.2, %v1478_v43 }
 0x158   : > { %4135 = vst.msk [vmem:[%s5797_s6 + $0xc4] sm:$0xf] %vm4085_vm2, %v4850_v40  ;;  %v4855_v48 = vpack.c.bf16 %v2859_v46, %v2859_v46  ;;  %v2987_v49 = vsel %vm2475_vm0, %v5391_v36, %v2731_v42  ;;  %vm2473_vm3 = vcmp.ge.f32.partialorder %v1990_v44, 0.0  ;;  %v2729_v50 = vmul.f32 0.2, %v1990_v44  ;;  %v5264_v51 = vpop.f32.mrf.mxu0  ;;  %v5392_v52 = vpop.f32.mrf.mxu1 }
 0x159   : > { %4263 = vst.msk [vmem:[%s5797_s6 + $0x2c4] sm:$0xf] %vm4085_vm2, %v4978_v45  ;;  %v4983_v53 = vpack.c.bf16 %v2987_v49, %v2987_v49  ;;  %v2857_v54 = vsel %vm2345_vm1, %v1478_v43, %v2601_v47  ;;  %vm2348_vm4 = vcmp.ge.f32.partialorder %v5264_v51, 0.0  ;;  %v2604_v55 = vmul.f32 0.2, %v5264_v51 }
 0x15a   : > { %4140 = vst.msk [vmem:[%s5797_s6 + $0xd8] sm:$0xf] %vm4085_vm2, %v4855_v48  ;;  %v4853_v56 = vpack.c.bf16 %v2857_v54, %v2857_v54  ;;  %v2985_v57 = vsel %vm2473_vm3, %v1990_v44, %v2729_v50  ;;  %vm2476_vm5 = vcmp.ge.f32.partialorder %v5392_v52, 0.0  ;;  %v2732_v58 = vmul.f32 0.2, %v5392_v52  ;;  %v1481_v59 = vpop.f32.mrf.mxu0  ;;  %v1993_v60 = vpop.f32.mrf.mxu1 }
 0x15b   : > { %4268 = vst.msk [vmem:[%s5797_s6 + $0x2d8] sm:$0xf] %vm4085_vm2, %v4983_v53  ;;  %v4981_v61 = vpack.c.bf16 %v2985_v57, %v2985_v57  ;;  %v2860_v62 = vsel %vm2348_vm4, %v5264_v51, %v2604_v55  ;;  %vm2346_vm6 = vcmp.ge.f32.partialorder %v1481_v59, 0.0  ;;  %v2602_v63 = vmul.f32 0.2, %v1481_v59 }
 0x15c   : > { %4138 = vst.msk [vmem:[%s5797_s6 + $0xd0] sm:$0xf] %vm4085_vm2, %v4853_v56  ;;  %v4856_v0 = vpack.c.bf16 %v2860_v62, %v2860_v62  ;;  %v2988_v1 = vsel %vm2476_vm5, %v5392_v52, %v2732_v58  ;;  %vm2474_vm7 = vcmp.ge.f32.partialorder %v1993_v60, 0.0  ;;  %v2730_v2 = vmul.f32 0.2, %v1993_v60  ;;  %v5267_v3 = vpop.f32.mrf.mxu0  ;;  %v5395_v4 = vpop.f32.mrf.mxu1 }
 0x15d   : > { %4266 = vst.msk [vmem:[%s5797_s6 + $0x2d0] sm:$0xf] %vm4085_vm2, %v4981_v61  ;;  %v4984_v5 = vpack.c.bf16 %v2988_v1, %v2988_v1  ;;  %v2858_v6 = vsel %vm2346_vm6, %v1481_v59, %v2602_v63  ;;  %vm2351_vm8 = vcmp.ge.f32.partialorder %v5267_v3, 0.0  ;;  %v2607_v7 = vmul.f32 0.2, %v5267_v3 }
 0x15e   : > { %4141 = vst.msk [vmem:[%s5797_s6 + $0xdc] sm:$0xf] %vm4085_vm2, %v4856_v0  ;;  %v4854_v8 = vpack.c.bf16 %v2858_v6, %v2858_v6  ;;  %v2986_v9 = vsel %vm2474_vm7, %v1993_v60, %v2730_v2  ;;  %vm2479_vm9 = vcmp.ge.f32.partialorder %v5395_v4, 0.0  ;;  %v2735_v10 = vmul.f32 0.2, %v5395_v4  ;;  %v1494_v11 = vpop.f32.mrf.mxu0  ;;  %v2006_v12 = vpop.f32.mrf.mxu1 }
 0x15f   : > { %4269 = vst.msk [vmem:[%s5797_s6 + $0x2dc] sm:$0xf] %vm4085_vm2, %v4984_v5  ;;  %v4982_v13 = vpack.c.bf16 %v2986_v9, %v2986_v9  ;;  %v2863_v14 = vsel %vm2351_vm8, %v5267_v3, %v2607_v7  ;;  %vm2349_vm10 = vcmp.ge.f32.partialorder %v1494_v11, 0.0  ;;  %v2605_v15 = vmul.f32 0.2, %v1494_v11 }
 0x160   : > { %4139 = vst.msk [vmem:[%s5797_s6 + $0xd4] sm:$0xf] %vm4085_vm2, %v4854_v8  ;;  %v4859_v16 = vpack.c.bf16 %v2863_v14, %v2863_v14  ;;  %v2991_v17 = vsel %vm2479_vm9, %v5395_v4, %v2735_v10  ;;  %vm2477_vm11 = vcmp.ge.f32.partialorder %v2006_v12, 0.0  ;;  %v2733_v18 = vmul.f32 0.2, %v2006_v12  ;;  %v5268_v19 = vpop.f32.mrf.mxu0  ;;  %v5396_v20 = vpop.f32.mrf.mxu1 }
 0x161   : > { %4267 = vst.msk [vmem:[%s5797_s6 + $0x2d4] sm:$0xf] %vm4085_vm2, %v4982_v13  ;;  %v4987_v21 = vpack.c.bf16 %v2991_v17, %v2991_v17  ;;  %v2861_v22 = vsel %vm2349_vm10, %v1494_v11, %v2605_v15  ;;  %vm2352_vm12 = vcmp.ge.f32.partialorder %v5268_v19, 0.0  ;;  %v2608_v23 = vmul.f32 0.2, %v5268_v19 }
 0x162   : > { %4144 = vst.msk [vmem:[%s5797_s6 + $0xe8] sm:$0xf] %vm4085_vm2, %v4859_v16  ;;  %v4857_v24 = vpack.c.bf16 %v2861_v22, %v2861_v22  ;;  %v2989_v25 = vsel %vm2477_vm11, %v2006_v12, %v2733_v18  ;;  %vm2480_vm13 = vcmp.ge.f32.partialorder %v5396_v20, 0.0  ;;  %v2736_v26 = vmul.f32 0.2, %v5396_v20  ;;  %v1497_v27 = vpop.f32.mrf.mxu0  ;;  %v2009_v28 = vpop.f32.mrf.mxu1 }
 0x163   : > { %4272 = vst.msk [vmem:[%s5797_s6 + $0x2e8] sm:$0xf] %vm4085_vm2, %v4987_v21  ;;  %v4985_v29 = vpack.c.bf16 %v2989_v25, %v2989_v25  ;;  %v2864_v30 = vsel %vm2352_vm12, %v5268_v19, %v2608_v23  ;;  %vm2350_vm14 = vcmp.ge.f32.partialorder %v1497_v27, 0.0  ;;  %v2606_v31 = vmul.f32 0.2, %v1497_v27 }
 0x164   : > { %4142 = vst.msk [vmem:[%s5797_s6 + $0xe0] sm:$0xf] %vm4085_vm2, %v4857_v24  ;;  %v4860_v32 = vpack.c.bf16 %v2864_v30, %v2864_v30  ;;  %v2992_v33 = vsel %vm2480_vm13, %v5396_v20, %v2736_v26  ;;  %vm2478_vm15 = vcmp.ge.f32.partialorder %v2009_v28, 0.0  ;;  %v2734_v34 = vmul.f32 0.2, %v2009_v28  ;;  %v5271_v35 = vpop.f32.mrf.mxu0  ;;  %v5399_v36 = vpop.f32.mrf.mxu1 }
 0x165   : > { %4270 = vst.msk [vmem:[%s5797_s6 + $0x2e0] sm:$0xf] %vm4085_vm2, %v4985_v29  ;;  %v4988_v37 = vpack.c.bf16 %v2992_v33, %v2992_v33  ;;  %v2862_v38 = vsel %vm2350_vm14, %v1497_v27, %v2606_v31  ;;  %vm2355_vm0 = vcmp.ge.f32.partialorder %v5271_v35, 0.0  ;;  %v2611_v39 = vmul.f32 0.2, %v5271_v35 }
 0x166   : > { %4145 = vst.msk [vmem:[%s5797_s6 + $0xec] sm:$0xf] %vm4085_vm2, %v4860_v32  ;;  %v4858_v40 = vpack.c.bf16 %v2862_v38, %v2862_v38  ;;  %v2990_v41 = vsel %vm2478_vm15, %v2009_v28, %v2734_v34  ;;  %vm2483_vm1 = vcmp.ge.f32.partialorder %v5399_v36, 0.0  ;;  %v2739_v42 = vmul.f32 0.2, %v5399_v36  ;;  %v1510_v43 = vpop.f32.mrf.mxu0  ;;  %v2022_v44 = vpop.f32.mrf.mxu1 }
 0x167   : > { %4273 = vst.msk [vmem:[%s5797_s6 + $0x2ec] sm:$0xf] %vm4085_vm2, %v4988_v37  ;;  %v4986_v45 = vpack.c.bf16 %v2990_v41, %v2990_v41  ;;  %v2867_v46 = vsel %vm2355_vm0, %v5271_v35, %v2611_v39  ;;  %vm2353_vm3 = vcmp.ge.f32.partialorder %v1510_v43, 0.0  ;;  %v2609_v47 = vmul.f32 0.2, %v1510_v43 }
 0x168   : > { %4143 = vst.msk [vmem:[%s5797_s6 + $0xe4] sm:$0xf] %vm4085_vm2, %v4858_v40  ;;  %v4863_v48 = vpack.c.bf16 %v2867_v46, %v2867_v46  ;;  %v2995_v49 = vsel %vm2483_vm1, %v5399_v36, %v2739_v42  ;;  %vm2481_vm4 = vcmp.ge.f32.partialorder %v2022_v44, 0.0  ;;  %v2737_v50 = vmul.f32 0.2, %v2022_v44  ;;  %v5272_v51 = vpop.f32.mrf.mxu0  ;;  %v5400_v52 = vpop.f32.mrf.mxu1 }
 0x169   : > { %4271 = vst.msk [vmem:[%s5797_s6 + $0x2e4] sm:$0xf] %vm4085_vm2, %v4986_v45  ;;  %v4991_v53 = vpack.c.bf16 %v2995_v49, %v2995_v49  ;;  %v2865_v54 = vsel %vm2353_vm3, %v1510_v43, %v2609_v47  ;;  %vm2356_vm5 = vcmp.ge.f32.partialorder %v5272_v51, 0.0  ;;  %v2612_v55 = vmul.f32 0.2, %v5272_v51 }
 0x16a   : > { %4148 = vst.msk [vmem:[%s5797_s6 + $0xf8] sm:$0xf] %vm4085_vm2, %v4863_v48  ;;  %v4861_v56 = vpack.c.bf16 %v2865_v54, %v2865_v54  ;;  %v2993_v57 = vsel %vm2481_vm4, %v2022_v44, %v2737_v50  ;;  %vm2484_vm6 = vcmp.ge.f32.partialorder %v5400_v52, 0.0  ;;  %v2740_v58 = vmul.f32 0.2, %v5400_v52  ;;  %v1513_v59 = vpop.f32.mrf.mxu0  ;;  %v2025_v60 = vpop.f32.mrf.mxu1 }
 0x16b   : > { %4276 = vst.msk [vmem:[%s5797_s6 + $0x2f8] sm:$0xf] %vm4085_vm2, %v4991_v53  ;;  %v4989_v61 = vpack.c.bf16 %v2993_v57, %v2993_v57  ;;  %v2868_v62 = vsel %vm2356_vm5, %v5272_v51, %v2612_v55  ;;  %vm2354_vm7 = vcmp.ge.f32.partialorder %v1513_v59, 0.0  ;;  %v2610_v63 = vmul.f32 0.2, %v1513_v59 }
 0x16c   : > { %4146 = vst.msk [vmem:[%s5797_s6 + $0xf0] sm:$0xf] %vm4085_vm2, %v4861_v56  ;;  %v4864_v0 = vpack.c.bf16 %v2868_v62, %v2868_v62  ;;  %v2996_v1 = vsel %vm2484_vm6, %v5400_v52, %v2740_v58  ;;  %vm2482_vm8 = vcmp.ge.f32.partialorder %v2025_v60, 0.0  ;;  %v2738_v2 = vmul.f32 0.2, %v2025_v60  ;;  %v5275_v3 = vpop.f32.mrf.mxu0  ;;  %v5403_v4 = vpop.f32.mrf.mxu1 }
 0x16d   : > { %4274 = vst.msk [vmem:[%s5797_s6 + $0x2f0] sm:$0xf] %vm4085_vm2, %v4989_v61  ;;  %v4992_v5 = vpack.c.bf16 %v2996_v1, %v2996_v1  ;;  %v2866_v6 = vsel %vm2354_vm7, %v1513_v59, %v2610_v63  ;;  %vm2359_vm9 = vcmp.ge.f32.partialorder %v5275_v3, 0.0  ;;  %v2615_v7 = vmul.f32 0.2, %v5275_v3 }
 0x16e   : > { %4149 = vst.msk [vmem:[%s5797_s6 + $0xfc] sm:$0xf] %vm4085_vm2, %v4864_v0  ;;  %v4862_v8 = vpack.c.bf16 %v2866_v6, %v2866_v6  ;;  %v2994_v9 = vsel %vm2482_vm8, %v2025_v60, %v2738_v2  ;;  %vm2487_vm10 = vcmp.ge.f32.partialorder %v5403_v4, 0.0  ;;  %v2743_v10 = vmul.f32 0.2, %v5403_v4  ;;  %v1526_v11 = vpop.f32.mrf.mxu0  ;;  %v2038_v12 = vpop.f32.mrf.mxu1 }
 0x16f   : > { %4277 = vst.msk [vmem:[%s5797_s6 + $0x2fc] sm:$0xf] %vm4085_vm2, %v4992_v5  ;;  %v4990_v13 = vpack.c.bf16 %v2994_v9, %v2994_v9  ;;  %v2871_v14 = vsel %vm2359_vm9, %v5275_v3, %v2615_v7  ;;  %vm2357_vm11 = vcmp.ge.f32.partialorder %v1526_v11, 0.0  ;;  %v2613_v15 = vmul.f32 0.2, %v1526_v11 }
 0x170   : > { %4147 = vst.msk [vmem:[%s5797_s6 + $0xf4] sm:$0xf] %vm4085_vm2, %v4862_v8  ;;  %v4867_v16 = vpack.c.bf16 %v2871_v14, %v2871_v14  ;;  %v2999_v17 = vsel %vm2487_vm10, %v5403_v4, %v2743_v10  ;;  %vm2485_vm12 = vcmp.ge.f32.partialorder %v2038_v12, 0.0  ;;  %v2741_v18 = vmul.f32 0.2, %v2038_v12  ;;  %v5276_v19 = vpop.f32.mrf.mxu0  ;;  %v5404_v20 = vpop.f32.mrf.mxu1 }
 0x171   : > { %4275 = vst.msk [vmem:[%s5797_s6 + $0x2f4] sm:$0xf] %vm4085_vm2, %v4990_v13  ;;  %v4995_v21 = vpack.c.bf16 %v2999_v17, %v2999_v17  ;;  %v2869_v22 = vsel %vm2357_vm11, %v1526_v11, %v2613_v15  ;;  %vm2360_vm13 = vcmp.ge.f32.partialorder %v5276_v19, 0.0  ;;  %v2616_v23 = vmul.f32 0.2, %v5276_v19 }
 0x172   : > { %4152 = vst.msk [vmem:[%s5797_s6 + $0x108] sm:$0xf] %vm4085_vm2, %v4867_v16  ;;  %v4865_v24 = vpack.c.bf16 %v2869_v22, %v2869_v22  ;;  %v2997_v25 = vsel %vm2485_vm12, %v2038_v12, %v2741_v18  ;;  %vm2488_vm14 = vcmp.ge.f32.partialorder %v5404_v20, 0.0  ;;  %v2744_v26 = vmul.f32 0.2, %v5404_v20  ;;  %v1529_v27 = vpop.f32.mrf.mxu0  ;;  %v2041_v28 = vpop.f32.mrf.mxu1 }
 0x173   : > { %4280 = vst.msk [vmem:[%s5797_s6 + $0x308] sm:$0xf] %vm4085_vm2, %v4995_v21  ;;  %v4993_v29 = vpack.c.bf16 %v2997_v25, %v2997_v25  ;;  %v2872_v30 = vsel %vm2360_vm13, %v5276_v19, %v2616_v23  ;;  %vm2358_vm15 = vcmp.ge.f32.partialorder %v1529_v27, 0.0  ;;  %v2614_v31 = vmul.f32 0.2, %v1529_v27 }
 0x174   : > { %4150 = vst.msk [vmem:[%s5797_s6 + $0x100] sm:$0xf] %vm4085_vm2, %v4865_v24  ;;  %v4868_v32 = vpack.c.bf16 %v2872_v30, %v2872_v30  ;;  %v3000_v33 = vsel %vm2488_vm14, %v5404_v20, %v2744_v26  ;;  %vm2486_vm0 = vcmp.ge.f32.partialorder %v2041_v28, 0.0  ;;  %v2742_v34 = vmul.f32 0.2, %v2041_v28  ;;  %v5279_v35 = vpop.f32.mrf.mxu0  ;;  %v5407_v36 = vpop.f32.mrf.mxu1 }
 0x175   : > { %4278 = vst.msk [vmem:[%s5797_s6 + $0x300] sm:$0xf] %vm4085_vm2, %v4993_v29  ;;  %v4996_v37 = vpack.c.bf16 %v3000_v33, %v3000_v33  ;;  %v2870_v38 = vsel %vm2358_vm15, %v1529_v27, %v2614_v31  ;;  %vm2363_vm1 = vcmp.ge.f32.partialorder %v5279_v35, 0.0  ;;  %v2619_v39 = vmul.f32 0.2, %v5279_v35 }
 0x176   : > { %4153 = vst.msk [vmem:[%s5797_s6 + $0x10c] sm:$0xf] %vm4085_vm2, %v4868_v32  ;;  %v4866_v40 = vpack.c.bf16 %v2870_v38, %v2870_v38  ;;  %v2998_v41 = vsel %vm2486_vm0, %v2041_v28, %v2742_v34  ;;  %vm2491_vm3 = vcmp.ge.f32.partialorder %v5407_v36, 0.0  ;;  %v2747_v42 = vmul.f32 0.2, %v5407_v36  ;;  %v1542_v43 = vpop.f32.mrf.mxu0  ;;  %v2054_v44 = vpop.f32.mrf.mxu1 }
 0x177   : > { %4281 = vst.msk [vmem:[%s5797_s6 + $0x30c] sm:$0xf] %vm4085_vm2, %v4996_v37  ;;  %v4994_v45 = vpack.c.bf16 %v2998_v41, %v2998_v41  ;;  %v2875_v46 = vsel %vm2363_vm1, %v5279_v35, %v2619_v39  ;;  %vm2361_vm4 = vcmp.ge.f32.partialorder %v1542_v43, 0.0  ;;  %v2617_v47 = vmul.f32 0.2, %v1542_v43 }
 0x178   : > { %4151 = vst.msk [vmem:[%s5797_s6 + $0x104] sm:$0xf] %vm4085_vm2, %v4866_v40  ;;  %v4871_v48 = vpack.c.bf16 %v2875_v46, %v2875_v46  ;;  %v3003_v49 = vsel %vm2491_vm3, %v5407_v36, %v2747_v42  ;;  %vm2489_vm5 = vcmp.ge.f32.partialorder %v2054_v44, 0.0  ;;  %v2745_v50 = vmul.f32 0.2, %v2054_v44  ;;  %v5280_v51 = vpop.f32.mrf.mxu0  ;;  %v5408_v52 = vpop.f32.mrf.mxu1 }
 0x179   : > { %4279 = vst.msk [vmem:[%s5797_s6 + $0x304] sm:$0xf] %vm4085_vm2, %v4994_v45  ;;  %v4999_v53 = vpack.c.bf16 %v3003_v49, %v3003_v49  ;;  %v2873_v54 = vsel %vm2361_vm4, %v1542_v43, %v2617_v47  ;;  %vm2364_vm6 = vcmp.ge.f32.partialorder %v5280_v51, 0.0  ;;  %v2620_v55 = vmul.f32 0.2, %v5280_v51 }
 0x17a   : > { %4156 = vst.msk [vmem:[%s5797_s6 + $0x118] sm:$0xf] %vm4085_vm2, %v4871_v48  ;;  %v4869_v56 = vpack.c.bf16 %v2873_v54, %v2873_v54  ;;  %v3001_v57 = vsel %vm2489_vm5, %v2054_v44, %v2745_v50  ;;  %vm2492_vm7 = vcmp.ge.f32.partialorder %v5408_v52, 0.0  ;;  %v2748_v58 = vmul.f32 0.2, %v5408_v52  ;;  %v1545_v59 = vpop.f32.mrf.mxu0  ;;  %v2057_v60 = vpop.f32.mrf.mxu1 }
 0x17b   : > { %4284 = vst.msk [vmem:[%s5797_s6 + $0x318] sm:$0xf] %vm4085_vm2, %v4999_v53  ;;  %v4997_v61 = vpack.c.bf16 %v3001_v57, %v3001_v57  ;;  %v2876_v62 = vsel %vm2364_vm6, %v5280_v51, %v2620_v55  ;;  %vm2362_vm8 = vcmp.ge.f32.partialorder %v1545_v59, 0.0  ;;  %v2618_v63 = vmul.f32 0.2, %v1545_v59 }
 0x17c   : > { %4154 = vst.msk [vmem:[%s5797_s6 + $0x110] sm:$0xf] %vm4085_vm2, %v4869_v56  ;;  %v4872_v0 = vpack.c.bf16 %v2876_v62, %v2876_v62  ;;  %v3004_v1 = vsel %vm2492_vm7, %v5408_v52, %v2748_v58  ;;  %vm2490_vm9 = vcmp.ge.f32.partialorder %v2057_v60, 0.0  ;;  %v2746_v2 = vmul.f32 0.2, %v2057_v60  ;;  %v5283_v3 = vpop.f32.mrf.mxu0  ;;  %v5411_v4 = vpop.f32.mrf.mxu1 }
 0x17d   : > { %4282 = vst.msk [vmem:[%s5797_s6 + $0x310] sm:$0xf] %vm4085_vm2, %v4997_v61  ;;  %v5000_v5 = vpack.c.bf16 %v3004_v1, %v3004_v1  ;;  %v2874_v6 = vsel %vm2362_vm8, %v1545_v59, %v2618_v63  ;;  %vm2367_vm10 = vcmp.ge.f32.partialorder %v5283_v3, 0.0  ;;  %v2623_v7 = vmul.f32 0.2, %v5283_v3 }
 0x17e   : > { %4157 = vst.msk [vmem:[%s5797_s6 + $0x11c] sm:$0xf] %vm4085_vm2, %v4872_v0  ;;  %v4870_v8 = vpack.c.bf16 %v2874_v6, %v2874_v6  ;;  %v3002_v9 = vsel %vm2490_vm9, %v2057_v60, %v2746_v2  ;;  %vm2495_vm11 = vcmp.ge.f32.partialorder %v5411_v4, 0.0  ;;  %v2751_v10 = vmul.f32 0.2, %v5411_v4  ;;  %v1558_v11 = vpop.f32.mrf.mxu0  ;;  %v2070_v12 = vpop.f32.mrf.mxu1 }
 0x17f   : > { %4285 = vst.msk [vmem:[%s5797_s6 + $0x31c] sm:$0xf] %vm4085_vm2, %v5000_v5  ;;  %v4998_v13 = vpack.c.bf16 %v3002_v9, %v3002_v9  ;;  %v2879_v14 = vsel %vm2367_vm10, %v5283_v3, %v2623_v7  ;;  %vm2365_vm12 = vcmp.ge.f32.partialorder %v1558_v11, 0.0  ;;  %v2621_v15 = vmul.f32 0.2, %v1558_v11 }
 0x180   : > { %4155 = vst.msk [vmem:[%s5797_s6 + $0x114] sm:$0xf] %vm4085_vm2, %v4870_v8  ;;  %v4875_v16 = vpack.c.bf16 %v2879_v14, %v2879_v14  ;;  %v3007_v17 = vsel %vm2495_vm11, %v5411_v4, %v2751_v10  ;;  %vm2493_vm13 = vcmp.ge.f32.partialorder %v2070_v12, 0.0  ;;  %v2749_v18 = vmul.f32 0.2, %v2070_v12  ;;  %v5284_v19 = vpop.f32.mrf.mxu0  ;;  %v5412_v20 = vpop.f32.mrf.mxu1 }
 0x181   : > { %4283 = vst.msk [vmem:[%s5797_s6 + $0x314] sm:$0xf] %vm4085_vm2, %v4998_v13  ;;  %v5003_v21 = vpack.c.bf16 %v3007_v17, %v3007_v17  ;;  %v2877_v22 = vsel %vm2365_vm12, %v1558_v11, %v2621_v15  ;;  %vm2368_vm14 = vcmp.ge.f32.partialorder %v5284_v19, 0.0  ;;  %v2624_v23 = vmul.f32 0.2, %v5284_v19 }
 0x182   : > { %4160 = vst.msk [vmem:[%s5797_s6 + $0x128] sm:$0xf] %vm4085_vm2, %v4875_v16  ;;  %v4873_v24 = vpack.c.bf16 %v2877_v22, %v2877_v22  ;;  %v3005_v25 = vsel %vm2493_vm13, %v2070_v12, %v2749_v18  ;;  %vm2496_vm15 = vcmp.ge.f32.partialorder %v5412_v20, 0.0  ;;  %v2752_v26 = vmul.f32 0.2, %v5412_v20  ;;  %v1561_v27 = vpop.f32.mrf.mxu0  ;;  %v2073_v28 = vpop.f32.mrf.mxu1 }
 0x183   : > { %4288 = vst.msk [vmem:[%s5797_s6 + $0x328] sm:$0xf] %vm4085_vm2, %v5003_v21  ;;  %v5001_v29 = vpack.c.bf16 %v3005_v25, %v3005_v25  ;;  %v2880_v30 = vsel %vm2368_vm14, %v5284_v19, %v2624_v23  ;;  %vm2366_vm0 = vcmp.ge.f32.partialorder %v1561_v27, 0.0  ;;  %v2622_v31 = vmul.f32 0.2, %v1561_v27 }
 0x184   : > { %4158 = vst.msk [vmem:[%s5797_s6 + $0x120] sm:$0xf] %vm4085_vm2, %v4873_v24  ;;  %v4876_v32 = vpack.c.bf16 %v2880_v30, %v2880_v30  ;;  %v3008_v33 = vsel %vm2496_vm15, %v5412_v20, %v2752_v26  ;;  %vm2494_vm1 = vcmp.ge.f32.partialorder %v2073_v28, 0.0  ;;  %v2750_v34 = vmul.f32 0.2, %v2073_v28  ;;  %v5287_v35 = vpop.f32.mrf.mxu0  ;;  %v5415_v36 = vpop.f32.mrf.mxu1 }
 0x185   : > { %4286 = vst.msk [vmem:[%s5797_s6 + $0x320] sm:$0xf] %vm4085_vm2, %v5001_v29  ;;  %v5004_v37 = vpack.c.bf16 %v3008_v33, %v3008_v33  ;;  %v2878_v38 = vsel %vm2366_vm0, %v1561_v27, %v2622_v31  ;;  %vm2371_vm3 = vcmp.ge.f32.partialorder %v5287_v35, 0.0  ;;  %v2627_v39 = vmul.f32 0.2, %v5287_v35 }
 0x186   : > { %4161 = vst.msk [vmem:[%s5797_s6 + $0x12c] sm:$0xf] %vm4085_vm2, %v4876_v32  ;;  %v4874_v40 = vpack.c.bf16 %v2878_v38, %v2878_v38  ;;  %v3006_v41 = vsel %vm2494_vm1, %v2073_v28, %v2750_v34  ;;  %vm2499_vm4 = vcmp.ge.f32.partialorder %v5415_v36, 0.0  ;;  %v2755_v42 = vmul.f32 0.2, %v5415_v36  ;;  %v1574_v43 = vpop.f32.mrf.mxu0  ;;  %v2086_v44 = vpop.f32.mrf.mxu1 }
 0x187   : > { %4289 = vst.msk [vmem:[%s5797_s6 + $0x32c] sm:$0xf] %vm4085_vm2, %v5004_v37  ;;  %v5002_v45 = vpack.c.bf16 %v3006_v41, %v3006_v41  ;;  %v2883_v46 = vsel %vm2371_vm3, %v5287_v35, %v2627_v39  ;;  %vm2369_vm5 = vcmp.ge.f32.partialorder %v1574_v43, 0.0  ;;  %v2625_v47 = vmul.f32 0.2, %v1574_v43 }
 0x188   : > { %4159 = vst.msk [vmem:[%s5797_s6 + $0x124] sm:$0xf] %vm4085_vm2, %v4874_v40  ;;  %v4879_v48 = vpack.c.bf16 %v2883_v46, %v2883_v46  ;;  %v3011_v49 = vsel %vm2499_vm4, %v5415_v36, %v2755_v42  ;;  %vm2497_vm6 = vcmp.ge.f32.partialorder %v2086_v44, 0.0  ;;  %v2753_v50 = vmul.f32 0.2, %v2086_v44  ;;  %v5288_v51 = vpop.f32.mrf.mxu0  ;;  %v5416_v52 = vpop.f32.mrf.mxu1 }
 0x189   : > { %4287 = vst.msk [vmem:[%s5797_s6 + $0x324] sm:$0xf] %vm4085_vm2, %v5002_v45  ;;  %v5007_v53 = vpack.c.bf16 %v3011_v49, %v3011_v49  ;;  %v2881_v54 = vsel %vm2369_vm5, %v1574_v43, %v2625_v47  ;;  %vm2372_vm7 = vcmp.ge.f32.partialorder %v5288_v51, 0.0  ;;  %v2628_v55 = vmul.f32 0.2, %v5288_v51 }
 0x18a   : > { %4164 = vst.msk [vmem:[%s5797_s6 + $0x138] sm:$0xf] %vm4085_vm2, %v4879_v48  ;;  %v4877_v56 = vpack.c.bf16 %v2881_v54, %v2881_v54  ;;  %v3009_v57 = vsel %vm2497_vm6, %v2086_v44, %v2753_v50  ;;  %vm2500_vm8 = vcmp.ge.f32.partialorder %v5416_v52, 0.0  ;;  %v2756_v58 = vmul.f32 0.2, %v5416_v52  ;;  %v1577_v59 = vpop.f32.mrf.mxu0  ;;  %v2089_v60 = vpop.f32.mrf.mxu1 }
 0x18b   : > { %4292 = vst.msk [vmem:[%s5797_s6 + $0x338] sm:$0xf] %vm4085_vm2, %v5007_v53  ;;  %v5005_v61 = vpack.c.bf16 %v3009_v57, %v3009_v57  ;;  %v2884_v62 = vsel %vm2372_vm7, %v5288_v51, %v2628_v55  ;;  %vm2370_vm9 = vcmp.ge.f32.partialorder %v1577_v59, 0.0  ;;  %v2626_v63 = vmul.f32 0.2, %v1577_v59 }
 0x18c   : > { %4162 = vst.msk [vmem:[%s5797_s6 + $0x130] sm:$0xf] %vm4085_vm2, %v4877_v56  ;;  %v4880_v0 = vpack.c.bf16 %v2884_v62, %v2884_v62  ;;  %v3012_v1 = vsel %vm2500_vm8, %v5416_v52, %v2756_v58  ;;  %vm2498_vm10 = vcmp.ge.f32.partialorder %v2089_v60, 0.0  ;;  %v2754_v2 = vmul.f32 0.2, %v2089_v60  ;;  %v5291_v3 = vpop.f32.mrf.mxu0  ;;  %v5419_v4 = vpop.f32.mrf.mxu1 }
 0x18d   : > { %4290 = vst.msk [vmem:[%s5797_s6 + $0x330] sm:$0xf] %vm4085_vm2, %v5005_v61  ;;  %v5008_v5 = vpack.c.bf16 %v3012_v1, %v3012_v1  ;;  %v2882_v6 = vsel %vm2370_vm9, %v1577_v59, %v2626_v63  ;;  %vm2375_vm11 = vcmp.ge.f32.partialorder %v5291_v3, 0.0  ;;  %v2631_v7 = vmul.f32 0.2, %v5291_v3 }
 0x18e   : > { %4165 = vst.msk [vmem:[%s5797_s6 + $0x13c] sm:$0xf] %vm4085_vm2, %v4880_v0  ;;  %v4878_v8 = vpack.c.bf16 %v2882_v6, %v2882_v6  ;;  %v3010_v9 = vsel %vm2498_vm10, %v2089_v60, %v2754_v2  ;;  %vm2503_vm12 = vcmp.ge.f32.partialorder %v5419_v4, 0.0  ;;  %v2759_v10 = vmul.f32 0.2, %v5419_v4  ;;  %v1590_v11 = vpop.f32.mrf.mxu0  ;;  %v2102_v12 = vpop.f32.mrf.mxu1 }
 0x18f   : > { %4293 = vst.msk [vmem:[%s5797_s6 + $0x33c] sm:$0xf] %vm4085_vm2, %v5008_v5  ;;  %v5006_v13 = vpack.c.bf16 %v3010_v9, %v3010_v9  ;;  %v2887_v14 = vsel %vm2375_vm11, %v5291_v3, %v2631_v7  ;;  %vm2373_vm13 = vcmp.ge.f32.partialorder %v1590_v11, 0.0  ;;  %v2629_v15 = vmul.f32 0.2, %v1590_v11 }
 0x190   : > { %4163 = vst.msk [vmem:[%s5797_s6 + $0x134] sm:$0xf] %vm4085_vm2, %v4878_v8  ;;  %v4883_v16 = vpack.c.bf16 %v2887_v14, %v2887_v14  ;;  %v3015_v17 = vsel %vm2503_vm12, %v5419_v4, %v2759_v10  ;;  %vm2501_vm14 = vcmp.ge.f32.partialorder %v2102_v12, 0.0  ;;  %v2757_v18 = vmul.f32 0.2, %v2102_v12  ;;  %v5292_v19 = vpop.f32.mrf.mxu0  ;;  %v5420_v20 = vpop.f32.mrf.mxu1 }
 0x191   : > { %4291 = vst.msk [vmem:[%s5797_s6 + $0x334] sm:$0xf] %vm4085_vm2, %v5006_v13  ;;  %v5011_v21 = vpack.c.bf16 %v3015_v17, %v3015_v17  ;;  %v2885_v22 = vsel %vm2373_vm13, %v1590_v11, %v2629_v15  ;;  %vm2376_vm15 = vcmp.ge.f32.partialorder %v5292_v19, 0.0  ;;  %v2632_v23 = vmul.f32 0.2, %v5292_v19 }
 0x192   : > { %4168 = vst.msk [vmem:[%s5797_s6 + $0x148] sm:$0xf] %vm4085_vm2, %v4883_v16  ;;  %v4881_v24 = vpack.c.bf16 %v2885_v22, %v2885_v22  ;;  %v3013_v25 = vsel %vm2501_vm14, %v2102_v12, %v2757_v18  ;;  %vm2504_vm0 = vcmp.ge.f32.partialorder %v5420_v20, 0.0  ;;  %v2760_v26 = vmul.f32 0.2, %v5420_v20  ;;  %v1593_v27 = vpop.f32.mrf.mxu0  ;;  %v2105_v28 = vpop.f32.mrf.mxu1 }
 0x193   : > { %4296 = vst.msk [vmem:[%s5797_s6 + $0x348] sm:$0xf] %vm4085_vm2, %v5011_v21  ;;  %v5009_v29 = vpack.c.bf16 %v3013_v25, %v3013_v25  ;;  %v2888_v30 = vsel %vm2376_vm15, %v5292_v19, %v2632_v23  ;;  %vm2374_vm1 = vcmp.ge.f32.partialorder %v1593_v27, 0.0  ;;  %v2630_v31 = vmul.f32 0.2, %v1593_v27 }
 0x194   : > { %4166 = vst.msk [vmem:[%s5797_s6 + $0x140] sm:$0xf] %vm4085_vm2, %v4881_v24  ;;  %v4884_v32 = vpack.c.bf16 %v2888_v30, %v2888_v30  ;;  %v3016_v33 = vsel %vm2504_vm0, %v5420_v20, %v2760_v26  ;;  %vm2502_vm3 = vcmp.ge.f32.partialorder %v2105_v28, 0.0  ;;  %v2758_v34 = vmul.f32 0.2, %v2105_v28  ;;  %v5295_v35 = vpop.f32.mrf.mxu0  ;;  %v5423_v36 = vpop.f32.mrf.mxu1 }
 0x195   : > { %4294 = vst.msk [vmem:[%s5797_s6 + $0x340] sm:$0xf] %vm4085_vm2, %v5009_v29  ;;  %v5012_v37 = vpack.c.bf16 %v3016_v33, %v3016_v33  ;;  %v2886_v38 = vsel %vm2374_vm1, %v1593_v27, %v2630_v31  ;;  %vm2379_vm4 = vcmp.ge.f32.partialorder %v5295_v35, 0.0  ;;  %v2635_v39 = vmul.f32 0.2, %v5295_v35 }
 0x196   : > { %4169 = vst.msk [vmem:[%s5797_s6 + $0x14c] sm:$0xf] %vm4085_vm2, %v4884_v32  ;;  %v4882_v40 = vpack.c.bf16 %v2886_v38, %v2886_v38  ;;  %v3014_v41 = vsel %vm2502_vm3, %v2105_v28, %v2758_v34  ;;  %vm2507_vm5 = vcmp.ge.f32.partialorder %v5423_v36, 0.0  ;;  %v2763_v42 = vmul.f32 0.2, %v5423_v36  ;;  %v1606_v43 = vpop.f32.mrf.mxu0  ;;  %v2118_v44 = vpop.f32.mrf.mxu1 }
 0x197   : > { %4297 = vst.msk [vmem:[%s5797_s6 + $0x34c] sm:$0xf] %vm4085_vm2, %v5012_v37  ;;  %v5010_v45 = vpack.c.bf16 %v3014_v41, %v3014_v41  ;;  %v2891_v46 = vsel %vm2379_vm4, %v5295_v35, %v2635_v39  ;;  %vm2377_vm6 = vcmp.ge.f32.partialorder %v1606_v43, 0.0  ;;  %v2633_v47 = vmul.f32 0.2, %v1606_v43 }
 0x198   : > { %4167 = vst.msk [vmem:[%s5797_s6 + $0x144] sm:$0xf] %vm4085_vm2, %v4882_v40  ;;  %v4887_v48 = vpack.c.bf16 %v2891_v46, %v2891_v46  ;;  %v3019_v49 = vsel %vm2507_vm5, %v5423_v36, %v2763_v42  ;;  %vm2505_vm7 = vcmp.ge.f32.partialorder %v2118_v44, 0.0  ;;  %v2761_v50 = vmul.f32 0.2, %v2118_v44  ;;  %v5296_v51 = vpop.f32.mrf.mxu0  ;;  %v5424_v52 = vpop.f32.mrf.mxu1 }
 0x199   : > { %4295 = vst.msk [vmem:[%s5797_s6 + $0x344] sm:$0xf] %vm4085_vm2, %v5010_v45  ;;  %v5015_v53 = vpack.c.bf16 %v3019_v49, %v3019_v49  ;;  %v2889_v54 = vsel %vm2377_vm6, %v1606_v43, %v2633_v47  ;;  %vm2380_vm8 = vcmp.ge.f32.partialorder %v5296_v51, 0.0  ;;  %v2636_v55 = vmul.f32 0.2, %v5296_v51 }
 0x19a   : > { %4172 = vst.msk [vmem:[%s5797_s6 + $0x158] sm:$0xf] %vm4085_vm2, %v4887_v48  ;;  %v4885_v56 = vpack.c.bf16 %v2889_v54, %v2889_v54  ;;  %v3017_v57 = vsel %vm2505_vm7, %v2118_v44, %v2761_v50  ;;  %vm2508_vm9 = vcmp.ge.f32.partialorder %v5424_v52, 0.0  ;;  %v2764_v58 = vmul.f32 0.2, %v5424_v52  ;;  %v1609_v59 = vpop.f32.mrf.mxu0  ;;  %v2121_v60 = vpop.f32.mrf.mxu1 }
 0x19b   : > { %4300 = vst.msk [vmem:[%s5797_s6 + $0x358] sm:$0xf] %vm4085_vm2, %v5015_v53  ;;  %v5013_v61 = vpack.c.bf16 %v3017_v57, %v3017_v57  ;;  %v2892_v62 = vsel %vm2380_vm8, %v5296_v51, %v2636_v55  ;;  %vm2378_vm10 = vcmp.ge.f32.partialorder %v1609_v59, 0.0  ;;  %v2634_v63 = vmul.f32 0.2, %v1609_v59 }
 0x19c   : > { %4170 = vst.msk [vmem:[%s5797_s6 + $0x150] sm:$0xf] %vm4085_vm2, %v4885_v56  ;;  %v4888_v0 = vpack.c.bf16 %v2892_v62, %v2892_v62  ;;  %v3020_v1 = vsel %vm2508_vm9, %v5424_v52, %v2764_v58  ;;  %vm2506_vm11 = vcmp.ge.f32.partialorder %v2121_v60, 0.0  ;;  %v2762_v2 = vmul.f32 0.2, %v2121_v60  ;;  %v5299_v3 = vpop.f32.mrf.mxu0  ;;  %v5427_v4 = vpop.f32.mrf.mxu1 }
 0x19d   : > { %4298 = vst.msk [vmem:[%s5797_s6 + $0x350] sm:$0xf] %vm4085_vm2, %v5013_v61  ;;  %v5016_v5 = vpack.c.bf16 %v3020_v1, %v3020_v1  ;;  %v2890_v6 = vsel %vm2378_vm10, %v1609_v59, %v2634_v63  ;;  %vm2383_vm12 = vcmp.ge.f32.partialorder %v5299_v3, 0.0  ;;  %v2639_v7 = vmul.f32 0.2, %v5299_v3 }
 0x19e   : > { %4173 = vst.msk [vmem:[%s5797_s6 + $0x15c] sm:$0xf] %vm4085_vm2, %v4888_v0  ;;  %v4886_v8 = vpack.c.bf16 %v2890_v6, %v2890_v6  ;;  %v3018_v9 = vsel %vm2506_vm11, %v2121_v60, %v2762_v2  ;;  %vm2511_vm13 = vcmp.ge.f32.partialorder %v5427_v4, 0.0  ;;  %v2767_v10 = vmul.f32 0.2, %v5427_v4  ;;  %v1622_v11 = vpop.f32.mrf.mxu0  ;;  %v2134_v12 = vpop.f32.mrf.mxu1 }
 0x19f   : > { %4301 = vst.msk [vmem:[%s5797_s6 + $0x35c] sm:$0xf] %vm4085_vm2, %v5016_v5  ;;  %v5014_v13 = vpack.c.bf16 %v3018_v9, %v3018_v9  ;;  %v2895_v14 = vsel %vm2383_vm12, %v5299_v3, %v2639_v7  ;;  %vm2381_vm14 = vcmp.ge.f32.partialorder %v1622_v11, 0.0  ;;  %v2637_v15 = vmul.f32 0.2, %v1622_v11 }
 0x1a0   : > { %4171 = vst.msk [vmem:[%s5797_s6 + $0x154] sm:$0xf] %vm4085_vm2, %v4886_v8  ;;  %v4891_v16 = vpack.c.bf16 %v2895_v14, %v2895_v14  ;;  %v3023_v17 = vsel %vm2511_vm13, %v5427_v4, %v2767_v10  ;;  %vm2509_vm15 = vcmp.ge.f32.partialorder %v2134_v12, 0.0  ;;  %v2765_v18 = vmul.f32 0.2, %v2134_v12  ;;  %v5300_v19 = vpop.f32.mrf.mxu0  ;;  %v5428_v20 = vpop.f32.mrf.mxu1 }
 0x1a1   : > { %4299 = vst.msk [vmem:[%s5797_s6 + $0x354] sm:$0xf] %vm4085_vm2, %v5014_v13  ;;  %v5019_v21 = vpack.c.bf16 %v3023_v17, %v3023_v17  ;;  %v2893_v22 = vsel %vm2381_vm14, %v1622_v11, %v2637_v15  ;;  %vm2384_vm0 = vcmp.ge.f32.partialorder %v5300_v19, 0.0  ;;  %v2640_v23 = vmul.f32 0.2, %v5300_v19 }
 0x1a2   : > { %4176 = vst.msk [vmem:[%s5797_s6 + $0x168] sm:$0xf] %vm4085_vm2, %v4891_v16  ;;  %v4889_v24 = vpack.c.bf16 %v2893_v22, %v2893_v22  ;;  %v3021_v25 = vsel %vm2509_vm15, %v2134_v12, %v2765_v18  ;;  %vm2512_vm1 = vcmp.ge.f32.partialorder %v5428_v20, 0.0  ;;  %v2768_v26 = vmul.f32 0.2, %v5428_v20  ;;  %v1625_v27 = vpop.f32.mrf.mxu0  ;;  %v2137_v28 = vpop.f32.mrf.mxu1 }
 0x1a3   : > { %4304 = vst.msk [vmem:[%s5797_s6 + $0x368] sm:$0xf] %vm4085_vm2, %v5019_v21  ;;  %v5017_v29 = vpack.c.bf16 %v3021_v25, %v3021_v25  ;;  %v2896_v30 = vsel %vm2384_vm0, %v5300_v19, %v2640_v23  ;;  %vm2382_vm3 = vcmp.ge.f32.partialorder %v1625_v27, 0.0  ;;  %v2638_v31 = vmul.f32 0.2, %v1625_v27 }
 0x1a4   : > { %4174 = vst.msk [vmem:[%s5797_s6 + $0x160] sm:$0xf] %vm4085_vm2, %v4889_v24  ;;  %v4892_v32 = vpack.c.bf16 %v2896_v30, %v2896_v30  ;;  %v3024_v33 = vsel %vm2512_vm1, %v5428_v20, %v2768_v26  ;;  %vm2510_vm4 = vcmp.ge.f32.partialorder %v2137_v28, 0.0  ;;  %v2766_v34 = vmul.f32 0.2, %v2137_v28  ;;  %v5303_v35 = vpop.f32.mrf.mxu0  ;;  %v5431_v36 = vpop.f32.mrf.mxu1 }
 0x1a5   : > { %4302 = vst.msk [vmem:[%s5797_s6 + $0x360] sm:$0xf] %vm4085_vm2, %v5017_v29  ;;  %v5020_v37 = vpack.c.bf16 %v3024_v33, %v3024_v33  ;;  %v2894_v38 = vsel %vm2382_vm3, %v1625_v27, %v2638_v31  ;;  %vm2387_vm5 = vcmp.ge.f32.partialorder %v5303_v35, 0.0  ;;  %v2643_v39 = vmul.f32 0.2, %v5303_v35 }
 0x1a6   : > { %4177 = vst.msk [vmem:[%s5797_s6 + $0x16c] sm:$0xf] %vm4085_vm2, %v4892_v32  ;;  %v4890_v40 = vpack.c.bf16 %v2894_v38, %v2894_v38  ;;  %v3022_v41 = vsel %vm2510_vm4, %v2137_v28, %v2766_v34  ;;  %vm2515_vm6 = vcmp.ge.f32.partialorder %v5431_v36, 0.0  ;;  %v2771_v42 = vmul.f32 0.2, %v5431_v36  ;;  %v1638_v43 = vpop.f32.mrf.mxu0  ;;  %v2150_v44 = vpop.f32.mrf.mxu1 }
 0x1a7   : > { %4305 = vst.msk [vmem:[%s5797_s6 + $0x36c] sm:$0xf] %vm4085_vm2, %v5020_v37  ;;  %v5018_v45 = vpack.c.bf16 %v3022_v41, %v3022_v41  ;;  %v2899_v46 = vsel %vm2387_vm5, %v5303_v35, %v2643_v39  ;;  %vm2385_vm7 = vcmp.ge.f32.partialorder %v1638_v43, 0.0  ;;  %v2641_v47 = vmul.f32 0.2, %v1638_v43 }
 0x1a8   : > { %4175 = vst.msk [vmem:[%s5797_s6 + $0x164] sm:$0xf] %vm4085_vm2, %v4890_v40  ;;  %v4895_v48 = vpack.c.bf16 %v2899_v46, %v2899_v46  ;;  %v3027_v49 = vsel %vm2515_vm6, %v5431_v36, %v2771_v42  ;;  %vm2513_vm8 = vcmp.ge.f32.partialorder %v2150_v44, 0.0  ;;  %v2769_v50 = vmul.f32 0.2, %v2150_v44  ;;  %v5304_v51 = vpop.f32.mrf.mxu0  ;;  %v5432_v52 = vpop.f32.mrf.mxu1 }
 0x1a9   : > { %4303 = vst.msk [vmem:[%s5797_s6 + $0x364] sm:$0xf] %vm4085_vm2, %v5018_v45  ;;  %v5023_v53 = vpack.c.bf16 %v3027_v49, %v3027_v49  ;;  %v2897_v54 = vsel %vm2385_vm7, %v1638_v43, %v2641_v47  ;;  %vm2388_vm9 = vcmp.ge.f32.partialorder %v5304_v51, 0.0  ;;  %v2644_v55 = vmul.f32 0.2, %v5304_v51 }
 0x1aa   : > { %4180 = vst.msk [vmem:[%s5797_s6 + $0x178] sm:$0xf] %vm4085_vm2, %v4895_v48  ;;  %v4893_v56 = vpack.c.bf16 %v2897_v54, %v2897_v54  ;;  %v3025_v57 = vsel %vm2513_vm8, %v2150_v44, %v2769_v50  ;;  %vm2516_vm10 = vcmp.ge.f32.partialorder %v5432_v52, 0.0  ;;  %v2772_v58 = vmul.f32 0.2, %v5432_v52  ;;  %v1641_v59 = vpop.f32.mrf.mxu0  ;;  %v2153_v60 = vpop.f32.mrf.mxu1 }
 0x1ab   : > { %4308 = vst.msk [vmem:[%s5797_s6 + $0x378] sm:$0xf] %vm4085_vm2, %v5023_v53  ;;  %v5021_v61 = vpack.c.bf16 %v3025_v57, %v3025_v57  ;;  %v2900_v62 = vsel %vm2388_vm9, %v5304_v51, %v2644_v55  ;;  %vm2386_vm11 = vcmp.ge.f32.partialorder %v1641_v59, 0.0  ;;  %v2642_v63 = vmul.f32 0.2, %v1641_v59 }
 0x1ac   : > { %4178 = vst.msk [vmem:[%s5797_s6 + $0x170] sm:$0xf] %vm4085_vm2, %v4893_v56  ;;  %v4896_v0 = vpack.c.bf16 %v2900_v62, %v2900_v62  ;;  %v3028_v1 = vsel %vm2516_vm10, %v5432_v52, %v2772_v58  ;;  %vm2514_vm12 = vcmp.ge.f32.partialorder %v2153_v60, 0.0  ;;  %v2770_v2 = vmul.f32 0.2, %v2153_v60  ;;  %v5307_v3 = vpop.f32.mrf.mxu0  ;;  %v5435_v4 = vpop.f32.mrf.mxu1 }
 0x1ad   : > { %4306 = vst.msk [vmem:[%s5797_s6 + $0x370] sm:$0xf] %vm4085_vm2, %v5021_v61  ;;  %v5024_v5 = vpack.c.bf16 %v3028_v1, %v3028_v1  ;;  %v2898_v6 = vsel %vm2386_vm11, %v1641_v59, %v2642_v63  ;;  %vm2391_vm13 = vcmp.ge.f32.partialorder %v5307_v3, 0.0  ;;  %v2647_v7 = vmul.f32 0.2, %v5307_v3 }
 0x1ae   : > { %4181 = vst.msk [vmem:[%s5797_s6 + $0x17c] sm:$0xf] %vm4085_vm2, %v4896_v0  ;;  %v4894_v8 = vpack.c.bf16 %v2898_v6, %v2898_v6  ;;  %v3026_v9 = vsel %vm2514_vm12, %v2153_v60, %v2770_v2  ;;  %vm2519_vm14 = vcmp.ge.f32.partialorder %v5435_v4, 0.0  ;;  %v2775_v10 = vmul.f32 0.2, %v5435_v4  ;;  %v1654_v11 = vpop.f32.mrf.mxu0  ;;  %v2166_v12 = vpop.f32.mrf.mxu1 }
 0x1af   : > { %4309 = vst.msk [vmem:[%s5797_s6 + $0x37c] sm:$0xf] %vm4085_vm2, %v5024_v5  ;;  %v5022_v13 = vpack.c.bf16 %v3026_v9, %v3026_v9  ;;  %v2903_v14 = vsel %vm2391_vm13, %v5307_v3, %v2647_v7  ;;  %vm2389_vm15 = vcmp.ge.f32.partialorder %v1654_v11, 0.0  ;;  %v2645_v15 = vmul.f32 0.2, %v1654_v11 }
 0x1b0   : > { %4179 = vst.msk [vmem:[%s5797_s6 + $0x174] sm:$0xf] %vm4085_vm2, %v4894_v8  ;;  %v4899_v16 = vpack.c.bf16 %v2903_v14, %v2903_v14  ;;  %v3031_v17 = vsel %vm2519_vm14, %v5435_v4, %v2775_v10  ;;  %vm2517_vm0 = vcmp.ge.f32.partialorder %v2166_v12, 0.0  ;;  %v2773_v18 = vmul.f32 0.2, %v2166_v12  ;;  %v5308_v19 = vpop.f32.mrf.mxu0  ;;  %v5436_v20 = vpop.f32.mrf.mxu1 }
 0x1b1   : > { %4307 = vst.msk [vmem:[%s5797_s6 + $0x374] sm:$0xf] %vm4085_vm2, %v5022_v13  ;;  %v5027_v21 = vpack.c.bf16 %v3031_v17, %v3031_v17  ;;  %v2901_v22 = vsel %vm2389_vm15, %v1654_v11, %v2645_v15  ;;  %vm2392_vm1 = vcmp.ge.f32.partialorder %v5308_v19, 0.0  ;;  %v2648_v23 = vmul.f32 0.2, %v5308_v19 }
 0x1b2   : > { %4184 = vst.msk [vmem:[%s5797_s6 + $0x188] sm:$0xf] %vm4085_vm2, %v4899_v16  ;;  %v4897_v24 = vpack.c.bf16 %v2901_v22, %v2901_v22  ;;  %v3029_v25 = vsel %vm2517_vm0, %v2166_v12, %v2773_v18  ;;  %vm2520_vm3 = vcmp.ge.f32.partialorder %v5436_v20, 0.0  ;;  %v2776_v26 = vmul.f32 0.2, %v5436_v20  ;;  %v1657_v27 = vpop.f32.mrf.mxu0  ;;  %v2169_v28 = vpop.f32.mrf.mxu1 }
 0x1b3   : > { %4312 = vst.msk [vmem:[%s5797_s6 + $0x388] sm:$0xf] %vm4085_vm2, %v5027_v21  ;;  %v5025_v29 = vpack.c.bf16 %v3029_v25, %v3029_v25  ;;  %v2904_v30 = vsel %vm2392_vm1, %v5308_v19, %v2648_v23  ;;  %vm2390_vm4 = vcmp.ge.f32.partialorder %v1657_v27, 0.0  ;;  %v2646_v31 = vmul.f32 0.2, %v1657_v27 }
 0x1b4   : > { %4182 = vst.msk [vmem:[%s5797_s6 + $0x180] sm:$0xf] %vm4085_vm2, %v4897_v24  ;;  %v4900_v32 = vpack.c.bf16 %v2904_v30, %v2904_v30  ;;  %v3032_v33 = vsel %vm2520_vm3, %v5436_v20, %v2776_v26  ;;  %vm2518_vm5 = vcmp.ge.f32.partialorder %v2169_v28, 0.0  ;;  %v2774_v34 = vmul.f32 0.2, %v2169_v28  ;;  %v5311_v35 = vpop.f32.mrf.mxu0  ;;  %v5439_v36 = vpop.f32.mrf.mxu1 }
 0x1b5   : > { %4310 = vst.msk [vmem:[%s5797_s6 + $0x380] sm:$0xf] %vm4085_vm2, %v5025_v29  ;;  %v5028_v37 = vpack.c.bf16 %v3032_v33, %v3032_v33  ;;  %v2902_v38 = vsel %vm2390_vm4, %v1657_v27, %v2646_v31  ;;  %vm2395_vm6 = vcmp.ge.f32.partialorder %v5311_v35, 0.0  ;;  %v2651_v39 = vmul.f32 0.2, %v5311_v35 }
 0x1b6   : > { %4185 = vst.msk [vmem:[%s5797_s6 + $0x18c] sm:$0xf] %vm4085_vm2, %v4900_v32  ;;  %v4898_v40 = vpack.c.bf16 %v2902_v38, %v2902_v38  ;;  %v3030_v41 = vsel %vm2518_vm5, %v2169_v28, %v2774_v34  ;;  %vm2523_vm7 = vcmp.ge.f32.partialorder %v5439_v36, 0.0  ;;  %v2779_v42 = vmul.f32 0.2, %v5439_v36  ;;  %v1670_v43 = vpop.f32.mrf.mxu0  ;;  %v2182_v44 = vpop.f32.mrf.mxu1 }
 0x1b7   : > { %4313 = vst.msk [vmem:[%s5797_s6 + $0x38c] sm:$0xf] %vm4085_vm2, %v5028_v37  ;;  %v5026_v45 = vpack.c.bf16 %v3030_v41, %v3030_v41  ;;  %v2907_v46 = vsel %vm2395_vm6, %v5311_v35, %v2651_v39  ;;  %vm2393_vm8 = vcmp.ge.f32.partialorder %v1670_v43, 0.0  ;;  %v2649_v47 = vmul.f32 0.2, %v1670_v43 }
 0x1b8   : > { %4183 = vst.msk [vmem:[%s5797_s6 + $0x184] sm:$0xf] %vm4085_vm2, %v4898_v40  ;;  %v4903_v48 = vpack.c.bf16 %v2907_v46, %v2907_v46  ;;  %v3035_v49 = vsel %vm2523_vm7, %v5439_v36, %v2779_v42  ;;  %vm2521_vm9 = vcmp.ge.f32.partialorder %v2182_v44, 0.0  ;;  %v2777_v50 = vmul.f32 0.2, %v2182_v44  ;;  %v5312_v51 = vpop.f32.mrf.mxu0  ;;  %v5440_v52 = vpop.f32.mrf.mxu1 }
 0x1b9   : > { %4311 = vst.msk [vmem:[%s5797_s6 + $0x384] sm:$0xf] %vm4085_vm2, %v5026_v45  ;;  %v5031_v53 = vpack.c.bf16 %v3035_v49, %v3035_v49  ;;  %v2905_v54 = vsel %vm2393_vm8, %v1670_v43, %v2649_v47  ;;  %vm2396_vm10 = vcmp.ge.f32.partialorder %v5312_v51, 0.0  ;;  %v2652_v55 = vmul.f32 0.2, %v5312_v51 }
 0x1ba   : > { %4188 = vst.msk [vmem:[%s5797_s6 + $0x198] sm:$0xf] %vm4085_vm2, %v4903_v48  ;;  %v4901_v56 = vpack.c.bf16 %v2905_v54, %v2905_v54  ;;  %v3033_v57 = vsel %vm2521_vm9, %v2182_v44, %v2777_v50  ;;  %vm2524_vm11 = vcmp.ge.f32.partialorder %v5440_v52, 0.0  ;;  %v2780_v58 = vmul.f32 0.2, %v5440_v52  ;;  %v1673_v59 = vpop.f32.mrf.mxu0  ;;  %v2185_v60 = vpop.f32.mrf.mxu1 }
 0x1bb   : > { %4316 = vst.msk [vmem:[%s5797_s6 + $0x398] sm:$0xf] %vm4085_vm2, %v5031_v53  ;;  %v5029_v61 = vpack.c.bf16 %v3033_v57, %v3033_v57  ;;  %v2908_v62 = vsel %vm2396_vm10, %v5312_v51, %v2652_v55  ;;  %vm2394_vm12 = vcmp.ge.f32.partialorder %v1673_v59, 0.0  ;;  %v2650_v63 = vmul.f32 0.2, %v1673_v59 }
 0x1bc   : > { %4186 = vst.msk [vmem:[%s5797_s6 + $0x190] sm:$0xf] %vm4085_vm2, %v4901_v56  ;;  %v4904_v0 = vpack.c.bf16 %v2908_v62, %v2908_v62  ;;  %v3036_v1 = vsel %vm2524_vm11, %v5440_v52, %v2780_v58  ;;  %vm2522_vm13 = vcmp.ge.f32.partialorder %v2185_v60, 0.0  ;;  %v2778_v2 = vmul.f32 0.2, %v2185_v60  ;;  %v5315_v3 = vpop.f32.mrf.mxu0  ;;  %v5443_v4 = vpop.f32.mrf.mxu1 }
 0x1bd   : > { %4314 = vst.msk [vmem:[%s5797_s6 + $0x390] sm:$0xf] %vm4085_vm2, %v5029_v61  ;;  %v5032_v5 = vpack.c.bf16 %v3036_v1, %v3036_v1  ;;  %v2906_v6 = vsel %vm2394_vm12, %v1673_v59, %v2650_v63  ;;  %vm2399_vm14 = vcmp.ge.f32.partialorder %v5315_v3, 0.0  ;;  %v2655_v7 = vmul.f32 0.2, %v5315_v3 }
 0x1be   : > { %4189 = vst.msk [vmem:[%s5797_s6 + $0x19c] sm:$0xf] %vm4085_vm2, %v4904_v0  ;;  %v4902_v8 = vpack.c.bf16 %v2906_v6, %v2906_v6  ;;  %v3034_v9 = vsel %vm2522_vm13, %v2185_v60, %v2778_v2  ;;  %vm2527_vm15 = vcmp.ge.f32.partialorder %v5443_v4, 0.0  ;;  %v2783_v10 = vmul.f32 0.2, %v5443_v4  ;;  %v1686_v11 = vpop.f32.mrf.mxu0  ;;  %v2198_v12 = vpop.f32.mrf.mxu1 }
 0x1bf   : > { %4317 = vst.msk [vmem:[%s5797_s6 + $0x39c] sm:$0xf] %vm4085_vm2, %v5032_v5  ;;  %v5030_v13 = vpack.c.bf16 %v3034_v9, %v3034_v9  ;;  %v2911_v14 = vsel %vm2399_vm14, %v5315_v3, %v2655_v7  ;;  %vm2397_vm0 = vcmp.ge.f32.partialorder %v1686_v11, 0.0  ;;  %v2653_v15 = vmul.f32 0.2, %v1686_v11 }
 0x1c0   : > { %4187 = vst.msk [vmem:[%s5797_s6 + $0x194] sm:$0xf] %vm4085_vm2, %v4902_v8  ;;  %v4907_v16 = vpack.c.bf16 %v2911_v14, %v2911_v14  ;;  %v3039_v17 = vsel %vm2527_vm15, %v5443_v4, %v2783_v10  ;;  %vm2525_vm1 = vcmp.ge.f32.partialorder %v2198_v12, 0.0  ;;  %v2781_v18 = vmul.f32 0.2, %v2198_v12  ;;  %v5316_v19 = vpop.f32.mrf.mxu0  ;;  %v5444_v20 = vpop.f32.mrf.mxu1 }
 0x1c1   : > { %4315 = vst.msk [vmem:[%s5797_s6 + $0x394] sm:$0xf] %vm4085_vm2, %v5030_v13  ;;  %v5035_v21 = vpack.c.bf16 %v3039_v17, %v3039_v17  ;;  %v2909_v22 = vsel %vm2397_vm0, %v1686_v11, %v2653_v15  ;;  %vm2400_vm3 = vcmp.ge.f32.partialorder %v5316_v19, 0.0  ;;  %v2656_v23 = vmul.f32 0.2, %v5316_v19 }
 0x1c2   : > { %4192 = vst.msk [vmem:[%s5797_s6 + $0x1a8] sm:$0xf] %vm4085_vm2, %v4907_v16  ;;  %v4905_v24 = vpack.c.bf16 %v2909_v22, %v2909_v22  ;;  %v3037_v25 = vsel %vm2525_vm1, %v2198_v12, %v2781_v18  ;;  %vm2528_vm4 = vcmp.ge.f32.partialorder %v5444_v20, 0.0  ;;  %v2784_v26 = vmul.f32 0.2, %v5444_v20  ;;  %v1689_v27 = vpop.f32.mrf.mxu0  ;;  %v2201_v28 = vpop.f32.mrf.mxu1 }
 0x1c3   : > { %4320 = vst.msk [vmem:[%s5797_s6 + $0x3a8] sm:$0xf] %vm4085_vm2, %v5035_v21  ;;  %v5033_v29 = vpack.c.bf16 %v3037_v25, %v3037_v25  ;;  %v2912_v30 = vsel %vm2400_vm3, %v5316_v19, %v2656_v23  ;;  %vm2398_vm5 = vcmp.ge.f32.partialorder %v1689_v27, 0.0  ;;  %v2654_v31 = vmul.f32 0.2, %v1689_v27 }
 0x1c4   : > { %4190 = vst.msk [vmem:[%s5797_s6 + $0x1a0] sm:$0xf] %vm4085_vm2, %v4905_v24  ;;  %v4908_v32 = vpack.c.bf16 %v2912_v30, %v2912_v30  ;;  %v3040_v33 = vsel %vm2528_vm4, %v5444_v20, %v2784_v26  ;;  %vm2526_vm6 = vcmp.ge.f32.partialorder %v2201_v28, 0.0  ;;  %v2782_v34 = vmul.f32 0.2, %v2201_v28  ;;  %v5319_v35 = vpop.f32.mrf.mxu0  ;;  %v5447_v36 = vpop.f32.mrf.mxu1 }
 0x1c5   : > { %4318 = vst.msk [vmem:[%s5797_s6 + $0x3a0] sm:$0xf] %vm4085_vm2, %v5033_v29  ;;  %v5036_v37 = vpack.c.bf16 %v3040_v33, %v3040_v33  ;;  %v2910_v38 = vsel %vm2398_vm5, %v1689_v27, %v2654_v31  ;;  %vm2403_vm7 = vcmp.ge.f32.partialorder %v5319_v35, 0.0  ;;  %v2659_v39 = vmul.f32 0.2, %v5319_v35 }
 0x1c6   : > { %4193 = vst.msk [vmem:[%s5797_s6 + $0x1ac] sm:$0xf] %vm4085_vm2, %v4908_v32  ;;  %v4906_v40 = vpack.c.bf16 %v2910_v38, %v2910_v38  ;;  %v3038_v41 = vsel %vm2526_vm6, %v2201_v28, %v2782_v34  ;;  %vm2531_vm8 = vcmp.ge.f32.partialorder %v5447_v36, 0.0  ;;  %v2787_v42 = vmul.f32 0.2, %v5447_v36  ;;  %v1702_v43 = vpop.f32.mrf.mxu0  ;;  %v2214_v44 = vpop.f32.mrf.mxu1 }
 0x1c7   : > { %4321 = vst.msk [vmem:[%s5797_s6 + $0x3ac] sm:$0xf] %vm4085_vm2, %v5036_v37  ;;  %v5034_v45 = vpack.c.bf16 %v3038_v41, %v3038_v41  ;;  %v2915_v46 = vsel %vm2403_vm7, %v5319_v35, %v2659_v39  ;;  %vm2401_vm9 = vcmp.ge.f32.partialorder %v1702_v43, 0.0  ;;  %v2657_v47 = vmul.f32 0.2, %v1702_v43 }
 0x1c8   : > { %4191 = vst.msk [vmem:[%s5797_s6 + $0x1a4] sm:$0xf] %vm4085_vm2, %v4906_v40  ;;  %v4911_v48 = vpack.c.bf16 %v2915_v46, %v2915_v46  ;;  %v3043_v49 = vsel %vm2531_vm8, %v5447_v36, %v2787_v42  ;;  %vm2529_vm10 = vcmp.ge.f32.partialorder %v2214_v44, 0.0  ;;  %v2785_v50 = vmul.f32 0.2, %v2214_v44  ;;  %v5320_v51 = vpop.f32.mrf.mxu0  ;;  %v5448_v52 = vpop.f32.mrf.mxu1 }
 0x1c9   : > { %4319 = vst.msk [vmem:[%s5797_s6 + $0x3a4] sm:$0xf] %vm4085_vm2, %v5034_v45  ;;  %v5039_v53 = vpack.c.bf16 %v3043_v49, %v3043_v49  ;;  %v2913_v54 = vsel %vm2401_vm9, %v1702_v43, %v2657_v47  ;;  %vm2404_vm11 = vcmp.ge.f32.partialorder %v5320_v51, 0.0  ;;  %v2660_v55 = vmul.f32 0.2, %v5320_v51 }
 0x1ca   : > { %4196 = vst.msk [vmem:[%s5797_s6 + $0x1b8] sm:$0xf] %vm4085_vm2, %v4911_v48  ;;  %v4909_v56 = vpack.c.bf16 %v2913_v54, %v2913_v54  ;;  %v3041_v57 = vsel %vm2529_vm10, %v2214_v44, %v2785_v50  ;;  %vm2532_vm12 = vcmp.ge.f32.partialorder %v5448_v52, 0.0  ;;  %v2788_v58 = vmul.f32 0.2, %v5448_v52  ;;  %v1705_v59 = vpop.f32.mrf.mxu0  ;;  %v2217_v60 = vpop.f32.mrf.mxu1 }
 0x1cb   : > { %4324 = vst.msk [vmem:[%s5797_s6 + $0x3b8] sm:$0xf] %vm4085_vm2, %v5039_v53  ;;  %v5037_v61 = vpack.c.bf16 %v3041_v57, %v3041_v57  ;;  %v2916_v62 = vsel %vm2404_vm11, %v5320_v51, %v2660_v55  ;;  %vm2402_vm13 = vcmp.ge.f32.partialorder %v1705_v59, 0.0  ;;  %v2658_v63 = vmul.f32 0.2, %v1705_v59 }
 0x1cc   : > { %4194 = vst.msk [vmem:[%s5797_s6 + $0x1b0] sm:$0xf] %vm4085_vm2, %v4909_v56  ;;  %v4912_v0 = vpack.c.bf16 %v2916_v62, %v2916_v62  ;;  %v3044_v1 = vsel %vm2532_vm12, %v5448_v52, %v2788_v58  ;;  %vm2530_vm14 = vcmp.ge.f32.partialorder %v2217_v60, 0.0  ;;  %v2786_v2 = vmul.f32 0.2, %v2217_v60  ;;  %v5323_v3 = vpop.f32.mrf.mxu0  ;;  %v5451_v4 = vpop.f32.mrf.mxu1 }
 0x1cd   : > { %4322 = vst.msk [vmem:[%s5797_s6 + $0x3b0] sm:$0xf] %vm4085_vm2, %v5037_v61  ;;  %v5040_v5 = vpack.c.bf16 %v3044_v1, %v3044_v1  ;;  %v2914_v6 = vsel %vm2402_vm13, %v1705_v59, %v2658_v63  ;;  %vm2407_vm15 = vcmp.ge.f32.partialorder %v5323_v3, 0.0  ;;  %v2663_v7 = vmul.f32 0.2, %v5323_v3 }
 0x1ce   : > { %4197 = vst.msk [vmem:[%s5797_s6 + $0x1bc] sm:$0xf] %vm4085_vm2, %v4912_v0  ;;  %v4910_v8 = vpack.c.bf16 %v2914_v6, %v2914_v6  ;;  %v3042_v9 = vsel %vm2530_vm14, %v2217_v60, %v2786_v2  ;;  %vm2535_vm0 = vcmp.ge.f32.partialorder %v5451_v4, 0.0  ;;  %v2791_v10 = vmul.f32 0.2, %v5451_v4  ;;  %v1718_v11 = vpop.f32.mrf.mxu0  ;;  %v2230_v12 = vpop.f32.mrf.mxu1 }
 0x1cf   : > { %4325 = vst.msk [vmem:[%s5797_s6 + $0x3bc] sm:$0xf] %vm4085_vm2, %v5040_v5  ;;  %v5038_v13 = vpack.c.bf16 %v3042_v9, %v3042_v9  ;;  %v2919_v14 = vsel %vm2407_vm15, %v5323_v3, %v2663_v7  ;;  %vm2405_vm1 = vcmp.ge.f32.partialorder %v1718_v11, 0.0  ;;  %v2661_v15 = vmul.f32 0.2, %v1718_v11 }
 0x1d0   : > { %4195 = vst.msk [vmem:[%s5797_s6 + $0x1b4] sm:$0xf] %vm4085_vm2, %v4910_v8  ;;  %v4915_v16 = vpack.c.bf16 %v2919_v14, %v2919_v14  ;;  %v3047_v17 = vsel %vm2535_vm0, %v5451_v4, %v2791_v10  ;;  %vm2533_vm3 = vcmp.ge.f32.partialorder %v2230_v12, 0.0  ;;  %v2789_v18 = vmul.f32 0.2, %v2230_v12  ;;  %v5324_v19 = vpop.f32.mrf.mxu0  ;;  %v5452_v20 = vpop.f32.mrf.mxu1 }
 0x1d1   : > { %4323 = vst.msk [vmem:[%s5797_s6 + $0x3b4] sm:$0xf] %vm4085_vm2, %v5038_v13  ;;  %v5043_v21 = vpack.c.bf16 %v3047_v17, %v3047_v17  ;;  %v2917_v22 = vsel %vm2405_vm1, %v1718_v11, %v2661_v15  ;;  %vm2408_vm4 = vcmp.ge.f32.partialorder %v5324_v19, 0.0  ;;  %v2664_v23 = vmul.f32 0.2, %v5324_v19 }
 0x1d2   : > { %4200 = vst.msk [vmem:[%s5797_s6 + $0x1c8] sm:$0xf] %vm4085_vm2, %v4915_v16  ;;  %v4913_v24 = vpack.c.bf16 %v2917_v22, %v2917_v22  ;;  %v3045_v25 = vsel %vm2533_vm3, %v2230_v12, %v2789_v18  ;;  %vm2536_vm5 = vcmp.ge.f32.partialorder %v5452_v20, 0.0  ;;  %v2792_v26 = vmul.f32 0.2, %v5452_v20  ;;  %v1721_v27 = vpop.f32.mrf.mxu0  ;;  %v2233_v28 = vpop.f32.mrf.mxu1 }
 0x1d3   : > { %4328 = vst.msk [vmem:[%s5797_s6 + $0x3c8] sm:$0xf] %vm4085_vm2, %v5043_v21  ;;  %v5041_v29 = vpack.c.bf16 %v3045_v25, %v3045_v25  ;;  %v2920_v30 = vsel %vm2408_vm4, %v5324_v19, %v2664_v23  ;;  %vm2406_vm6 = vcmp.ge.f32.partialorder %v1721_v27, 0.0  ;;  %v2662_v31 = vmul.f32 0.2, %v1721_v27 }
 0x1d4   : > { %4198 = vst.msk [vmem:[%s5797_s6 + $0x1c0] sm:$0xf] %vm4085_vm2, %v4913_v24  ;;  %v4916_v32 = vpack.c.bf16 %v2920_v30, %v2920_v30  ;;  %v3048_v33 = vsel %vm2536_vm5, %v5452_v20, %v2792_v26  ;;  %vm2534_vm7 = vcmp.ge.f32.partialorder %v2233_v28, 0.0  ;;  %v2790_v34 = vmul.f32 0.2, %v2233_v28  ;;  %v5327_v35 = vpop.f32.mrf.mxu0  ;;  %v5455_v36 = vpop.f32.mrf.mxu1 }
 0x1d5   : > { %4326 = vst.msk [vmem:[%s5797_s6 + $0x3c0] sm:$0xf] %vm4085_vm2, %v5041_v29  ;;  %v5044_v37 = vpack.c.bf16 %v3048_v33, %v3048_v33  ;;  %v2918_v38 = vsel %vm2406_vm6, %v1721_v27, %v2662_v31  ;;  %vm2411_vm8 = vcmp.ge.f32.partialorder %v5327_v35, 0.0  ;;  %v2667_v39 = vmul.f32 0.2, %v5327_v35 }
 0x1d6   : > { %4201 = vst.msk [vmem:[%s5797_s6 + $0x1cc] sm:$0xf] %vm4085_vm2, %v4916_v32  ;;  %v4914_v40 = vpack.c.bf16 %v2918_v38, %v2918_v38  ;;  %v3046_v41 = vsel %vm2534_vm7, %v2233_v28, %v2790_v34  ;;  %vm2539_vm9 = vcmp.ge.f32.partialorder %v5455_v36, 0.0  ;;  %v2795_v42 = vmul.f32 0.2, %v5455_v36  ;;  %v1734_v43 = vpop.f32.mrf.mxu0  ;;  %v2246_v44 = vpop.f32.mrf.mxu1 }
 0x1d7   : > { %4329 = vst.msk [vmem:[%s5797_s6 + $0x3cc] sm:$0xf] %vm4085_vm2, %v5044_v37  ;;  %v5042_v45 = vpack.c.bf16 %v3046_v41, %v3046_v41  ;;  %v2923_v46 = vsel %vm2411_vm8, %v5327_v35, %v2667_v39  ;;  %vm2409_vm10 = vcmp.ge.f32.partialorder %v1734_v43, 0.0  ;;  %v2665_v47 = vmul.f32 0.2, %v1734_v43 }
 0x1d8   : > { %4199 = vst.msk [vmem:[%s5797_s6 + $0x1c4] sm:$0xf] %vm4085_vm2, %v4914_v40  ;;  %v4919_v48 = vpack.c.bf16 %v2923_v46, %v2923_v46  ;;  %v3051_v49 = vsel %vm2539_vm9, %v5455_v36, %v2795_v42  ;;  %vm2537_vm11 = vcmp.ge.f32.partialorder %v2246_v44, 0.0  ;;  %v2793_v50 = vmul.f32 0.2, %v2246_v44  ;;  %v5328_v51 = vpop.f32.mrf.mxu0  ;;  %v5456_v52 = vpop.f32.mrf.mxu1 }
 0x1d9   : > { %4327 = vst.msk [vmem:[%s5797_s6 + $0x3c4] sm:$0xf] %vm4085_vm2, %v5042_v45  ;;  %v5047_v53 = vpack.c.bf16 %v3051_v49, %v3051_v49  ;;  %v2921_v54 = vsel %vm2409_vm10, %v1734_v43, %v2665_v47  ;;  %vm2412_vm12 = vcmp.ge.f32.partialorder %v5328_v51, 0.0  ;;  %v2668_v55 = vmul.f32 0.2, %v5328_v51 }
 0x1da   : > { %4204 = vst.msk [vmem:[%s5797_s6 + $0x1d8] sm:$0xf] %vm4085_vm2, %v4919_v48  ;;  %v4917_v56 = vpack.c.bf16 %v2921_v54, %v2921_v54  ;;  %v3049_v57 = vsel %vm2537_vm11, %v2246_v44, %v2793_v50  ;;  %vm2540_vm13 = vcmp.ge.f32.partialorder %v5456_v52, 0.0  ;;  %v2796_v58 = vmul.f32 0.2, %v5456_v52  ;;  %v1737_v59 = vpop.f32.mrf.mxu0  ;;  %v2249_v60 = vpop.f32.mrf.mxu1 }
 0x1db   : > { %4332 = vst.msk [vmem:[%s5797_s6 + $0x3d8] sm:$0xf] %vm4085_vm2, %v5047_v53  ;;  %v5045_v61 = vpack.c.bf16 %v3049_v57, %v3049_v57  ;;  %v2924_v62 = vsel %vm2412_vm12, %v5328_v51, %v2668_v55  ;;  %vm2410_vm14 = vcmp.ge.f32.partialorder %v1737_v59, 0.0  ;;  %v2666_v63 = vmul.f32 0.2, %v1737_v59 }
 0x1dc   : > { %4202 = vst.msk [vmem:[%s5797_s6 + $0x1d0] sm:$0xf] %vm4085_vm2, %v4917_v56  ;;  %v4920_v0 = vpack.c.bf16 %v2924_v62, %v2924_v62  ;;  %v3052_v1 = vsel %vm2540_vm13, %v5456_v52, %v2796_v58  ;;  %vm2538_vm15 = vcmp.ge.f32.partialorder %v2249_v60, 0.0  ;;  %v2794_v2 = vmul.f32 0.2, %v2249_v60  ;;  %v5331_v3 = vpop.f32.mrf.mxu0  ;;  %v5459_v4 = vpop.f32.mrf.mxu1 }
 0x1dd   : > { %4330 = vst.msk [vmem:[%s5797_s6 + $0x3d0] sm:$0xf] %vm4085_vm2, %v5045_v61  ;;  %v5048_v5 = vpack.c.bf16 %v3052_v1, %v3052_v1  ;;  %v2922_v6 = vsel %vm2410_vm14, %v1737_v59, %v2666_v63  ;;  %vm2415_vm0 = vcmp.ge.f32.partialorder %v5331_v3, 0.0  ;;  %v2671_v7 = vmul.f32 0.2, %v5331_v3 }
 0x1de   : > { %4205 = vst.msk [vmem:[%s5797_s6 + $0x1dc] sm:$0xf] %vm4085_vm2, %v4920_v0  ;;  %v4918_v8 = vpack.c.bf16 %v2922_v6, %v2922_v6  ;;  %v3050_v9 = vsel %vm2538_vm15, %v2249_v60, %v2794_v2  ;;  %vm2543_vm1 = vcmp.ge.f32.partialorder %v5459_v4, 0.0  ;;  %v2799_v10 = vmul.f32 0.2, %v5459_v4  ;;  %v1750_v11 = vpop.f32.mrf.mxu0  ;;  %v2262_v12 = vpop.f32.mrf.mxu1 }
 0x1df   : > { %4333 = vst.msk [vmem:[%s5797_s6 + $0x3dc] sm:$0xf] %vm4085_vm2, %v5048_v5  ;;  %v5046_v13 = vpack.c.bf16 %v3050_v9, %v3050_v9  ;;  %v2927_v14 = vsel %vm2415_vm0, %v5331_v3, %v2671_v7  ;;  %vm2413_vm3 = vcmp.ge.f32.partialorder %v1750_v11, 0.0  ;;  %v2669_v15 = vmul.f32 0.2, %v1750_v11 }
 0x1e0   : > { %4203 = vst.msk [vmem:[%s5797_s6 + $0x1d4] sm:$0xf] %vm4085_vm2, %v4918_v8  ;;  %v4923_v16 = vpack.c.bf16 %v2927_v14, %v2927_v14  ;;  %v3055_v17 = vsel %vm2543_vm1, %v5459_v4, %v2799_v10  ;;  %vm2541_vm4 = vcmp.ge.f32.partialorder %v2262_v12, 0.0  ;;  %v2797_v18 = vmul.f32 0.2, %v2262_v12  ;;  %v5332_v19 = vpop.f32.mrf.mxu0  ;;  %v5460_v20 = vpop.f32.mrf.mxu1 }
 0x1e1   : > { %4331 = vst.msk [vmem:[%s5797_s6 + $0x3d4] sm:$0xf] %vm4085_vm2, %v5046_v13  ;;  %v5051_v21 = vpack.c.bf16 %v3055_v17, %v3055_v17  ;;  %v2925_v22 = vsel %vm2413_vm3, %v1750_v11, %v2669_v15  ;;  %vm2416_vm5 = vcmp.ge.f32.partialorder %v5332_v19, 0.0  ;;  %v2672_v23 = vmul.f32 0.2, %v5332_v19 }
 0x1e2   : > { %4208 = vst.msk [vmem:[%s5797_s6 + $0x1e8] sm:$0xf] %vm4085_vm2, %v4923_v16  ;;  %v4921_v24 = vpack.c.bf16 %v2925_v22, %v2925_v22  ;;  %v3053_v25 = vsel %vm2541_vm4, %v2262_v12, %v2797_v18  ;;  %vm2544_vm6 = vcmp.ge.f32.partialorder %v5460_v20, 0.0  ;;  %v2800_v26 = vmul.f32 0.2, %v5460_v20  ;;  %v1753_v27 = vpop.f32.mrf.mxu0  ;;  %v2265_v28 = vpop.f32.mrf.mxu1 }
 0x1e3   : > { %4336 = vst.msk [vmem:[%s5797_s6 + $0x3e8] sm:$0xf] %vm4085_vm2, %v5051_v21  ;;  %v5049_v29 = vpack.c.bf16 %v3053_v25, %v3053_v25  ;;  %v2928_v30 = vsel %vm2416_vm5, %v5332_v19, %v2672_v23  ;;  %vm2414_vm7 = vcmp.ge.f32.partialorder %v1753_v27, 0.0  ;;  %v2670_v31 = vmul.f32 0.2, %v1753_v27 }
 0x1e4   : > { %4206 = vst.msk [vmem:[%s5797_s6 + $0x1e0] sm:$0xf] %vm4085_vm2, %v4921_v24  ;;  %v4924_v32 = vpack.c.bf16 %v2928_v30, %v2928_v30  ;;  %v3056_v33 = vsel %vm2544_vm6, %v5460_v20, %v2800_v26  ;;  %vm2542_vm8 = vcmp.ge.f32.partialorder %v2265_v28, 0.0  ;;  %v2798_v34 = vmul.f32 0.2, %v2265_v28  ;;  %v5335_v35 = vpop.f32.mrf.mxu0  ;;  %v5463_v36 = vpop.f32.mrf.mxu1 }
 0x1e5   : > { %4334 = vst.msk [vmem:[%s5797_s6 + $0x3e0] sm:$0xf] %vm4085_vm2, %v5049_v29  ;;  %v5052_v37 = vpack.c.bf16 %v3056_v33, %v3056_v33  ;;  %v2926_v38 = vsel %vm2414_vm7, %v1753_v27, %v2670_v31  ;;  %vm2419_vm9 = vcmp.ge.f32.partialorder %v5335_v35, 0.0  ;;  %v2675_v39 = vmul.f32 0.2, %v5335_v35 }
 0x1e6   : > { %4209 = vst.msk [vmem:[%s5797_s6 + $0x1ec] sm:$0xf] %vm4085_vm2, %v4924_v32  ;;  %v4922_v40 = vpack.c.bf16 %v2926_v38, %v2926_v38  ;;  %v3054_v41 = vsel %vm2542_vm8, %v2265_v28, %v2798_v34  ;;  %vm2547_vm10 = vcmp.ge.f32.partialorder %v5463_v36, 0.0  ;;  %v2803_v42 = vmul.f32 0.2, %v5463_v36  ;;  %v1766_v43 = vpop.f32.mrf.mxu0  ;;  %v2278_v44 = vpop.f32.mrf.mxu1 }
 0x1e7   : > { %4337 = vst.msk [vmem:[%s5797_s6 + $0x3ec] sm:$0xf] %vm4085_vm2, %v5052_v37  ;;  %v5050_v45 = vpack.c.bf16 %v3054_v41, %v3054_v41  ;;  %v2931_v46 = vsel %vm2419_vm9, %v5335_v35, %v2675_v39  ;;  %vm2417_vm11 = vcmp.ge.f32.partialorder %v1766_v43, 0.0  ;;  %v2673_v47 = vmul.f32 0.2, %v1766_v43 }
 0x1e8   : > { %4207 = vst.msk [vmem:[%s5797_s6 + $0x1e4] sm:$0xf] %vm4085_vm2, %v4922_v40  ;;  %v4927_v48 = vpack.c.bf16 %v2931_v46, %v2931_v46  ;;  %v3059_v49 = vsel %vm2547_vm10, %v5463_v36, %v2803_v42  ;;  %vm2545_vm12 = vcmp.ge.f32.partialorder %v2278_v44, 0.0  ;;  %v2801_v50 = vmul.f32 0.2, %v2278_v44  ;;  %v5336_v51 = vpop.f32.mrf.mxu0  ;;  %v5464_v52 = vpop.f32.mrf.mxu1 }
 0x1e9   : > { %4335 = vst.msk [vmem:[%s5797_s6 + $0x3e4] sm:$0xf] %vm4085_vm2, %v5050_v45  ;;  %v5055_v53 = vpack.c.bf16 %v3059_v49, %v3059_v49  ;;  %v2929_v54 = vsel %vm2417_vm11, %v1766_v43, %v2673_v47  ;;  %vm2420_vm13 = vcmp.ge.f32.partialorder %v5336_v51, 0.0  ;;  %v2676_v55 = vmul.f32 0.2, %v5336_v51 }
 0x1ea   : > { %4212 = vst.msk [vmem:[%s5797_s6 + $0x1f8] sm:$0xf] %vm4085_vm2, %v4927_v48  ;;  %v4925_v56 = vpack.c.bf16 %v2929_v54, %v2929_v54  ;;  %v3057_v57 = vsel %vm2545_vm12, %v2278_v44, %v2801_v50  ;;  %vm2548_vm14 = vcmp.ge.f32.partialorder %v5464_v52, 0.0  ;;  %v2804_v58 = vmul.f32 0.2, %v5464_v52  ;;  %v1769_v59 = vpop.f32.mrf.mxu0  ;;  %v2281_v60 = vpop.f32.mrf.mxu1 }
 0x1eb   : > { %4340 = vst.msk [vmem:[%s5797_s6 + $0x3f8] sm:$0xf] %vm4085_vm2, %v5055_v53  ;;  %v5053_v61 = vpack.c.bf16 %v3057_v57, %v3057_v57  ;;  %v2932_v62 = vsel %vm2420_vm13, %v5336_v51, %v2676_v55  ;;  %vm2418_vm15 = vcmp.ge.f32.partialorder %v1769_v59, 0.0  ;;  %v2674_v63 = vmul.f32 0.2, %v1769_v59 }
 0x1ec   : > { %4210 = vst.msk [vmem:[%s5797_s6 + $0x1f0] sm:$0xf] %vm4085_vm2, %v4925_v56  ;;  %v4928_v0 = vpack.c.bf16 %v2932_v62, %v2932_v62  ;;  %v3060_v1 = vsel %vm2548_vm14, %v5464_v52, %v2804_v58  ;;  %vm2546_vm0 = vcmp.ge.f32.partialorder %v2281_v60, 0.0  ;;  %v2802_v2 = vmul.f32 0.2, %v2281_v60 }
 0x1ed   : > { %4338 = vst.msk [vmem:[%s5797_s6 + $0x3f0] sm:$0xf] %vm4085_vm2, %v5053_v61  ;;  %v5056_v3 = vpack.c.bf16 %v3060_v1, %v3060_v1  ;;  %v2930_v4 = vsel %vm2418_vm15, %v1769_v59, %v2674_v63 }
 0x1ee   : > { %4213 = vst.msk [vmem:[%s5797_s6 + $0x1fc] sm:$0xf] %vm4085_vm2, %v4928_v0  ;;  %v4926_v5 = vpack.c.bf16 %v2930_v4, %v2930_v4  ;;  %v3058_v6 = vsel %vm2546_vm0, %v2281_v60, %v2802_v2 }
 0x1ef   : > { %4341 = vst.msk [vmem:[%s5797_s6 + $0x3fc] sm:$0xf] %vm4085_vm2, %v5056_v3  ;;  %v5054_v7 = vpack.c.bf16 %v3058_v6, %v3058_v6 }
 0x1f0   : > { %4211 = vst.msk [vmem:[%s5797_s6 + $0x1f4] sm:$0xf] %vm4085_vm2, %v4926_v5 }
 0x1f1   : > { %4339 = vst.msk [vmem:[%s5797_s6 + $0x3f4] sm:$0xf] %vm4085_vm2, %v5054_v7 }
 0x1f2 PF: > { %s12_s9 = sadd.s32 1, %s5631_s9  }
 0x1f3   : > { %p9_p4 = scmp.ge.s32.totalorder %s12_s9, 4  }
 0x1f5   :  { %11 = sbr.rel (!%p9_p4) target bundleno = 1 (0x1), region = 58 }

// kernel: sprite_classifier_forward.3
= control target key start
LH: loop header
LB: loop body
LE: loop exit
PB: predicated region body
PF: predicated region fallthrough
CT: control target
= control target key end

     0   :  { %vm5061_vm0 = vcmask 130048   ;;  %vm5059_vm1 = vmmov 0   ;;  %s5039_s1 = inlined_call_operand.vmem [shape: bf16[256,16], index: 1, kind: input, shape index: {}]   ;;  %s5040_s0 = inlined_call_operand.vmem [shape: bf16[256,256], index: 0, kind: input, shape index: {}]   ;;  %s5041_s4 = inlined_call_operand.vmem [shape: bf16[256,128], index: 4, kind: input, shape index: {}]   ;;  %s5042_s2 = inlined_call_operand.vmem [shape: f32[1,16], index: 2, kind: input, shape index: {}]   ;;  %s5043_s3 = inlined_call_operand.vmem [shape: f32[1,16], index: 3, kind: input, shape index: {}]   ;;  %s5044_s8 = inlined_call_operand.vmem [shape: bf16[128,256], index: 8, kind: input, shape index: {}]   ;;  %s5045_s10 = inlined_call_operand.vmem [shape: bf16[64,256], index: 10, kind: input, shape index: {}]   ;;  %s5046_s5 = inlined_call_operand.vmem [shape: f32[1,128], index: 5, kind: input, shape index: {}]   ;;  %s5047_s6 = inlined_call_operand.vmem [shape: f32[1,128], index: 6, kind: input, shape index: {}]   ;;  %s5048_s7 = inlined_call_operand.vmem [shape: f32[1,128], index: 7, kind: input, shape index: {}]   ;;  %s5049_s9 = inlined_call_operand.vmem [shape: f32[1,256], index: 9, kind: input, shape index: {}]   ;;  %s5050_s11 = inlined_call_operand.vmem [shape: bf16[64,160], index: 11, kind: input, shape index: {}]   ;;  %s5051_s15 = inlined_call_operand.vmem [shape: bf16[160,25], index: 15, kind: input, shape index: {}]   ;;  %s5052_s12 = inlined_call_operand.vmem [shape: f32[1,160], index: 12, kind: input, shape index: {}]   ;;  %s5053_s13 = inlined_call_operand.vmem [shape: f32[1,160], index: 13, kind: input, shape index: {}]   ;;  %s5054_s14 = inlined_call_operand.vmem [shape: f32[1,160], index: 14, kind: input, shape index: {}]   ;;  %s5055_s16 = inlined_call_operand.vmem [shape: f32[1,25], index: 16, kind: input, shape index: {}]   ;;  %s5056_s17 = inlined_call_operand.vmem [shape: f32[2,25], index: 17, kind: output, shape index: {}]  }
   0x1   :  { %5062 = sst [smem:[#allocation2_spill]] %s5039_s1 }
   0x2   :  { %5063 = sst [smem:[#allocation3_spill]] %s5040_s0 }
   0x3   :  { %s5064_s26 = sld [smem:[#allocation2_spill]] }
   0x4   :  { %s5065_s20 = sld [smem:[#allocation3_spill]] }
   0x9   :  { %v3445_v0 = vld [vmem:[%s5064_s26 + $0x78] sm:$0xff]   ;;  %v3447_v2 = vld [vmem:[%s5064_s26 + $0x70] sm:$0xff]   ;;  %v3449_v4 = vld [vmem:[%s5064_s26 + $0x68] sm:$0xff]  }
   0xa   :  { %v3446_v1 = vld [vmem:[%s5064_s26 + $0x38] sm:$0xff]   ;;  %3201 = vmatprep.subr.bf16.mxu0 %v3445_v0  ;;  %v3448_v3 = vld [vmem:[%s5064_s26 + $0x30] sm:$0xff]   ;;  %v3450_v5 = vld [vmem:[%s5064_s26 + $0x28] sm:$0xff]  }
   0xb   :  { %3202 = vmatpush3.bf16.msra.mxu0 %v3446_v1  ;;  %v3451_v6 = vld [vmem:[%s5064_s26 + $0x60] sm:$0xff]   ;;  %v3453_v8 = vld [vmem:[%s5064_s26 + $0x58] sm:$0xff]   ;;  %v3455_v10 = vld [vmem:[%s5064_s26 + $0x50] sm:$0xff]  }
   0xc   :  { %3203 = vmatprep.subr.bf16.mxu0 %v3447_v2  ;;  %v3452_v7 = vld [vmem:[%s5064_s26 + $0x20] sm:$0xff]   ;;  %v3454_v9 = vld [vmem:[%s5064_s26 + $0x18] sm:$0xff]   ;;  %v3456_v12 = vld [vmem:[%s5064_s26 + $0x10] sm:$0xff]  }
   0xd   :  { %v3463_v11 = vld [vmem:[%s5065_s20 + $0x4] ss:$8 sps:$4 sm:$0xff]   ;;  %v3461_v17 = vld [vmem:[%s5065_s20] ss:$8 sps:$4 sm:$0xff]   ;;  %v3464_v18 = vld [vmem:[%s5065_s20 + $0x14] ss:$8 sps:$4 sm:$0xff]  }
   0xe   :  { %409 = vmatprep.mubr.bf16.mxu0 %v3463_v11  ;;  %v3457_v13 = vld [vmem:[%s5064_s26 + $0x48] sm:$0xff]   ;;  %v3459_v15 = vld [vmem:[%s5064_s26 + $0x40] sm:$0xff]   ;;  %v3466_v19 = vld [vmem:[%s5065_s20 + $0x10] ss:$8 sps:$4 sm:$0xff]  }
   0xf   :  { %3204 = vmatpush3.bf16.msra.mxu0 %v3448_v3  ;;  %v3458_v14 = vld [vmem:[%s5064_s26 + $0x8] sm:$0xff]   ;;  %v3460_v16 = vld [vmem:[%s5064_s26] sm:$0xff]   ;;  %v3470_v22 = vld [vmem:[%s5065_s20 + $0x34] ss:$8 sps:$4 sm:$0xff]  }
  0x10   :  { %3205 = vmatprep.subr.bf16.mxu0 %v3449_v4  ;;  %v3467_v20 = vld [vmem:[%s5065_s20 + $0x24] ss:$8 sps:$4 sm:$0xff]   ;;  %v3469_v21 = vld [vmem:[%s5065_s20 + $0x20] ss:$8 sps:$4 sm:$0xff]   ;;  %v3472_v23 = vld [vmem:[%s5065_s20 + $0x30] ss:$8 sps:$4 sm:$0xff]  }
  0x11   :  { %v3473_v24 = vld [vmem:[%s5065_s20 + $0x44] ss:$8 sps:$4 sm:$0xff]   ;;  %v3475_v25 = vld [vmem:[%s5065_s20 + $0x40] ss:$8 sps:$4 sm:$0xff]   ;;  %v3476_v26 = vld [vmem:[%s5065_s20 + $0x54] ss:$8 sps:$4 sm:$0xff]  }
  0x12   :  { %v3478_v27 = vld [vmem:[%s5065_s20 + $0x50] ss:$8 sps:$4 sm:$0xff]   ;;  %v3479_v28 = vld [vmem:[%s5065_s20 + $0x64] ss:$8 sps:$4 sm:$0xff]   ;;  %v3481_v29 = vld [vmem:[%s5065_s20 + $0x60] ss:$8 sps:$4 sm:$0xff]  }
  0x13   :  { %3206 = vmatpush3.bf16.msra.mxu0 %v3450_v5  ;;  %v3482_v30 = vld [vmem:[%s5065_s20 + $0x74] ss:$8 sps:$4 sm:$0xff]   ;;  %v3484_v31 = vld [vmem:[%s5065_s20 + $0x70] ss:$8 sps:$4 sm:$0xff]   ;;  %v3485_v32 = vld [vmem:[%s5065_s20 + $0x84] ss:$8 sps:$4 sm:$0xff]  }
  0x14   :  { %3207 = vmatprep.subr.bf16.mxu0 %v3451_v6  ;;  %v3487_v33 = vld [vmem:[%s5065_s20 + $0x80] ss:$8 sps:$4 sm:$0xff]   ;;  %v3488_v34 = vld [vmem:[%s5065_s20 + $0x94] ss:$8 sps:$4 sm:$0xff]   ;;  %v3490_v35 = vld [vmem:[%s5065_s20 + $0x90] ss:$8 sps:$4 sm:$0xff]  }
  0x15   :  { %v3491_v36 = vld [vmem:[%s5065_s20 + $0xa4] ss:$8 sps:$4 sm:$0xff]   ;;  %v3493_v37 = vld [vmem:[%s5065_s20 + $0xa0] ss:$8 sps:$4 sm:$0xff]   ;;  %v3494_v38 = vld [vmem:[%s5065_s20 + $0xb4] ss:$8 sps:$4 sm:$0xff]  }
  0x16   :  { %v3496_v39 = vld [vmem:[%s5065_s20 + $0xb0] ss:$8 sps:$4 sm:$0xff]   ;;  %v3497_v40 = vld [vmem:[%s5065_s20 + $0xc4] ss:$8 sps:$4 sm:$0xff]   ;;  %v3499_v41 = vld [vmem:[%s5065_s20 + $0xc0] ss:$8 sps:$4 sm:$0xff]  }
  0x17   :  { %3208 = vmatpush3.bf16.msra.mxu0 %v3452_v7  ;;  %v3500_v42 = vld [vmem:[%s5065_s20 + $0xd4] ss:$8 sps:$4 sm:$0xff]   ;;  %v3502_v43 = vld [vmem:[%s5065_s20 + $0xd0] ss:$8 sps:$4 sm:$0xff]   ;;  %v3503_v44 = vld [vmem:[%s5065_s20 + $0xe4] ss:$8 sps:$4 sm:$0xff]  }
  0x18   :  { %3209 = vmatprep.subr.bf16.mxu0 %v3453_v8  ;;  %v3505_v45 = vld [vmem:[%s5065_s20 + $0xe0] ss:$8 sps:$4 sm:$0xff]   ;;  %v3506_v46 = vld [vmem:[%s5065_s20 + $0xf4] ss:$8 sps:$4 sm:$0xff]   ;;  %v3508_v47 = vld [vmem:[%s5065_s20 + $0xf0] ss:$8 sps:$4 sm:$0xff]  }
  0x1b   :  { %3210 = vmatpush3.bf16.msra.mxu0 %v3454_v9 }
  0x1c   :  { %3211 = vmatprep.subr.bf16.mxu0 %v3455_v10 }
  0x1f   :  { %3212 = vmatpush3.bf16.msra.mxu0 %v3456_v12 }
  0x20   :  { %3213 = vmatprep.subr.bf16.mxu0 %v3457_v13 }
  0x23   :  { %3214 = vmatpush3.bf16.msra.mxu0 %v3458_v14 }
  0x24   :  { %3215 = vmatprep.subr.bf16.mxu0 %v3459_v15 }
  0x27   :  { %3216 = vmatpush3.bf16.msra.mxu0 %v3460_v16 }
  0x2a   :  { %410 = vmatmul.mubr.bf16.vlgmr.msra.gmra.mxu0 %v3461_v17 }
  0x2b   :  { %417 = vmatprep.mubr.bf16.mxu0 %v3464_v18 }
  0x32   :  { %418 = vmatmul.mubr.bf16.gmra.mxu0 %v3466_v19 }
  0x33   :  { %425 = vmatprep.mubr.bf16.mxu0 %v3467_v20 }
  0x3a   :  { %426 = vmatmul.mubr.bf16.gmra.mxu0 %v3469_v21 }
  0x3b   :  { %433 = vmatprep.mubr.bf16.mxu0 %v3470_v22 }
  0x42   :  { %434 = vmatmul.mubr.bf16.gmra.mxu0 %v3472_v23 }
  0x43   :  { %441 = vmatprep.mubr.bf16.mxu0 %v3473_v24 }
  0x4a   :  { %442 = vmatmul.mubr.bf16.gmra.mxu0 %v3475_v25 }
  0x4b   :  { %449 = vmatprep.mubr.bf16.mxu0 %v3476_v26 }
  0x52   :  { %450 = vmatmul.mubr.bf16.gmra.mxu0 %v3478_v27 }
  0x53   :  { %457 = vmatprep.mubr.bf16.mxu0 %v3479_v28 }
  0x5a   :  { %458 = vmatmul.mubr.bf16.gmra.mxu0 %v3481_v29 }
  0x5b   :  { %465 = vmatprep.mubr.bf16.mxu0 %v3482_v30 }
  0x62   :  { %466 = vmatmul.mubr.bf16.gmra.mxu0 %v3484_v31 }
  0x63   :  { %473 = vmatprep.mubr.bf16.mxu0 %v3485_v32 }
  0x6a   :  { %474 = vmatmul.mubr.bf16.gmra.mxu0 %v3487_v33 }
  0x6b   :  { %481 = vmatprep.mubr.bf16.mxu0 %v3488_v34 }
  0x72   :  { %482 = vmatmul.mubr.bf16.gmra.mxu0 %v3490_v35 }
  0x73   :  { %489 = vmatprep.mubr.bf16.mxu0 %v3491_v36 }
  0x7a   :  { %490 = vmatmul.mubr.bf16.gmra.mxu0 %v3493_v37 }
  0x7b   :  { %497 = vmatprep.mubr.bf16.mxu0 %v3494_v38 }
  0x82   :  { %498 = vmatmul.mubr.bf16.gmra.mxu0 %v3496_v39 }
  0x83   :  { %505 = vmatprep.mubr.bf16.mxu0 %v3497_v40 }
  0x8a   :  { %506 = vmatmul.mubr.bf16.gmra.mxu0 %v3499_v41 }
  0x8b   :  { %513 = vmatprep.mubr.bf16.mxu0 %v3500_v42 }
  0x92   :  { %514 = vmatmul.mubr.bf16.gmra.mxu0 %v3502_v43 }
  0x93   :  { %521 = vmatprep.mubr.bf16.mxu0 %v3503_v44 }
  0x9a   :  { %522 = vmatmul.mubr.bf16.gmra.mxu0 %v3505_v45 }
  0x9b   :  { %529 = vmatprep.mubr.bf16.mxu0 %v3506_v46 }
  0xa2   :  { %530 = vmatmul.mubr.bf16.gmra.mxu0 %v3508_v47 }
  0xea   :  { %v3217_v48 = vpop.f32.mrf.mxu0 }
  0xec   :  { %v3218_v49 = vpop.f32.mrf.mxu0 }
  0xed   :  { %v3925_v50 = vadd.f32 %v3218_v49, %v3217_v48 }
  0xee   :  { %v3220_v51 = vpop.f32.mrf.mxu0 }
  0xef   :  { %v541_v24 = vsel %vm5061_vm0, %v3925_v50, 0.0 }
  0xf0   :  { %v3221_v52 = vpop.f32.mrf.mxu0 }
  0xf1   :  { %v3927_v17 = vadd.f32 %v3221_v52, %v3220_v51 }
  0xf2   :  { %v3223_v53 = vpop.f32.mrf.mxu0 }
  0xf3   :  { %v542_v21 = vsel %vm5061_vm0, %v3927_v17, 0.0 }
  0xf4   :  { %v3224_v54 = vpop.f32.mrf.mxu0  ;;  %v543_v27 = vadd.f32 %v542_v21, %v541_v24 }
  0xf5   :  { %v3929_v19 = vadd.f32 %v3224_v54, %v3223_v53 }
  0xf6   :  { %v3226_v55 = vpop.f32.mrf.mxu0 }
  0xf7   :  { %v544_v25 = vsel %vm5061_vm0, %v3929_v19, 0.0 }
  0xf8   :  { %v3227_v56 = vpop.f32.mrf.mxu0  ;;  %v545_v31 = vadd.f32 %v544_v25, %v543_v27 }
  0xf9   :  { %v3933_v22 = vadd.f32 %v3227_v56, %v3226_v55 }
  0xfa   :  { %v3229_v57 = vpop.f32.mrf.mxu0 }
  0xfb   :  { %v546_v29 = vsel %vm5061_vm0, %v3933_v22, 0.0 }
  0xfc   :  { %v3230_v58 = vpop.f32.mrf.mxu0  ;;  %v547_v35 = vadd.f32 %v546_v29, %v545_v31 }
  0xfd   :  { %v3939_v26 = vadd.f32 %v3230_v58, %v3229_v57 }
  0xfe   :  { %v3232_v59 = vpop.f32.mrf.mxu0 }
  0xff   :  { %v548_v33 = vsel %vm5061_vm0, %v3939_v26, 0.0 }
 0x100   :  { %v3233_v60 = vpop.f32.mrf.mxu0  ;;  %v549_v39 = vadd.f32 %v548_v33, %v547_v35 }
 0x101   :  { %v3943_v30 = vadd.f32 %v3233_v60, %v3232_v59 }
 0x102   :  { %v3235_v61 = vpop.f32.mrf.mxu0 }
 0x103   :  { %v550_v37 = vsel %vm5061_vm0, %v3943_v30, 0.0 }
 0x104   :  { %v3236_v62 = vpop.f32.mrf.mxu0  ;;  %v551_v43 = vadd.f32 %v550_v37, %v549_v39 }
 0x105   :  { %v3947_v34 = vadd.f32 %v3236_v62, %v3235_v61 }
 0x106   :  { %v3238_v63 = vpop.f32.mrf.mxu0 }
 0x107   :  { %v552_v41 = vsel %vm5061_vm0, %v3947_v34, 0.0 }
 0x108   :  { %v3239_v0 = vpop.f32.mrf.mxu0  ;;  %v553_v47 = vadd.f32 %v552_v41, %v551_v43 }
 0x109   :  { %v3951_v38 = vadd.f32 %v3239_v0, %v3238_v63 }
 0x10a   :  { %v3241_v1 = vpop.f32.mrf.mxu0 }
 0x10b   :  { %v554_v45 = vsel %vm5061_vm0, %v3951_v38, 0.0 }
 0x10c   :  { %v3242_v2 = vpop.f32.mrf.mxu0  ;;  %v555_v52 = vadd.f32 %v554_v45, %v553_v47 }
 0x10d   :  { %v3955_v42 = vadd.f32 %v3242_v2, %v3241_v1 }
 0x10e   :  { %v3244_v3 = vpop.f32.mrf.mxu0 }
 0x10f   :  { %v556_v49 = vsel %vm5061_vm0, %v3955_v42, 0.0 }
 0x110   :  { %v3245_v4 = vpop.f32.mrf.mxu0  ;;  %v557_v56 = vadd.f32 %v556_v49, %v555_v52 }
 0x111   :  { %v3959_v46 = vadd.f32 %v3245_v4, %v3244_v3 }
 0x112   :  { %v3247_v5 = vpop.f32.mrf.mxu0 }
 0x113   :  { %v558_v54 = vsel %vm5061_vm0, %v3959_v46, 0.0 }
 0x114   :  { %v3248_v6 = vpop.f32.mrf.mxu0  ;;  %v559_v60 = vadd.f32 %v558_v54, %v557_v56 }
 0x115   :  { %v3963_v51 = vadd.f32 %v3248_v6, %v3247_v5 }
 0x116   :  { %v3250_v7 = vpop.f32.mrf.mxu0 }
 0x117   :  { %v560_v58 = vsel %vm5061_vm0, %v3963_v51, 0.0 }
 0x118   :  { %v3251_v8 = vpop.f32.mrf.mxu0  ;;  %v561_v0 = vadd.f32 %v560_v58, %v559_v60 }
 0x119   :  { %v3967_v55 = vadd.f32 %v3251_v8, %v3250_v7 }
 0x11a   :  { %v3253_v9 = vpop.f32.mrf.mxu0 }
 0x11b   :  { %v562_v62 = vsel %vm5061_vm0, %v3967_v55, 0.0 }
 0x11c   :  { %v3254_v10 = vpop.f32.mrf.mxu0  ;;  %v563_v4 = vadd.f32 %v562_v62, %v561_v0 }
 0x11d   :  { %v3971_v59 = vadd.f32 %v3254_v10, %v3253_v9 }
 0x11e   :  { %v3256_v11 = vpop.f32.mrf.mxu0 }
 0x11f   :  { %v564_v2 = vsel %vm5061_vm0, %v3971_v59, 0.0 }
 0x120   :  { %v3257_v12 = vpop.f32.mrf.mxu0  ;;  %v565_v8 = vadd.f32 %v564_v2, %v563_v4 }
 0x121   :  { %v3975_v63 = vadd.f32 %v3257_v12, %v3256_v11 }
 0x122   :  { %v3259_v13 = vpop.f32.mrf.mxu0 }
 0x123   :  { %v566_v6 = vsel %vm5061_vm0, %v3975_v63, 0.0 }
 0x124   :  { %v3260_v14 = vpop.f32.mrf.mxu0  ;;  %v567_v12 = vadd.f32 %v566_v6, %v565_v8 }
 0x125   :  { %v3979_v3 = vadd.f32 %v3260_v14, %v3259_v13 }
 0x126   :  { %v3262_v15 = vpop.f32.mrf.mxu0 }
 0x127   :  { %v568_v10 = vsel %vm5061_vm0, %v3979_v3, 0.0 }
 0x128   :  { %v3263_v16 = vpop.f32.mrf.mxu0  ;;  %v569_v24 = vadd.f32 %v568_v10, %v567_v12 }
 0x129   :  { %v3983_v7 = vadd.f32 %v3263_v16, %v3262_v15 }
 0x12a   :  { %v3265_v18 = vpop.f32.mrf.mxu0 }
 0x12b   :  { %v570_v13 = vsel %vm5061_vm0, %v3983_v7, 0.0 }
 0x12c   :  { %v3266_v20 = vpop.f32.mrf.mxu0  ;;  %v571_v27 = vadd.f32 %v570_v13, %v569_v24 }
 0x12d   :  { %v3987_v11 = vadd.f32 %v3266_v20, %v3265_v18 }
 0x12e   :  { %v3268_v23 = vpop.f32.mrf.mxu0 }
 0x12f   :  { %v572_v15 = vsel %vm5061_vm0, %v3987_v11, 0.0 }
 0x130   :  { %v3269_v28 = vpop.f32.mrf.mxu0  ;;  %v573_v31 = vadd.f32 %v572_v15, %v571_v27 }
 0x131   :  { %v3991_v14 = vadd.f32 %v3269_v28, %v3268_v23 }
 0x132   :  { %v3271_v32 = vpop.f32.mrf.mxu0 }
 0x133   :  { %v574_v18 = vsel %vm5061_vm0, %v3991_v14, 0.0 }
 0x134   :  { %v3272_v36 = vpop.f32.mrf.mxu0  ;;  %v575_v35 = vadd.f32 %v574_v18, %v573_v31 }
 0x135   :  { %v3995_v16 = vadd.f32 %v3272_v36, %v3271_v32 }
 0x136   :  { %v3274_v40 = vpop.f32.mrf.mxu0 }
 0x137   :  { %v576_v23 = vsel %vm5061_vm0, %v3995_v16, 0.0 }
 0x138   :  { %v3275_v44 = vpop.f32.mrf.mxu0  ;;  %v577_v39 = vadd.f32 %v576_v23, %v575_v35 }
 0x139   :  { %v3999_v20 = vadd.f32 %v3275_v44, %v3274_v40 }
 0x13a   :  { %v3277_v48 = vpop.f32.mrf.mxu0 }
 0x13b   :  { %v578_v32 = vsel %vm5061_vm0, %v3999_v20, 0.0 }
 0x13c   :  { %v3278_v53 = vpop.f32.mrf.mxu0  ;;  %v579_v44 = vadd.f32 %v578_v32, %v577_v39 }
 0x13d   :  { %v4003_v28 = vadd.f32 %v3278_v53, %v3277_v48 }
 0x13e   :  { %v3280_v57 = vpop.f32.mrf.mxu0 }
 0x13f   :  { %v580_v40 = vsel %vm5061_vm0, %v4003_v28, 0.0 }
 0x140   :  { %v3281_v61 = vpop.f32.mrf.mxu0  ;;  %v581_v49 = vadd.f32 %v580_v40, %v579_v44 }
 0x141   :  { %v4007_v36 = vadd.f32 %v3281_v61, %v3280_v57 }
 0x142   :  { %v3283_v1 = vpop.f32.mrf.mxu0 }
 0x143   :  { %v582_v47 = vsel %vm5061_vm0, %v4007_v36, 0.0 }
 0x144   :  { %v3284_v5 = vpop.f32.mrf.mxu0  ;;  %v583_v56 = vadd.f32 %v582_v47, %v581_v49 }
 0x145   :  { %v4011_v43 = vadd.f32 %v3284_v5, %v3283_v1 }
 0x146   :  { %v3286_v9 = vpop.f32.mrf.mxu0 }
 0x147   :  { %v584_v53 = vsel %vm5061_vm0, %v4011_v43, 0.0 }
 0x148   :  { %v3287_v21 = vpop.f32.mrf.mxu0  ;;  %v585_v61 = vadd.f32 %v584_v53, %v583_v56 }
 0x149   :  { %v4015_v48 = vadd.f32 %v3287_v21, %v3286_v9 }
 0x14a   :  { %v3289_v25 = vpop.f32.mrf.mxu0 }
 0x14b   :  { %v586_v58 = vsel %vm5061_vm0, %v4015_v48, 0.0 }
 0x14c   :  { %v3290_v29 = vpop.f32.mrf.mxu0  ;;  %v587_v2 = vadd.f32 %v586_v58, %v585_v61 }
 0x14d   :  { %v4019_v54 = vadd.f32 %v3290_v29, %v3289_v25 }
 0x14e   :  { %v3292_v33 = vpop.f32.mrf.mxu0 }
 0x14f   :  { %v588_v0 = vsel %vm5061_vm0, %v4019_v54, 0.0 }
 0x150   :  { %v3293_v37 = vpop.f32.mrf.mxu0  ;;  %v589_v8 = vadd.f32 %v588_v0, %v587_v2 }
 0x151   :  { %v4023_v60 = vadd.f32 %v3293_v37, %v3292_v33 }
 0x152   :  { %v3295_v41 = vpop.f32.mrf.mxu0 }
 0x153   :  { %v590_v5 = vsel %vm5061_vm0, %v4023_v60, 0.0 }
 0x154   :  { %v3296_v45 = vpop.f32.mrf.mxu0  ;;  %v591_v21 = vadd.f32 %v590_v5, %v589_v8 }
 0x155   :  { %v4027_v1 = vadd.f32 %v3296_v45, %v3295_v41 }
 0x156   :  { %v3298_v52 = vpop.f32.mrf.mxu0 }
 0x157   :  { %v592_v10 = vsel %vm5061_vm0, %v4027_v1, 0.0 }
 0x158   :  { %v3299_v57 = vpop.f32.mrf.mxu0  ;;  %v593_v15 = vadd.f32 %v592_v10, %v591_v21 }
 0x159   :  { %v4031_v6 = vadd.f32 %v3299_v57, %v3298_v52 }
 0x15a   :  { %v3301_v62 = vpop.f32.mrf.mxu0 }
 0x15b   :  { %v594_v24 = vsel %vm5061_vm0, %v4031_v6, 0.0 }
 0x15c   :  { %v3302_v4 = vpop.f32.mrf.mxu0  ;;  %v595_v18 = vadd.f32 %v594_v24, %v593_v15 }
 0x15d   :  { %v4035_v12 = vadd.f32 %v3302_v4, %v3301_v62 }
 0x15e   :  { %v3304_v9 = vpop.f32.mrf.mxu0 }
 0x15f   :  { %v596_v29 = vsel %vm5061_vm0, %v4035_v12, 0.0 }
 0x160   :  { %v3305_v13 = vpop.f32.mrf.mxu0  ;;  %v597_v35 = vadd.f32 %v596_v29, %v595_v18 }
 0x161   :  { %v4039_v25 = vadd.f32 %v3305_v13, %v3304_v9 }
 0x162   :  { %v3307_v27 = vpop.f32.mrf.mxu0 }
 0x163   :  { %v598_v33 = vsel %vm5061_vm0, %v4039_v25, 0.0 }
 0x164   :  { %v3308_v31 = vpop.f32.mrf.mxu0  ;;  %v599_v39 = vadd.f32 %v598_v33, %v597_v35 }
 0x165   :  { %v4045_v23 = vadd.f32 %v3308_v31, %v3307_v27 }
 0x166   :  { %v3310_v37 = vpop.f32.mrf.mxu0 }
 0x167   :  { %v600_v32 = vsel %vm5061_vm0, %v4045_v23, 0.0 }
 0x168   :  { %v3311_v41 = vpop.f32.mrf.mxu0  ;;  %v601_v44 = vadd.f32 %v600_v32, %v599_v39  ;;  %v3509_v39 = vld [vmem:[%s5041_s4 + $0x8] sm:$0xff]  }
 0x169   :  { %v4049_v40 = vadd.f32 %v3311_v41, %v3310_v37 }
 0x16b   :  { %v602_v45 = vsel %vm5061_vm0, %v4049_v40, 0.0 }
 0x16c   :  { %v603_v47 = vadd.f32 %v602_v45, %v601_v44 }
 0x16e   :  { %v604_v49 = vrot.slane %v603_v47, 4 }
 0x170   :  { %v605_v52 = vadd.f32 %v604_v49, %v603_v47 }
 0x172   :  { %v606_v53 = vrot.slane %v605_v52, 2 }
 0x174   :  { %v607_v56 = vadd.f32 %v606_v53, %v605_v52  ;;  %v3687_v52 = vmov 0.0  }
 0x175   :  { %3345 = vmatprep.subr.bf16.mxu1 %v3687_v52  ;;  %3347 = vmatprep.mubr.msk.bf16.mxu1 %vm5059_vm1, %v3687_v52 }
 0x176   :  { %v608_v57 = vrot.slane %v607_v56, 1  ;;  %3346 = vmatpush3.bf16.msra.mxu1 %v3509_v39 }
 0x177   :  { %3351 = vmatprep.subr.bf16.mxu1 %v3687_v52 }
 0x178   :  { %v609_v58 = vadd.f32 %v608_v57, %v607_v56 }
 0x17a   :  { %v4053_v61 = vmul.f32 0.00390625, %v609_v58 }
 0x17c   :  { %v4057_v62 = vsub.f32 %v3925_v50, %v4053_v61  ;;  %v4061_v0 = vsub.f32 %v3927_v17, %v4053_v61  ;;  %v4065_v2 = vsub.f32 %v3929_v19, %v4053_v61  ;;  %v4069_v4 = vsub.f32 %v3933_v22, %v4053_v61 }
 0x17d   :  { %v4077_v50 = vsub.f32 %v3939_v26, %v4053_v61  ;;  %v4083_v19 = vsub.f32 %v3943_v30, %v4053_v61  ;;  %v4087_v22 = vsub.f32 %v3947_v34, %v4053_v61  ;;  %v4091_v9 = vsub.f32 %v3951_v38, %v4053_v61 }
 0x17e   :  { %v644_v5 = vmul.f32 %v4057_v62, %v4057_v62  ;;  %v645_v8 = vmul.f32 %v4061_v0, %v4061_v0  ;;  %v646_v17 = vmul.f32 %v4065_v2, %v4065_v2  ;;  %v4095_v10 = vsub.f32 %v3955_v42, %v4053_v61 }
 0x17f   :  { %v647_v26 = vmul.f32 %v4069_v4, %v4069_v4  ;;  %v648_v34 = vmul.f32 %v4077_v50, %v4077_v50  ;;  %v4106_v38 = vsub.f32 %v3959_v46, %v4053_v61  ;;  %v4110_v42 = vsub.f32 %v3963_v51, %v4053_v61 }
 0x180   :  { %v676_v21 = vsel %vm5061_vm0, %v644_v5, 0.0  ;;  %v677_v30 = vsel %vm5061_vm0, %v645_v8, 0.0  ;;  %v679_v24 = vsel %vm5061_vm0, %v646_v17, 0.0  ;;  %v649_v15 = vmul.f32 %v4083_v19, %v4083_v19 }
 0x181   :  { %v678_v13 = vadd.f32 %v677_v30, %v676_v21  ;;  %v650_v29 = vmul.f32 %v4087_v22, %v4087_v22  ;;  %v651_v18 = vmul.f32 %v4091_v9, %v4091_v9  ;;  %v652_v31 = vmul.f32 %v4095_v10, %v4095_v10 }
 0x182   :  { %v681_v46 = vsel %vm5061_vm0, %v647_v26, 0.0  ;;  %v683_v35 = vsel %vm5061_vm0, %v648_v34, 0.0  ;;  %v653_v51 = vmul.f32 %v4106_v38, %v4106_v38  ;;  %v654_v37 = vmul.f32 %v4110_v42, %v4110_v42 }
 0x183   :  { %v680_v27 = vadd.f32 %v679_v24, %v678_v13  ;;  %v685_v41 = vsel %vm5061_vm0, %v649_v15, 0.0  ;;  %v687_v44 = vsel %vm5061_vm0, %v650_v29, 0.0  ;;  %v689_v45 = vsel %vm5061_vm0, %v651_v18, 0.0 }
 0x184   :  { %v691_v47 = vsel %vm5061_vm0, %v652_v31, 0.0  ;;  %v4138_v56 = vsub.f32 %v3967_v55, %v4053_v61  ;;  %v693_v57 = vsel %vm5061_vm0, %v653_v51, 0.0  ;;  %v695_v58 = vsel %vm5061_vm0, %v654_v37, 0.0 }
 0x185   :  { %v682_v33 = vadd.f32 %v681_v46, %v680_v27  ;;  %v4145_v8 = vsub.f32 %v3971_v59, %v4053_v61  ;;  %v4149_v26 = vsub.f32 %v3975_v63, %v4053_v61  ;;  %v4155_v30 = vsub.f32 %v3979_v3, %v4053_v61 }
 0x186   :  { %v655_v55 = vmul.f32 %v4138_v56, %v4138_v56  ;;  %v4161_v59 = vsub.f32 %v3983_v7, %v4053_v61  ;;  %v4168_v27 = vsub.f32 %v3987_v11, %v4053_v61  ;;  %v4175_v7 = vsub.f32 %v3991_v14, %v4053_v61 }
 0x187   :  { %v684_v32 = vadd.f32 %v683_v35, %v682_v33  ;;  %v656_v13 = vmul.f32 %v4145_v8, %v4145_v8  ;;  %v657_v63 = vmul.f32 %v4149_v26, %v4149_v26  ;;  %v658_v3 = vmul.f32 %v4155_v30, %v4155_v30 }
 0x188   :  { %v697_v24 = vsel %vm5061_vm0, %v655_v55, 0.0  ;;  %v659_v31 = vmul.f32 %v4161_v59, %v4161_v59  ;;  %v4182_v11 = vsub.f32 %v3995_v16, %v4053_v61  ;;  %v660_v35 = vmul.f32 %v4168_v27, %v4168_v27 }
 0x189   :  { %v686_v49 = vadd.f32 %v685_v41, %v684_v32  ;;  %v699_v29 = vsel %vm5061_vm0, %v656_v13, 0.0  ;;  %v701_v46 = vsel %vm5061_vm0, %v657_v63, 0.0  ;;  %v703_v51 = vsel %vm5061_vm0, %v658_v3, 0.0 }
 0x18a   :  { %v4189_v14 = vsub.f32 %v3999_v20, %v4053_v61  ;;  %v661_v32 = vmul.f32 %v4175_v7, %v4175_v7  ;;  %v705_v39 = vsel %vm5061_vm0, %v659_v31, 0.0  ;;  %v4196_v16 = vsub.f32 %v4003_v28, %v4053_v61 }
 0x18b   :  { %v688_v53 = vadd.f32 %v687_v44, %v686_v49  ;;  %v662_v44 = vmul.f32 %v4182_v11, %v4182_v11  ;;  %v4203_v20 = vsub.f32 %v4007_v36, %v4053_v61  ;;  %v4210_v28 = vsub.f32 %v4011_v43, %v4053_v61 }
 0x18c   :  { %v663_v49 = vmul.f32 %v4189_v14, %v4189_v14  ;;  %v4217_v36 = vsub.f32 %v4015_v48, %v4053_v61  ;;  %v4224_v43 = vsub.f32 %v4019_v54, %v4053_v61  ;;  %v4231_v48 = vsub.f32 %v4023_v60, %v4053_v61 }
 0x18d   :  { %v690_v5 = vadd.f32 %v689_v45, %v688_v53  ;;  %v707_v45 = vsel %vm5061_vm0, %v660_v35, 0.0  ;;  %v709_v53 = vsel %vm5061_vm0, %v661_v32, 0.0  ;;  %v665_v55 = vmul.f32 %v4203_v20, %v4203_v20 }
 0x18e   :  { %v638_v54 = vsub.f32 %v4027_v1, %v4053_v61  ;;  %v669_v60 = vmul.f32 %v4231_v48, %v4231_v48 }
 0x18f   :  { %v692_v17 = vadd.f32 %v691_v47, %v690_v5  ;;  %v711_v5 = vsel %vm5061_vm0, %v662_v44, 0.0  ;;  %v717_v3 = vsel %vm5061_vm0, %v665_v55, 0.0 }
 0x190   :  { %v670_v32 = vmul.f32 %v638_v54, %v638_v54 }
 0x191   :  { %v694_v21 = vadd.f32 %v693_v57, %v692_v17 }
 0x193   :  { %v696_v34 = vadd.f32 %v695_v58, %v694_v21  ;;  %v664_v58 = vmul.f32 %v4196_v16, %v4196_v16  ;;  %v713_v21 = vsel %vm5061_vm0, %v663_v49, 0.0 }
 0x195   :  { %v698_v15 = vadd.f32 %v697_v24, %v696_v34  ;;  %v666_v34 = vmul.f32 %v4210_v28, %v4210_v28  ;;  %v715_v63 = vsel %vm5061_vm0, %v664_v58, 0.0 }
 0x197   :  { %v700_v18 = vadd.f32 %v699_v29, %v698_v15  ;;  %v667_v15 = vmul.f32 %v4217_v36, %v4217_v36  ;;  %v719_v31 = vsel %vm5061_vm0, %v666_v34, 0.0 }
 0x199   :  { %v702_v33 = vadd.f32 %v701_v46, %v700_v18  ;;  %v668_v18 = vmul.f32 %v4224_v43, %v4224_v43  ;;  %v721_v35 = vsel %vm5061_vm0, %v667_v15, 0.0 }
 0x19b   :  { %v704_v37 = vadd.f32 %v703_v51, %v702_v33  ;;  %v639_v33 = vsub.f32 %v4031_v6, %v4053_v61  ;;  %v723_v1 = vsel %vm5061_vm0, %v668_v18, 0.0 }
 0x19d   :  { %v706_v41 = vadd.f32 %v705_v39, %v704_v37  ;;  %v640_v37 = vsub.f32 %v4035_v12, %v4053_v61  ;;  %v671_v44 = vmul.f32 %v639_v33, %v639_v33  ;;  %v643_v12 = vsub.f32 %v4049_v40, %v4053_v61 }
 0x19f   :  { %v708_v47 = vadd.f32 %v707_v45, %v706_v41  ;;  %v641_v41 = vsub.f32 %v4039_v25, %v4053_v61  ;;  %v725_v45 = vsel %vm5061_vm0, %v669_v60, 0.0  ;;  %v672_v49 = vmul.f32 %v640_v37, %v640_v37 }
 0x1a1   :  { %v710_v57 = vadd.f32 %v709_v53, %v708_v47  ;;  %v642_v47 = vsub.f32 %v4045_v23, %v4053_v61  ;;  %v727_v53 = vsel %vm5061_vm0, %v670_v32, 0.0  ;;  %v673_v58 = vmul.f32 %v641_v41, %v641_v41  ;;  %v4267_v32 = vld [vmem:[%s5042_s2] ss:$0 sm:$0xff] }
 0x1a2   :  { %v731_v25 = vsel %vm5061_vm0, %v672_v49, 0.0 }
 0x1a3   :  { %v712_v17 = vadd.f32 %v711_v5, %v710_v57  ;;  %v729_v5 = vsel %vm5061_vm0, %v671_v44, 0.0  ;;  %v674_v55 = vmul.f32 %v642_v47, %v642_v47  ;;  %v733_v34 = vsel %vm5061_vm0, %v673_v58, 0.0 }
 0x1a5   :  { %v714_v13 = vadd.f32 %v713_v21, %v712_v17  ;;  %v735_v23 = vsel %vm5061_vm0, %v674_v55, 0.0 }
 0x1a7   :  { %v716_v24 = vadd.f32 %v715_v63, %v714_v13  ;;  %v675_v13 = vmul.f32 %v643_v12, %v643_v12 }
 0x1a9   :  { %v718_v29 = vadd.f32 %v717_v3, %v716_v24  ;;  %v737_v15 = vsel %vm5061_vm0, %v675_v13, 0.0 }
 0x1ab   :  { %v720_v46 = vadd.f32 %v719_v31, %v718_v29 }
 0x1ad   :  { %v722_v51 = vadd.f32 %v721_v35, %v720_v46 }
 0x1af   :  { %v724_v39 = vadd.f32 %v723_v1, %v722_v51 }
 0x1b1   :  { %v726_v6 = vadd.f32 %v725_v45, %v724_v39  ;;  %v4273_v39 = vld [vmem:[%s5043_s3] ss:$0 sm:$0xff] }
 0x1b3   :  { %v728_v57 = vadd.f32 %v727_v53, %v726_v6 }
 0x1b5   :  { %v730_v17 = vadd.f32 %v729_v5, %v728_v57 }
 0x1b7   :  { %v732_v21 = vadd.f32 %v731_v25, %v730_v17 }
 0x1b9   :  { %v734_v63 = vadd.f32 %v733_v34, %v732_v21 }
 0x1bb   :  { %v736_v24 = vadd.f32 %v735_v23, %v734_v63 }
 0x1bd   :  { %v738_v3 = vadd.f32 %v737_v15, %v736_v24 }
 0x1bf   :  { %v739_v29 = vrot.slane %v738_v3, 4 }
 0x1c1   :  { %v740_v40 = vadd.f32 %v739_v29, %v738_v3 }
 0x1c3   :  { %v741_v61 = vrot.slane %v740_v40, 2 }
 0x1c5   :  { %v742_v18 = vadd.f32 %v741_v61, %v740_v40 }
 0x1c7   :  { %v743_v31 = vrot.slane %v742_v18, 1 }
 0x1c9   :  { %v744_v46 = vadd.f32 %v743_v31, %v742_v18 }
 0x1cb   :  { %v745_v60 = vmul.f32 0.00390625, %v744_v46 }
 0x1cd   :  { %v746_v35 = vadd.f32 1e-05, %v745_v60 }
 0x1cf   :  { %3583 = vrsqrt.f32 %v746_v35 }
 0x1dc   :  { %v4262_v51 = vpop.eup %3583 }
 0x1dd   :  { %v779_v1 = vmul.f32 %v4262_v51, %v643_v12  ;;  %v764_v6 = vmul.f32 %v4262_v51, %v4168_v27  ;;  %v765_v49 = vmul.f32 %v4262_v51, %v4175_v7  ;;  %v766_v53 = vmul.f32 %v4262_v51, %v4182_v11 }
 0x1de   :  { %v767_v57 = vmul.f32 %v4262_v51, %v4189_v14  ;;  %v768_v12 = vmul.f32 %v4262_v51, %v4196_v16  ;;  %v769_v58 = vmul.f32 %v4262_v51, %v4203_v20  ;;  %v770_v5 = vmul.f32 %v4262_v51, %v4210_v28 }
 0x1df   :  { %v817_v44 = vmul.f32 %v4267_v32, %v779_v1  ;;  %v771_v27 = vmul.f32 %v4262_v51, %v4217_v36  ;;  %v772_v7 = vmul.f32 %v4262_v51, %v4224_v43  ;;  %v773_v11 = vmul.f32 %v4262_v51, %v4231_v48 }
 0x1e0   :  { %v774_v14 = vmul.f32 %v4262_v51, %v638_v54  ;;  %v775_v17 = vmul.f32 %v4262_v51, %v639_v33  ;;  %v776_v16 = vmul.f32 %v4262_v51, %v640_v37  ;;  %v777_v20 = vmul.f32 %v4262_v51, %v641_v41 }
 0x1e1   :  { %v4277_v45 = vadd.f32 %v4273_v39, %v817_v44  ;;  %v778_v55 = vmul.f32 %v4262_v51, %v642_v47  ;;  %v802_v28 = vmul.f32 %v4267_v32, %v764_v6  ;;  %v803_v36 = vmul.f32 %v4267_v32, %v765_v49 }
 0x1e2   :  { %v804_v25 = vmul.f32 %v4267_v32, %v766_v53  ;;  %v805_v43 = vmul.f32 %v4267_v32, %v767_v57  ;;  %v806_v48 = vmul.f32 %v4267_v32, %v768_v12  ;;  %v807_v54 = vmul.f32 %v4267_v32, %v769_v58 }
 0x1e3   :  { %v808_v33 = vmul.f32 %v4267_v32, %v770_v5  ;;  %v809_v37 = vmul.f32 %v4267_v32, %v771_v27  ;;  %v810_v41 = vmul.f32 %v4267_v32, %v772_v7  ;;  %v811_v47 = vmul.f32 %v4267_v32, %v773_v11 }
 0x1e4   :  { %v812_v21 = vmul.f32 %v4267_v32, %v774_v14  ;;  %v813_v13 = vmul.f32 %v4267_v32, %v775_v17  ;;  %v814_v34 = vmul.f32 %v4267_v32, %v776_v16  ;;  %v815_v63 = vmul.f32 %v4267_v32, %v777_v20 }
 0x1e5   :  { %v816_v23 = vmul.f32 %v4267_v32, %v778_v55  ;;  %v748_v24 = vmul.f32 %v4262_v51, %v4057_v62  ;;  %v4322_v15 = vadd.f32 %v4273_v39, %v802_v28  ;;  %v4325_v3 = vadd.f32 %v4273_v39, %v803_v36 }
 0x1e6   :  { %v4328_v29 = vadd.f32 %v4273_v39, %v804_v25  ;;  %v4331_v40 = vadd.f32 %v4273_v39, %v805_v43  ;;  %v4334_v61 = vadd.f32 %v4273_v39, %v806_v48  ;;  %v4337_v18 = vadd.f32 %v4273_v39, %v807_v54 }
 0x1e7   :  { %v4340_v62 = vadd.f32 %v4273_v39, %v808_v33  ;;  %v4343_v31 = vadd.f32 %v4273_v39, %v809_v37  ;;  %v4346_v46 = vadd.f32 %v4273_v39, %v810_v41  ;;  %v4349_v60 = vadd.f32 %v4273_v39, %v811_v47 }
 0x1e8   :  { %v4352_v35 = vadd.f32 %v4273_v39, %v812_v21  ;;  %v4355_v1 = vadd.f32 %v4273_v39, %v813_v13  ;;  %v4358_v44 = vadd.f32 %v4273_v39, %v814_v34  ;;  %v749_v6 = vmul.f32 %v4262_v51, %v4061_v0  ;;  %v3510_v13 = vld [vmem:[%s5041_s4] sm:$0xff]  }
 0x1e9   :  { %v4363_v49 = vadd.f32 %v4273_v39, %v815_v63  ;;  %v4366_v53 = vadd.f32 %v4273_v39, %v816_v23  ;;  %v750_v57 = vmul.f32 %v4262_v51, %v4065_v2  ;;  %v751_v12 = vmul.f32 %v4262_v51, %v4069_v4 }
 0x1ea   :  { %v752_v58 = vmul.f32 %v4262_v51, %v4077_v50  ;;  %v753_v5 = vmul.f32 %v4262_v51, %v4083_v19  ;;  %v786_v0 = vmul.f32 %v4267_v32, %v748_v24  ;;  %v787_v27 = vmul.f32 %v4267_v32, %v749_v6 }
 0x1eb   :  { %v788_v7 = vmul.f32 %v4267_v32, %v750_v57  ;;  %v789_v11 = vmul.f32 %v4267_v32, %v751_v12  ;;  %v4386_v50 = vmul.f32 %v4262_v51, %v4087_v22  ;;  %vm887_vm2 = vcmp.ge.f32.partialorder %v4277_v45, 0.0 }
 0x1ec   :  { %v790_v14 = vmul.f32 %v4267_v32, %v752_v58  ;;  %v791_v2 = vmul.f32 %v4267_v32, %v753_v5  ;;  %v824_v4 = vadd.f32 %v4273_v39, %v786_v0  ;;  %v825_v17 = vadd.f32 %v4273_v39, %v787_v27 }
 0x1ed   :  { %v919_v19 = vmul.f32 0.2, %v4277_v45  ;;  %v4392_v16 = vmul.f32 %v4262_v51, %v4091_v9  ;;  %v826_v20 = vadd.f32 %v4273_v39, %v788_v7  ;;  %v827_v55 = vadd.f32 %v4273_v39, %v789_v11 }
 0x1ee   :  { %v4397_v28 = vadd.f32 %v4273_v39, %v790_v14  ;;  %v4400_v36 = vadd.f32 %v4273_v39, %v791_v2  ;;  %vm856_vm3 = vcmp.ge.f32.partialorder %v824_v4, 0.0  ;;  %vm857_vm4 = vcmp.ge.f32.partialorder %v825_v17, 0.0 }
 0x1ef   :  { %vm872_vm5 = vcmp.ge.f32.partialorder %v4322_v15, 0.0  ;;  %vm873_vm6 = vcmp.ge.f32.partialorder %v4325_v3, 0.0  ;;  %v888_v22 = vmul.f32 0.2, %v824_v4  ;;  %vm874_vm7 = vcmp.ge.f32.partialorder %v4328_v29, 0.0 }
 0x1f0   :  { %vm876_vm9 = vcmp.ge.f32.partialorder %v4334_v61, 0.0  ;;  %vm877_vm10 = vcmp.ge.f32.partialorder %v4337_v18, 0.0  ;;  %vm878_vm11 = vcmp.ge.f32.partialorder %v4340_v62, 0.0  ;;  %vm879_vm12 = vcmp.ge.f32.partialorder %v4343_v31, 0.0 }
 0x1f1   :  { %vm880_vm13 = vcmp.ge.f32.partialorder %v4346_v46, 0.0  ;;  %v889_v9 = vmul.f32 0.2, %v825_v17  ;;  %vm883_vm1 = vcmp.ge.f32.partialorder %v4355_v1, 0.0  ;;  %vm884_vm0 = vcmp.ge.f32.partialorder %v4358_v44, 0.0 }
 0x1f2   :  { %vm885_vm8 = vcmp.ge.f32.partialorder %v4363_v49, 0.0  ;;  %v904_v25 = vmul.f32 0.2, %v4322_v15  ;;  %v905_v43 = vmul.f32 0.2, %v4325_v3  ;;  %v920_v48 = vsel %vm856_vm3, %v824_v4, %v888_v22 }
 0x1f3   :  { %v4422_v54 = vsel %vm887_vm2, %v4277_v45, %v919_v19  ;;  %v906_v33 = vmul.f32 0.2, %v4328_v29  ;;  %vm858_vm15 = vcmp.ge.f32.partialorder %v826_v20, 0.0  ;;  %vm859_vm14 = vcmp.ge.f32.partialorder %v827_v55, 0.0 }
 0x1f4   :  { %v890_v37 = vmul.f32 0.2, %v826_v20  ;;  %v907_v41 = vmul.f32 0.2, %v4331_v40  ;;  %v908_v47 = vmul.f32 0.2, %v4334_v61  ;;  %v921_v34 = vsel %vm857_vm4, %v825_v17, %v889_v9 }
 0x1f5   :  { %v891_v21 = vmul.f32 0.2, %v827_v55  ;;  %v909_v63 = vmul.f32 0.2, %v4337_v18  ;;  %v910_v45 = vmul.f32 0.2, %v4340_v62  ;;  %v4444_v14 = vsel %vm872_vm5, %v4322_v15, %v904_v25 }
 0x1f6   :  { %v911_v23 = vmul.f32 0.2, %v4343_v31  ;;  %v922_v24 = vsel %vm858_vm15, %v826_v20, %v890_v37  ;;  %v912_v6 = vmul.f32 0.2, %v4346_v46  ;;  %v913_v57 = vmul.f32 0.2, %v4349_v60 }
 0x1f7   :  { %v914_v12 = vmul.f32 0.2, %v4352_v35  ;;  %v923_v58 = vsel %vm859_vm14, %v827_v55, %v891_v21  ;;  %v915_v5 = vmul.f32 0.2, %v4355_v1  ;;  %v916_v0 = vmul.f32 0.2, %v4358_v44 }
 0x1f8   :  { %v917_v27 = vmul.f32 0.2, %v4363_v49  ;;  %v953_v7 = vpack.c.bf16 %v923_v58, %v922_v24  ;;  %v918_v11 = vmul.f32 0.2, %v4366_v53  ;;  %v4449_v2 = vsel %vm873_vm6, %v4325_v3, %v905_v43  ;;  %v3513_v58 = vld [vmem:[%s5041_s4 + $0x20] sm:$0xff]  }
 0x1f9   :  { %v4454_v4 = vsel %vm874_vm7, %v4328_v29, %v906_v33  ;;  %vm5066_vm2 = vcmask 130048   ;;  %v960_v17 = vpack.c.bf16 %v4449_v2, %v4444_v14  ;;  %vm5067_vm3 = vcmp.ge.f32.partialorder %v4331_v40, 0.0  ;;  %v3520_v14 = vld [vmem:[%s5041_s4 + $0x58] sm:$0xff]   ;;  %v3521_v2 = vld [vmem:[%s5041_s4 + $0x60] sm:$0xff]  }
 0x1fa   :  { %3348 = vmatmul.mubr.msk.bf16.vlgmr.msra.gmra.mxu1 %vm5066_vm2, %v953_v7  ;;  %v4462_v15 = vsel %vm5067_vm3, %v4331_v40, %v907_v41  ;;  %v4467_v3 = vsel %vm876_vm9, %v4334_v61, %v908_v47  ;;  %v4472_v29 = vsel %vm877_vm10, %v4337_v18, %v909_v63  ;;  %vm886_vm4 = vcmp.ge.f32.partialorder %v4366_v53, 0.0  ;;  %vm5073_vm14 = vmmov %vm5066_vm2 }
 0x1fb   :  { %3352 = vmatpush3.bf16.msra.mxu1 %v3510_v13  ;;  %vm5068_vm5 = vmmov 0   ;;  %v961_v40 = vpack.c.bf16 %v4462_v15, %v4454_v4  ;;  %v962_v19 = vpack.c.bf16 %v4472_v29, %v4467_v3  ;;  %v4484_v61 = vsel %vm878_vm11, %v4340_v62, %v910_v45  ;;  %vm5072_vm11 = vmmov %vm5066_vm2  ;;  %v3522_v4 = vld [vmem:[%s5041_s4 + $0x68] sm:$0xff]   ;;  %v3524_v15 = vld [vmem:[%s5041_s4 + $0x78] sm:$0xff]  }
 0x1fc   :  { %3353 = vmatprep.mubr.msk.bf16.mxu1 %vm5068_vm5, %v3687_v52  ;;  %3357 = vmatprep.subr.bf16.mxu1 %v3687_v52  ;;  %v4490_v18 = vsel %vm879_vm12, %v4343_v31, %v911_v23  ;;  %v4495_v20 = vsel %vm880_vm13, %v4346_v46, %v912_v6  ;;  %vm5069_vm6 = vcmp.ge.f32.partialorder %v4349_v60, 0.0  ;;  %vm5070_vm7 = vcmp.ge.f32.partialorder %v4352_v35, 0.0  ;;  %v3525_v3 = vld [vmem:[%s5044_s8 + $0x70] ss:$8 sps:$4 sm:$0xff]   ;;  %v3527_v29 = vld [vmem:[%s5044_s8 + $0x74] ss:$8 sps:$4 sm:$0xff]  }
 0x1fd   :  { %v4500_v55 = vsel %vm5069_vm6, %v4349_v60, %v913_v57  ;;  %v4505_v62 = vsel %vm5070_vm7, %v4352_v35, %v914_v12  ;;  %v963_v22 = vpack.c.bf16 %v4490_v18, %v4484_v61  ;;  %v4514_v46 = vsel %vm883_vm1, %v4355_v1, %v915_v5  ;;  %v3511_v1 = vld [vmem:[%s5041_s4 + $0x10] sm:$0xff]   ;;  %1995 = vmatprep.subr.bf16.mxu0 %v3527_v29  ;;  %v3534_v61 = vld [vmem:[%s5044_s8 + $0x40] ss:$8 sps:$4 sm:$0xff]   ;;  %v3536_v18 = vld [vmem:[%s5044_s8 + $0x44] ss:$8 sps:$4 sm:$0xff]  }
 0x1fe   :  { %v964_v31 = vpack.c.bf16 %v4500_v55, %v4495_v20  ;;  %v4519_v60 = vsel %vm884_vm0, %v4358_v44, %v916_v0  ;;  %v965_v35 = vpack.c.bf16 %v4514_v46, %v4505_v62  ;;  %v4526_v9 = vsel %vm885_vm8, %v4363_v49, %v917_v27  ;;  %vm5071_vm8 = vmmov %vm5066_vm2  ;;  %1996 = vmatpush1.bf16.msra.mxu0 %v3525_v3  ;;  %v4787_v3 = vld [vmem:[%s5045_s10 + $0x20] ss:$8 sps:$4 sm:$0xff]   ;;  %v4792_v29 = vld [vmem:[%s5045_s10 + $0x14] ss:$8 sps:$4 sm:$0xff]  }
 0x1ff   :  { %v4531_v25 = vsel %vm886_vm4, %v4366_v53, %v918_v11  ;;  %v966_v44 = vpack.c.bf16 %v4526_v9, %v4519_v60  ;;  %v952_v33 = vpack.c.bf16 %v921_v34, %v920_v48  ;;  %v792_v49 = vmul.f32 %v4267_v32, %v4386_v50  ;;  %v3512_v34 = vld [vmem:[%s5041_s4 + $0x18] sm:$0xff]   ;;  %vm5074_vm3 = vmmov %vm5071_vm8 }
 0x200   :  { %v967_v43 = vpack.c.bf16 %v4422_v54, %v4531_v25  ;;  %v793_v37 = vmul.f32 %v4267_v32, %v4392_v16  ;;  %v892_v53 = vmul.f32 0.2, %v4397_v28  ;;  %v893_v41 = vmul.f32 0.2, %v4400_v36  ;;  %vm5075_vm7 = vmmov %vm5074_vm3  ;;  %v3531_v54 = vld [vmem:[%s5044_s8 + $0x50] ss:$8 sps:$4 sm:$0xff]  }
 0x201   :  { %vm860_vm0 = vcmp.ge.f32.partialorder %v4397_v28, 0.0  ;;  %vm861_vm1 = vcmp.ge.f32.partialorder %v4400_v36, 0.0  ;;  %v756_v50 = vmul.f32 %v4262_v51, %v4095_v10  ;;  %v757_v16 = vmul.f32 %v4262_v51, %v4106_v38 }
 0x202   :  { %3354 = vmatmul.mubr.msk.bf16.vlgmr.msra.gmra.mxu1 %vm5071_vm8, %v952_v33  ;;  %v830_v48 = vadd.f32 %v4273_v39, %v792_v49  ;;  %v831_v47 = vadd.f32 %v4273_v39, %v793_v37  ;;  %v924_v21 = vsel %vm860_vm0, %v4397_v28, %v892_v53  ;;  %v925_v13 = vsel %vm861_vm1, %v4400_v36, %v893_v41  ;;  %v3514_v53 = vld [vmem:[%s5041_s4 + $0x28] sm:$0xff]   ;;  %vm5076_vm8 = vmmov %vm5074_vm3 }
 0x203   :  { %3358 = vmatpush3.bf16.msra.mxu1 %v3511_v1  ;;  %3359 = vmatprep.mubr.msk.bf16.mxu1 %vm5068_vm5, %v3687_v52  ;;  %v954_v63 = vpack.c.bf16 %v925_v13, %v924_v21  ;;  %v794_v10 = vmul.f32 %v4267_v32, %v756_v50  ;;  %v795_v45 = vmul.f32 %v4267_v32, %v757_v16 }
 0x204   :  { %3363 = vmatprep.subr.bf16.mxu1 %v3687_v52  ;;  %v894_v38 = vmul.f32 0.2, %v830_v48  ;;  %v895_v23 = vmul.f32 0.2, %v831_v47  ;;  %vm862_vm9 = vcmp.ge.f32.partialorder %v830_v48, 0.0  ;;  %vm863_vm10 = vcmp.ge.f32.partialorder %v831_v47, 0.0 }
 0x205   :  { %v758_v28 = vmul.f32 %v4262_v51, %v4110_v42  ;;  %v759_v36 = vmul.f32 %v4262_v51, %v4138_v56  ;;  %v832_v24 = vadd.f32 %v4273_v39, %v794_v10  ;;  %v833_v6 = vadd.f32 %v4273_v39, %v795_v45  ;;  %v3515_v10 = vld [vmem:[%s5041_s4 + $0x30] sm:$0xff]  }
 0x206   :  { %v926_v57 = vsel %vm862_vm9, %v830_v48, %v894_v38  ;;  %v927_v12 = vsel %vm863_vm10, %v831_v47, %v895_v23  ;;  %v760_v56 = vmul.f32 %v4262_v51, %v4145_v8  ;;  %v761_v11 = vmul.f32 %v4262_v51, %v4149_v26  ;;  %vm5077_vm9 = vmmov %vm5074_vm3 }
 0x207   :  { %v955_v5 = vpack.c.bf16 %v927_v12, %v926_v57  ;;  %v796_v0 = vmul.f32 %v4267_v32, %v758_v28  ;;  %v797_v42 = vmul.f32 %v4267_v32, %v759_v36  ;;  %v896_v27 = vmul.f32 0.2, %v832_v24  ;;  %vm5078_vm10 = vmmov %vm5074_vm3 }
 0x208   :  { %v897_v7 = vmul.f32 0.2, %v833_v6  ;;  %vm864_vm12 = vcmp.ge.f32.partialorder %v832_v24, 0.0  ;;  %vm865_vm13 = vcmp.ge.f32.partialorder %v833_v6, 0.0  ;;  %v798_v50 = vmul.f32 %v4267_v32, %v760_v56 }
 0x209   :  { %v834_v1 = vadd.f32 %v4273_v39, %v796_v0  ;;  %v835_v33 = vadd.f32 %v4273_v39, %v797_v42  ;;  %v928_v49 = vsel %vm864_vm12, %v832_v24, %v896_v27  ;;  %v799_v8 = vmul.f32 %v4267_v32, %v761_v11  ;;  %v3518_v42 = vld [vmem:[%s5041_s4 + $0x48] sm:$0xff]   ;;  %v3519_v27 = vld [vmem:[%s5041_s4 + $0x50] sm:$0xff]   ;;  %vm5080_vm12 = vmmov %vm5074_vm3 }
 0x20a   :  { %3360 = vmatmul.mubr.msk.bf16.vlgmr.msra.gmra.mxu1 %vm5072_vm11, %v954_v63  ;;  %v929_v37 = vsel %vm865_vm13, %v833_v6, %v897_v7  ;;  %v762_v26 = vmul.f32 %v4262_v51, %v4155_v30  ;;  %v763_v47 = vmul.f32 %v4262_v51, %v4161_v59  ;;  %v836_v21 = vadd.f32 %v4273_v39, %v798_v50  ;;  %vm5079_vm11 = vmmov %vm5074_vm3 }
 0x20b   :  { %3364 = vmatpush3.bf16.msra.mxu1 %v3512_v34  ;;  %3365 = vmatprep.mubr.msk.bf16.mxu1 %vm5068_vm5, %v3687_v52  ;;  %v956_v41 = vpack.c.bf16 %v929_v37, %v928_v49  ;;  %v898_v16 = vmul.f32 0.2, %v834_v1  ;;  %v899_v48 = vmul.f32 0.2, %v835_v33  ;;  %vm866_vm15 = vcmp.ge.f32.partialorder %v834_v1, 0.0  ;;  %vm5081_vm13 = vmmov %vm5074_vm3 }
 0x20c   :  { %3369 = vmatprep.subr.bf16.mxu1 %v3687_v52  ;;  %vm867_vm2 = vcmp.ge.f32.partialorder %v835_v33, 0.0  ;;  %v837_v13 = vadd.f32 %v4273_v39, %v799_v8  ;;  %v800_v38 = vmul.f32 %v4267_v32, %v762_v26  ;;  %v801_v30 = vmul.f32 %v4267_v32, %v763_v47  ;;  %v3516_v32 = vld [vmem:[%s5041_s4 + $0x38] sm:$0xff]  }
 0x20d   :  { %v930_v34 = vsel %vm866_vm15, %v834_v1, %v898_v16  ;;  %v931_v63 = vsel %vm867_vm2, %v835_v33, %v899_v48  ;;  %v900_v23 = vmul.f32 0.2, %v836_v21  ;;  %vm868_vm4 = vcmp.ge.f32.partialorder %v836_v21, 0.0  ;;  %vm5083_vm15 = vmmov %vm5074_vm3 }
 0x20e   :  { %v957_v45 = vpack.c.bf16 %v931_v63, %v930_v34  ;;  %v901_v28 = vmul.f32 0.2, %v837_v13  ;;  %vm869_vm6 = vcmp.ge.f32.partialorder %v837_v13, 0.0  ;;  %v838_v59 = vadd.f32 %v4273_v39, %v800_v38  ;;  %vm5084_vm2 = vmmov %vm5074_vm3 }
 0x20f   :  { %v839_v51 = vadd.f32 %v4273_v39, %v801_v30  ;;  %v932_v36 = vsel %vm868_vm4, %v836_v21, %v900_v23 }
 0x210   :  { %v933_v24 = vsel %vm869_vm6, %v837_v13, %v901_v28  ;;  %v902_v57 = vmul.f32 0.2, %v838_v59  ;;  %vm870_vm0 = vcmp.ge.f32.partialorder %v838_v59, 0.0  ;;  %v3539_v28 = vld [vmem:[%s5044_s8 + $0x34] ss:$8 sps:$4 sm:$0xff]   ;;  %vm2086_vm6 = vcmask 523264  }
 0x211   :  { %v958_v6 = vpack.c.bf16 %v933_v24, %v932_v36  ;;  %v903_v12 = vmul.f32 0.2, %v839_v51  ;;  %vm871_vm1 = vcmp.ge.f32.partialorder %v839_v51, 0.0  ;;  %v3542_v24 = vld [vmem:[%s5044_s8 + $0x24] ss:$8 sps:$4 sm:$0xff]  }
 0x212   :  { %3366 = vmatmul.mubr.msk.bf16.vlgmr.msra.gmra.mxu1 %vm5073_vm14, %v955_v5  ;;  %v934_v39 = vsel %vm870_vm0, %v838_v59, %v902_v57  ;;  %v3517_v5 = vld [vmem:[%s5041_s4 + $0x40] sm:$0xff]   ;;  %vm5082_vm14 = vmmov %vm5074_vm3  ;;  %v3537_v59 = vld [vmem:[%s5044_s8 + $0x30] ss:$8 sps:$4 sm:$0xff]   ;;  %vm2840_vm0 = vcmask 254976  }
 0x213   :  { %3370 = vmatpush3.bf16.msra.mxu1 %v3513_v58  ;;  %3371 = vmatprep.mubr.msk.bf16.mxu1 %vm5068_vm5, %v3687_v52  ;;  %v935_v58 = vsel %vm871_vm1, %v839_v51, %v903_v12  ;;  %v3543_v57 = vld [vmem:[%s5044_s8 + $0x10] ss:$8 sps:$4 sm:$0xff]   ;;  %v3545_v12 = vld [vmem:[%s5044_s8 + $0x14] ss:$8 sps:$4 sm:$0xff]  }
 0x214   :  { %3375 = vmatprep.subr.bf16.mxu1 %v3687_v52  ;;  %v959_v0 = vpack.c.bf16 %v935_v58, %v934_v39  ;;  %v3548_v58 = vld [vmem:[%s5044_s8 + $0x4] ss:$8 sps:$4 sm:$0xff]  }
 0x21a   :  { %3372 = vmatmul.mubr.msk.bf16.vlgmr.msra.gmra.mxu1 %vm5074_vm3, %v956_v41  ;;  %vm5085_vm3 = vmmov %vm5084_vm2 }
 0x21b   :  { %3376 = vmatpush3.bf16.msra.mxu1 %v3514_v53  ;;  %3377 = vmatprep.mubr.msk.bf16.mxu1 %vm5068_vm5, %v3687_v52 }
 0x21c   :  { %3381 = vmatprep.subr.bf16.mxu1 %v3687_v52 }
 0x222   :  { %3378 = vmatmul.mubr.msk.bf16.vlgmr.msra.gmra.mxu1 %vm5075_vm7, %v957_v45  ;;  %vm2832_vm7 = vcmask 1041408  }
 0x223   :  { %3382 = vmatpush3.bf16.msra.mxu1 %v3515_v10  ;;  %3383 = vmatprep.mubr.msk.bf16.mxu1 %vm5068_vm5, %v3687_v52 }
 0x224   :  { %3387 = vmatprep.subr.bf16.mxu1 %v3687_v52 }
 0x22a   :  { %3384 = vmatmul.mubr.msk.bf16.vlgmr.msra.gmra.mxu1 %vm5076_vm8, %v958_v6 }
 0x22b   :  { %3388 = vmatpush3.bf16.msra.mxu1 %v3516_v32  ;;  %3389 = vmatprep.mubr.msk.bf16.mxu1 %vm5068_vm5, %v3687_v52  ;;  %v3540_v32 = vld [vmem:[%s5044_s8 + $0x20] ss:$8 sps:$4 sm:$0xff]  }
 0x22c   :  { %3393 = vmatprep.subr.bf16.mxu1 %v3687_v52 }
 0x232   :  { %3390 = vmatmul.mubr.msk.bf16.vlgmr.msra.gmra.mxu1 %vm5077_vm9, %v959_v0  ;;  %v4764_v0 = vld [vmem:[%s5045_s10 + $0x34] ss:$8 sps:$4 sm:$0xff]   ;;  %vm2998_vm9 = vcmask 261120  }
 0x233   :  { %3394 = vmatpush3.bf16.msra.mxu1 %v3517_v5  ;;  %3395 = vmatprep.mubr.msk.bf16.mxu1 %vm5068_vm5, %v3687_v52  ;;  %v3689_v5 = vmov 0  }
 0x234   :  { %3399 = vmatprep.subr.bf16.mxu1 %v3687_v52  ;;  %2027 = vmatprep.mubr.bf16.mxu0 %v3689_v5 }
 0x23a   :  { %3396 = vmatmul.mubr.msk.bf16.vlgmr.msra.gmra.mxu1 %vm5078_vm10, %v960_v17  ;;  %v3523_v17 = vld [vmem:[%s5041_s4 + $0x70] sm:$0xff]   ;;  %vm3042_vm10 = vcmask 197632  }
 0x23b   :  { %3400 = vmatpush3.bf16.msra.mxu1 %v3518_v42  ;;  %3401 = vmatprep.mubr.msk.bf16.mxu1 %vm5068_vm5, %v3687_v52 }
 0x23c   :  { %3405 = vmatprep.subr.bf16.mxu1 %v3687_v52 }
 0x242   :  { %3402 = vmatmul.mubr.msk.bf16.vlgmr.msra.gmra.mxu1 %vm5079_vm11, %v961_v40  ;;  %v3528_v40 = vld [vmem:[%s5044_s8 + $0x60] ss:$8 sps:$4 sm:$0xff]  }
 0x243   :  { %3406 = vmatpush3.bf16.msra.mxu1 %v3519_v27  ;;  %3407 = vmatprep.mubr.msk.bf16.mxu1 %vm5068_vm5, %v3687_v52  ;;  %v3546_v27 = vld [vmem:[%s5044_s8] ss:$8 sps:$4 sm:$0xff]  }
 0x244   :  { %3411 = vmatprep.subr.bf16.mxu1 %v3687_v52 }
 0x24a   :  { %3408 = vmatmul.mubr.msk.bf16.vlgmr.msra.gmra.mxu1 %vm5080_vm12, %v962_v19  ;;  %v3533_v19 = vld [vmem:[%s5044_s8 + $0x54] ss:$8 sps:$4 sm:$0xff]  }
 0x24b   :  { %3412 = vmatpush3.bf16.msra.mxu1 %v3520_v14  ;;  %3413 = vmatprep.mubr.msk.bf16.mxu1 %vm5068_vm5, %v3687_v52 }
 0x24c   :  { %3417 = vmatprep.subr.bf16.mxu1 %v3687_v52 }
 0x252   :  { %3414 = vmatmul.mubr.msk.bf16.vlgmr.msra.gmra.mxu1 %vm5081_vm13, %v963_v22 }
 0x253   :  { %3418 = vmatpush3.bf16.msra.mxu1 %v3521_v2  ;;  %3419 = vmatprep.mubr.msk.bf16.mxu1 %vm5068_vm5, %v3687_v52  ;;  %v4774_v2 = vld [vmem:[%s5045_s10 + $0x30] ss:$8 sps:$4 sm:$0xff]  }
 0x254   :  { %3423 = vmatprep.subr.bf16.mxu1 %v3687_v52 }
 0x25a   :  { %3420 = vmatmul.mubr.msk.bf16.vlgmr.msra.gmra.mxu1 %vm5082_vm14, %v964_v31 }
 0x25b   :  { %3424 = vmatpush3.bf16.msra.mxu1 %v3522_v4  ;;  %3425 = vmatprep.mubr.msk.bf16.mxu1 %vm5068_vm5, %v3687_v52  ;;  %v4779_v4 = vld [vmem:[%s5045_s10 + $0x24] ss:$8 sps:$4 sm:$0xff]  }
 0x25c   :  { %3429 = vmatprep.subr.bf16.mxu1 %v3687_v52 }
 0x262   :  { %3426 = vmatmul.mubr.msk.bf16.vlgmr.msra.gmra.mxu1 %vm5083_vm15, %v965_v35 }
 0x263   :  { %3430 = vmatpush3.bf16.msra.mxu1 %v3523_v17  ;;  %3431 = vmatprep.mubr.msk.bf16.mxu1 %vm5068_vm5, %v3687_v52 }
 0x264   :  { %3435 = vmatprep.subr.bf16.mxu1 %v3687_v52 }
 0x26a   :  { %3432 = vmatmul.mubr.msk.bf16.vlgmr.msra.gmra.mxu1 %vm5084_vm2, %v966_v44 }
 0x26b   :  { %3436 = vmatpush3.bf16.msra.mxu1 %v3524_v15  ;;  %3437 = vmatprep.mubr.msk.bf16.mxu1 %vm5068_vm5, %v3687_v52  ;;  %v3530_v52 = vld [vmem:[%s5044_s8 + $0x64] ss:$8 sps:$4 sm:$0xff]  }
 0x26c   :  { %1997 = vmatprep.subr.bf16.mxu0 %v3530_v52  ;;  %2170 = vmatprep.subr.bf16.mxu1 %v4764_v0 }
 0x26d   :  { %1998 = vmatpush1.bf16.msra.mxu0 %v3528_v40 }
 0x26e   :  { %1999 = vmatprep.subr.bf16.mxu0 %v3533_v19  ;;  %v4804_v19 = vld [vmem:[%s5045_s10 + $0x4] ss:$8 sps:$4 sm:$0xff]  }
 0x271   :  { %2000 = vmatpush1.bf16.msra.mxu0 %v3531_v54  ;;  %v4799_v54 = vld [vmem:[%s5045_s10 + $0x10] ss:$8 sps:$4 sm:$0xff]  }
 0x272   :  { %3438 = vmatmul.mubr.msk.bf16.vlgmr.msra.gmra.mxu1 %vm5085_vm3, %v967_v43  ;;  %2001 = vmatprep.subr.bf16.mxu0 %v3536_v18 }
 0x273   :  { %2194 = vmatprep.mubr.bf16.mxu1 %v3689_v5  ;;  %2171 = vmatpush1.bf16.msra.mxu1 %v4774_v2 }
 0x274   :  { %2172 = vmatprep.subr.bf16.mxu1 %v4779_v4 }
 0x275   :  { %2002 = vmatpush1.bf16.msra.mxu0 %v3534_v61 }
 0x276   :  { %2003 = vmatprep.subr.bf16.mxu0 %v3539_v28 }
 0x277   :  { %2173 = vmatpush1.bf16.msra.mxu1 %v4787_v3 }
 0x278   :  { %2174 = vmatprep.subr.bf16.mxu1 %v4792_v29 }
 0x279   :  { %2004 = vmatpush1.bf16.msra.mxu0 %v3537_v59 }
 0x27a   :  { %2005 = vmatprep.subr.bf16.mxu0 %v3542_v24 }
 0x27b   :  { %2175 = vmatpush1.bf16.msra.mxu1 %v4799_v54 }
 0x27c   :  { %2176 = vmatprep.subr.bf16.mxu1 %v4804_v19 }
 0x27d   :  { %2006 = vmatpush1.bf16.msra.mxu0 %v3540_v32 }
 0x27e   :  { %2007 = vmatprep.subr.bf16.mxu0 %v3545_v12  ;;  %v3130_v12 = vld [vmem:[%s5046_s5] ss:$0 sm:$0xff] }
 0x281   :  { %2008 = vmatpush1.bf16.msra.mxu0 %v3543_v57 }
 0x282   :  { %2009 = vmatprep.subr.bf16.mxu0 %v3548_v58 }
 0x285   :  { %2010 = vmatpush1.bf16.msra.mxu0 %v3546_v27 }
 0x286   :  { %2098 = vmatprep.subr.bf16.mxu0 %v4764_v0 }
 0x2ba   :  { %v1015_v20 = vpop.f32.mrf.mxu1 }
 0x2bc   :  { %v3349_v55 = vpop.f32.mrf.mxu1 }
 0x2be   :  { %v1018_v62 = vpop.f32.mrf.mxu1 }
 0x2c0   :  { %v3350_v22 = vpop.f32.mrf.mxu1 }
 0x2c2   :  { %v1065_v31 = vpop.f32.mrf.mxu1 }
 0x2c3   :  { %v1066_v46 = vadd.f32 %v1065_v31, %v1015_v20  ;;  %v4811_v20 = vld [vmem:[%s5045_s10] ss:$8 sps:$4 sm:$0xff]  }
 0x2c4   :  { %v3355_v60 = vpop.f32.mrf.mxu1  ;;  %2177 = vmatpush1.bf16.msra.mxu1 %v4811_v20 }
 0x2c5   :  { %2334 = vmatprep.subr.bf16.mxu1 %v4764_v0 }
 0x2c6   :  { %v1068_v35 = vpop.f32.mrf.mxu1 }
 0x2c7   :  { %v1069_v9 = vadd.f32 %v1068_v35, %v1018_v62 }
 0x2c8   :  { %v3356_v25 = vpop.f32.mrf.mxu1 }
 0x2ca   :  { %v1117_v44 = vpop.f32.mrf.mxu1 }
 0x2cb   :  { %v1124_v43 = vadd.f32 %v1117_v44, %v1066_v46 }
 0x2cc   :  { %v3361_v7 = vpop.f32.mrf.mxu1 }
 0x2ce   :  { %v1120_v56 = vpop.f32.mrf.mxu1 }
 0x2cf   :  { %v1125_v11 = vadd.f32 %v1120_v56, %v1069_v9 }
 0x2d0   :  { %v3362_v1 = vpop.f32.mrf.mxu1 }
 0x2d2   :  { %v1171_v33 = vpop.f32.mrf.mxu1 }
 0x2d3   :  { %v1178_v49 = vadd.f32 %v1171_v33, %v1124_v43 }
 0x2d4   :  { %v3367_v37 = vpop.f32.mrf.mxu1 }
 0x2d6   :  { %v1174_v53 = vpop.f32.mrf.mxu1 }
 0x2d7   :  { %v1179_v41 = vadd.f32 %v1174_v53, %v1125_v11 }
 0x2d8   :  { %v3368_v50 = vpop.f32.mrf.mxu1 }
 0x2da   :  { %v1225_v8 = vpop.f32.mrf.mxu1 }
 0x2db   :  { %v1232_v16 = vadd.f32 %v1225_v8, %v1178_v49 }
 0x2dc   :  { %v3373_v48 = vpop.f32.mrf.mxu1 }
 0x2de   :  { %v1228_v26 = vpop.f32.mrf.mxu1 }
 0x2df   :  { %v4727_v47 = vadd.f32 %v1228_v26, %v1179_v41 }
 0x2e0   :  { %v3374_v21 = vpop.f32.mrf.mxu1 }
 0x2e2   :  { %v1279_v13 = vpop.f32.mrf.mxu1 }
 0x2e3   :  { %v4729_v34 = vadd.f32 %v1279_v13, %v1232_v16 }
 0x2e4   :  { %v3379_v63 = vpop.f32.mrf.mxu1 }
 0x2e6   :  { %v4731_v10 = vpop.f32.mrf.mxu1 }
 0x2e7   :  { %v1287_v1 = vadd.f32 %v4731_v10, %v4727_v47 }
 0x2e8   :  { %v3380_v45 = vpop.f32.mrf.mxu1 }
 0x2ea   :  { %v4733_v38 = vpop.f32.mrf.mxu1 }
 0x2eb   :  { %v1340_v33 = vadd.f32 %v4733_v38, %v4729_v34 }
 0x2ec   :  { %v3385_v30 = vpop.f32.mrf.mxu1 }
 0x2ee   :  { %v4735_v23 = vpop.f32.mrf.mxu1 }
 0x2ef   :  { %v1341_v37 = vadd.f32 %v4735_v23, %v1287_v1 }
 0x2f0   :  { %v3386_v51 = vpop.f32.mrf.mxu1 }
 0x2f2   :  { %v4743_v36 = vpop.f32.mrf.mxu1 }
 0x2f3   :  { %v1394_v53 = vadd.f32 %v4743_v36, %v1340_v33 }
 0x2f4   :  { %v3391_v6 = vpop.f32.mrf.mxu1 }
 0x2f6   :  { %v1390_v39 = vpop.f32.mrf.mxu1 }
 0x2f7   :  { %v1395_v50 = vadd.f32 %v1390_v39, %v1341_v37 }
 0x2f8   :  { %v3392_v42 = vpop.f32.mrf.mxu1 }
 0x2fa   :  { %v1441_v14 = vpop.f32.mrf.mxu1 }
 0x2fb   :  { %v1448_v8 = vadd.f32 %v1441_v14, %v1394_v53 }
 0x2fc   :  { %v3397_v17 = vpop.f32.mrf.mxu1 }
 0x2fe   :  { %v1444_v15 = vpop.f32.mrf.mxu1 }
 0x2ff   :  { %v1449_v48 = vadd.f32 %v1444_v15, %v1395_v50 }
 0x300   :  { %v3398_v40 = vpop.f32.mrf.mxu1 }
 0x302   :  { %v1495_v52 = vpop.f32.mrf.mxu1 }
 0x303   :  { %v1502_v26 = vadd.f32 %v1495_v52, %v1448_v8 }
 0x304   :  { %v3403_v61 = vpop.f32.mrf.mxu1 }
 0x306   :  { %v1498_v18 = vpop.f32.mrf.mxu1 }
 0x307   :  { %v1503_v13 = vadd.f32 %v1498_v18, %v1449_v48 }
 0x308   :  { %v3404_v55 = vpop.f32.mrf.mxu1 }
 0x30a   :  { %v1549_v62 = vpop.f32.mrf.mxu1 }
 0x30b   :  { %v1556_v63 = vadd.f32 %v1549_v62, %v1502_v26 }
 0x30c   :  { %v3409_v22 = vpop.f32.mrf.mxu1 }
 0x30e   :  { %v1552_v31 = vpop.f32.mrf.mxu1 }
 0x30f   :  { %v1557_v30 = vadd.f32 %v1552_v31, %v1503_v13 }
 0x310   :  { %v3410_v46 = vpop.f32.mrf.mxu1 }
 0x312   :  { %v1603_v60 = vpop.f32.mrf.mxu1 }
 0x313   :  { %v1610_v47 = vadd.f32 %v1603_v60, %v1556_v63 }
 0x314   :  { %v3415_v35 = vpop.f32.mrf.mxu1 }
 0x316   :  { %v1606_v9 = vpop.f32.mrf.mxu1 }
 0x317   :  { %v1611_v28 = vadd.f32 %v1606_v9, %v1557_v30  ;;  %v1905_v30 = vlaneseq }
 0x318   :  { %v3416_v25 = vpop.f32.mrf.mxu1 }
 0x31a   :  { %v1657_v44 = vpop.f32.mrf.mxu1 }
 0x31b   :  { %v1664_v34 = vadd.f32 %v1657_v44, %v1610_v47  ;;  %v1906_v47 = vshrl.u32 %v1905_v30, 7 }
 0x31c   :  { %v3421_v43 = vpop.f32.mrf.mxu1 }
 0x31e   :  { %v1660_v7 = vpop.f32.mrf.mxu1 }
 0x31f   :  { %v1665_v59 = vadd.f32 %v1660_v7, %v1611_v28  ;;  %v1903_v28 = vld [vmem:[%s5049_s9] sm:$0x3]  ;;  %s3690_s9 = smov 64  }
 0x320   :  { %v3422_v56 = vpop.f32.mrf.mxu1 }
 0x322   :  { %v1711_v11 = vpop.f32.mrf.mxu1 }
 0x323   :  { %v1718_v23 = vadd.f32 %v1711_v11, %v1664_v34 }
 0x324   :  { %v3427_v49 = vpop.f32.mrf.mxu1 }
 0x325   :  { %v3131_v49 = vld [vmem:[%s5047_s6] ss:$0 sm:$0xff] }
 0x326   :  { %v1714_v41 = vpop.f32.mrf.mxu1 }
 0x327   :  { %v1719_v36 = vadd.f32 %v1714_v41, %v1665_v59  ;;  %v3132_v41 = vld [vmem:[%s5048_s7] ss:$0 sm:$0xff] }
 0x328   :  { %v3428_v16 = vpop.f32.mrf.mxu1 }
 0x32a   :  { %v1765_v21 = vpop.f32.mrf.mxu1 }
 0x32b   :  { %v1772_v24 = vadd.f32 %v1765_v21, %v1718_v23 }
 0x32c   :  { %v3433_v45 = vpop.f32.mrf.mxu1 }
 0x32e   :  { %v1768_v10 = vpop.f32.mrf.mxu1 }
 0x32f   :  { %v1773_v6 = vadd.f32 %v1768_v10, %v1719_v36  ;;  %v4849_v10 = vsub.s32 0, %v1906_v47 }
 0x330   :  { %v3434_v38 = vpop.f32.mrf.mxu1 }
 0x331   :  { %v4854_v38 = vsub.s32 1, %v1906_v47  ;;  %v1908_v23 = vrot.slane %v1903_v28, %v4849_v10 }
 0x332   :  { %v1819_v51 = vpop.f32.mrf.mxu1 }
 0x333   :  { %v1826_v57 = vadd.f32 %v1819_v51, %v1772_v24  ;;  %v1912_v36 = vrot.slane %v1903_v28, %v4854_v38 }
 0x334   :  { %v3439_v32 = vpop.f32.mrf.mxu1 }
 0x335   :  { %v1835_v27 = vadd.f32 %v3130_v12, %v1826_v57 }
 0x336   :  { %v1822_v39 = vpop.f32.mrf.mxu1 }
 0x337   :  { %v1827_v58 = vadd.f32 %v1822_v39, %v1773_v6 }
 0x338   :  { %v3440_v42 = vpop.f32.mrf.mxu1 }
 0x339   :  { %v1836_v14 = vadd.f32 %v3130_v12, %v1827_v58 }
 0x33b   :  { %v1839_v17 = vadd.f32 %v1836_v14, %v1835_v27 }
 0x33d   :  { %v1840_v15 = vrot.slane %v1839_v17, 4 }
 0x33f   :  { %v1841_v40 = vadd.f32 %v1840_v15, %v1839_v17 }
 0x341   :  { %v1842_v52 = vrot.slane %v1841_v40, 2 }
 0x343   :  { %v1843_v61 = vadd.f32 %v1842_v52, %v1841_v40 }
 0x345   :  { %v1844_v18 = vrot.slane %v1843_v61, 1 }
 0x347   :  { %v1845_v55 = vadd.f32 %v1844_v18, %v1843_v61 }
 0x349   :  { %v1847_v62 = vmul.f32 0.0625, %v1845_v55 }
 0x34b   :  { %v1848_v22 = vsub.f32 %v1835_v27, %v1847_v62  ;;  %v1849_v31 = vsub.f32 %v1836_v14, %v1847_v62 }
 0x34d   :  { %v1850_v46 = vmul.f32 %v1848_v22, %v1848_v22  ;;  %v1851_v60 = vmul.f32 %v1849_v31, %v1849_v31 }
 0x34f   :  { %v1852_v35 = vadd.f32 %v1851_v60, %v1850_v46 }
 0x351   :  { %v1853_v9 = vrot.slane %v1852_v35, 4 }
 0x353   :  { %v1854_v25 = vadd.f32 %v1853_v9, %v1852_v35 }
 0x355   :  { %v1855_v44 = vrot.slane %v1854_v25, 2 }
 0x357   :  { %v1856_v43 = vadd.f32 %v1855_v44, %v1854_v25 }
 0x359   :  { %v1857_v7 = vrot.slane %v1856_v43, 1 }
 0x35b   :  { %v1858_v56 = vadd.f32 %v1857_v7, %v1856_v43 }
 0x35d   :  { %v1859_v11 = vmul.f32 0.0625, %v1858_v56 }
 0x35f   :  { %v1860_v1 = vadd.f32 1e-05, %v1859_v11 }
 0x361   :  { %3585 = vrsqrt.f32 %v1860_v1 }
 0x36e   :  { %v3586_v33 = vpop.eup %3585 }
 0x36f   :  { %v1862_v37 = vmul.f32 %v3586_v33, %v1848_v22  ;;  %v1863_v53 = vmul.f32 %v3586_v33, %v1849_v31 }
 0x371   :  { %v1870_v50 = vmul.f32 %v3131_v49, %v1862_v37  ;;  %v1871_v8 = vmul.f32 %v3131_v49, %v1863_v53 }
 0x373   :  { %v1878_v16 = vadd.f32 %v3132_v41, %v1870_v50  ;;  %v1879_v48 = vadd.f32 %v3132_v41, %v1871_v8 }
 0x375   :  { %vm1881_vm5 = vcmp.ge.f32.partialorder %v1879_v48, 0.0  ;;  %v1882_v26 = vmul.f32 0.2, %v1878_v16  ;;  %v1883_v21 = vmul.f32 0.2, %v1879_v48  ;;  %vm1880_vm4 = vcmp.ge.f32.partialorder %v1878_v16, 0.0 }
 0x377   :  { %v1884_v13 = vsel %vm1880_vm4, %v1878_v16, %v1882_v26  ;;  %v1885_v63 = vsel %vm1881_vm5, %v1879_v48, %v1883_v21 }
 0x378   :  { %v1886_v45 = vpack.c.bf16 %v1885_v63, %v1884_v13 }
 0x37a   :  { %2028 = vmatmul.mubr.bf16.vlgmr.msra.gmra.mxu0 %v1886_v45 }
 0x37b   :  { %2099 = vmatpush1.bf16.msra.mxu0 %v4774_v2  ;;  %2122 = vmatprep.mubr.bf16.mxu0 %v3689_v5 }
 0x37c   :  { %2100 = vmatprep.subr.bf16.mxu0 %v4779_v4 }
 0x37f   :  { %2101 = vmatpush1.bf16.msra.mxu0 %v4787_v3 }
 0x380   :  { %2102 = vmatprep.subr.bf16.mxu0 %v4792_v29 }
 0x383   :  { %2103 = vmatpush1.bf16.msra.mxu0 %v4799_v54 }
 0x384   :  { %2104 = vmatprep.subr.bf16.mxu0 %v4804_v19 }
 0x387   :  { %2105 = vmatpush1.bf16.msra.mxu0 %v4811_v20 }
 0x388   :  { %2252 = vmatprep.subr.bf16.mxu0 %v4764_v0 }
 0x38a   :  { %2123 = vmatmul.mubr.bf16.vlgmr.msra.gmra.mxu0 %v3689_v5 }
 0x38b   :  { %2253 = vmatpush1.bf16.msra.mxu0 %v4774_v2  ;;  %2276 = vmatprep.mubr.bf16.mxu0 %v3689_v5 }
 0x38c   :  { %2254 = vmatprep.subr.bf16.mxu0 %v4779_v4 }
 0x38f   :  { %2255 = vmatpush1.bf16.msra.mxu0 %v4787_v3 }
 0x390   :  { %2256 = vmatprep.subr.bf16.mxu0 %v4792_v29 }
 0x393   :  { %2257 = vmatpush1.bf16.msra.mxu0 %v4799_v54 }
 0x394   :  { %2258 = vmatprep.subr.bf16.mxu0 %v4804_v19 }
 0x397   :  { %2259 = vmatpush1.bf16.msra.mxu0 %v4811_v20 }
 0x398   :  { %2416 = vmatprep.subr.bf16.mxu0 %v4764_v0 }
 0x43a   :  { %v2029_v34 = vpop.f32.mrf.mxu0 }
 0x43b   :  { %v4862_v57 = vadd.f32 %v2029_v34, %v1908_v23 }
 0x43c   :  { %v2031_v59 = vpop.f32.mrf.mxu0 }
 0x43d   :  { %v4865_v17 = vadd.f32 %v2031_v59, %v1912_v36 }
 0x43e   :  { %v2033_v51 = vpop.f32.mrf.mxu0 }
 0x43f   :  { %v4858_v24 = vadd.f32 %v2033_v51, %v1908_v23 }
 0x440   :  { %v2035_v32 = vpop.f32.mrf.mxu0 }
 0x441   :  { %v4860_v6 = vadd.f32 %v2035_v32, %v1912_v36 }
 0x44a   :  { %v2124_v12 = vpop.f32.mrf.mxu0 }
 0x44b   :  { %v2131_v39 = vadd.f32 %v2124_v12, %v4862_v57 }
 0x44c   :  { %v2126_v58 = vpop.f32.mrf.mxu0 }
 0x44d   :  { %v3157_v42 = vmul.f32 -1.442695, %v2131_v39  ;;  %v2132_v15 = vadd.f32 %v2126_v58, %v4865_v17 }
 0x44e   :  { %v2128_v27 = vpop.f32.mrf.mxu0 }
 0x44f   :  { %3587 = vpow2.f32 %v3157_v42  ;;  %v3158_v62 = vmul.f32 -1.442695, %v2132_v15 }
 0x450   :  { %v2129_v14 = vpop.f32.mrf.mxu0  ;;  %3589 = vtanh.f32 %v2132_v15 }
 0x45c   :  { %v3588_v40 = vpop.eup %3587 }
 0x45d   :  { %v2139_v52 = vadd.f32 1.0, %v3588_v40  ;;  %v3590_v61 = vpop.eup %3589 }
 0x45f   :  { %3591 = vrcp.f32 %v2139_v52 }
 0x460   :  { %3593 = vpow2.f32 %v3158_v62 }
 0x46c   :  { %v3592_v18 = vpop.eup %3591 }
 0x46d   :  { %v2147_v55 = vmul.f32 %v3592_v18, %v3590_v61  ;;  %v3594_v22 = vpop.eup %3593  ;;  %v2146_v46 = vmul.f32 0.0, %v3592_v18 }
 0x46e   :  { %v2140_v31 = vadd.f32 1.0, %v3594_v22 }
 0x46f   :  { %2149 = vrot.lane.b32.xlu0 %v2147_v55, %s3690_s9 }
 0x470   :  { %3595 = vrcp.f32 %v2140_v31 }
 0x47d   :  { %v3596_v9 = vpop.eup %3595 }
 0x4e1   :  { %v2150_v60 = vpop.permute.xlu0 %2149 }
 0x4e2   :  { %v2152_v35 = vadd.f32 %v2150_v60, %v2146_v46 }
 0x4e4   :  { %3597 = vtanh.f32 %v2152_v35  ;;  %v2225_v26 = vrot.slane %v2152_v35, 6 }
 0x4f1   :  { %v3598_v25 = vpop.eup %3597 }
 0x4f2   :  { %v2154_v44 = vmul.f32 %v3598_v25, %v3596_v9 }
 0x4f4   :  { %v2155_v43 = vpack.c.bf16 %v2154_v44, %v2154_v44 }
 0x4f6   :  { %2157 = vrot.lane.b32.xlu0 %v2155_v43, %s3690_s9 }
 0x568   :  { %v2158_v7 = vpop.permute.xlu0 %2157 }
 0x569   :  { %3159 = vmatmul.mubr.msk.bf16.vlgmr.msra.gmra.mxu1 %vm2086_vm6, %v2158_v7 }
 0x56a   :  { %2335 = vmatpush1.bf16.msra.mxu1 %v4774_v2  ;;  %2358 = vmatprep.mubr.bf16.mxu1 %v3689_v5 }
 0x56b   :  { %2336 = vmatprep.subr.bf16.mxu1 %v4779_v4 }
 0x56e   :  { %2337 = vmatpush1.bf16.msra.mxu1 %v4787_v3 }
 0x56f   :  { %2338 = vmatprep.subr.bf16.mxu1 %v4792_v29 }
 0x572   :  { %2339 = vmatpush1.bf16.msra.mxu1 %v4799_v54 }
 0x573   :  { %2340 = vmatprep.subr.bf16.mxu1 %v4804_v19 }
 0x576   :  { %2341 = vmatpush1.bf16.msra.mxu1 %v4811_v20 }
 0x577   :  { %2491 = vmatprep.subr.bf16.mxu1 %v4764_v0 }
 0x629   :  { %v2196_v56 = vpop.f32.mrf.mxu1 }
 0x62a   :  { %v2205_v11 = vrot.slane %v2196_v56, 6 }
 0x62b   :  { %v2198_v1 = vpop.f32.mrf.mxu1 }
 0x62c   :  { %v2209_v33 = vadd.f32 %v2205_v11, %v4862_v57  ;;  %v2206_v41 = vrot.slane %v2198_v1, 6 }
 0x62d   :  { %v2200_v49 = vpop.f32.mrf.mxu1 }
 0x62e   :  { %v3160_v37 = vmul.f32 -1.442695, %v2209_v33  ;;  %v2210_v50 = vadd.f32 %v2206_v41, %v4865_v17 }
 0x62f   :  { %v2201_v53 = vpop.f32.mrf.mxu1 }
 0x630   :  { %3599 = vpow2.f32 %v3160_v37  ;;  %v3161_v45 = vmul.f32 -1.442695, %v2210_v50 }
 0x631   :  { %3601 = vtanh.f32 %v2210_v50 }
 0x63d   :  { %v3600_v8 = vpop.eup %3599 }
 0x63e   :  { %v2217_v16 = vadd.f32 1.0, %v3600_v8  ;;  %v3602_v48 = vpop.eup %3601 }
 0x640   :  { %3603 = vrcp.f32 %v2217_v16 }
 0x641   :  { %3605 = vpow2.f32 %v3161_v45 }
 0x64d   :  { %v3604_v21 = vpop.eup %3603 }
 0x64e   :  { %v2228_v13 = vmul.f32 %v3604_v21, %v3602_v48  ;;  %v2227_v63 = vmul.f32 %v3604_v21, %v2225_v26  ;;  %v3606_v30 = vpop.eup %3605 }
 0x64f   :  { %v2218_v47 = vadd.f32 1.0, %v3606_v30 }
 0x650   :  { %2230 = vrot.lane.b32.xlu1 %v2228_v13, %s3690_s9 }
 0x651   :  { %3607 = vrcp.f32 %v2218_v47 }
 0x65e   :  { %v3608_v59 = vpop.eup %3607 }
 0x6c2   :  { %v2231_v28 = vpop.permute.xlu1 %2230 }
 0x6c3   :  { %v2233_v34 = vadd.f32 %v2231_v28, %v2227_v63 }
 0x6c5   :  { %3609 = vtanh.f32 %v2233_v34  ;;  %v2307_v22 = vrot.slane %v2233_v34, 6 }
 0x6d2   :  { %v3610_v23 = vpop.eup %3609 }
 0x6d3   :  { %v2235_v51 = vmul.f32 %v3610_v23, %v3608_v59 }
 0x6d5   :  { %v2236_v36 = vpack.c.bf16 %v2235_v51, %v2235_v51 }
 0x6d7   :  { %v2238_v32 = vrot.slane %v2236_v36, 1 }
 0x6d9   :  { %2239 = vrot.lane.b32.xlu1 %v2238_v32, %s3690_s9 }
 0x74b   :  { %v2240_v12 = vpop.permute.xlu1 %2239 }
 0x74c   :  { %3162 = vmatmul.mubr.msk.bf16.vlgmr.msra.gmra.mxu0 %vm2086_vm6, %v2240_v12 }
 0x74d   :  { %2417 = vmatpush1.bf16.msra.mxu0 %v4774_v2  ;;  %2440 = vmatprep.mubr.bf16.mxu0 %v3689_v5 }
 0x74e   :  { %2418 = vmatprep.subr.bf16.mxu0 %v4779_v4 }
 0x751   :  { %2419 = vmatpush1.bf16.msra.mxu0 %v4787_v3 }
 0x752   :  { %2420 = vmatprep.subr.bf16.mxu0 %v4792_v29 }
 0x755   :  { %2421 = vmatpush1.bf16.msra.mxu0 %v4799_v54 }
 0x756   :  { %2422 = vmatprep.subr.bf16.mxu0 %v4804_v19 }
 0x759   :  { %2423 = vmatpush1.bf16.msra.mxu0 %v4811_v20 }
 0x75a   :  { %2573 = vmatprep.subr.bf16.mxu0 %v4764_v0 }
 0x80c   :  { %v2278_v39 = vpop.f32.mrf.mxu0 }
 0x80d   :  { %v2287_v58 = vrot.slane %v2278_v39, 4 }
 0x80e   :  { %v2280_v42 = vpop.f32.mrf.mxu0 }
 0x80f   :  { %v2291_v27 = vadd.f32 %v2287_v58, %v4862_v57  ;;  %v2288_v52 = vrot.slane %v2280_v42, 4 }
 0x810   :  { %v2282_v14 = vpop.f32.mrf.mxu0 }
 0x811   :  { %v3163_v15 = vmul.f32 -1.442695, %v2291_v27  ;;  %v2292_v61 = vadd.f32 %v2288_v52, %v4865_v17 }
 0x812   :  { %v2283_v40 = vpop.f32.mrf.mxu0 }
 0x813   :  { %3611 = vpow2.f32 %v3163_v15  ;;  %v3164_v35 = vmul.f32 -1.442695, %v2292_v61 }
 0x814   :  { %3613 = vtanh.f32 %v2292_v61 }
 0x820   :  { %v3612_v18 = vpop.eup %3611 }
 0x821   :  { %v2299_v55 = vadd.f32 1.0, %v3612_v18  ;;  %v3614_v62 = vpop.eup %3613 }
 0x823   :  { %3615 = vrcp.f32 %v2299_v55 }
 0x824   :  { %3617 = vpow2.f32 %v3164_v35 }
 0x830   :  { %v3616_v31 = vpop.eup %3615 }
 0x831   :  { %v2310_v46 = vmul.f32 %v3616_v31, %v3614_v62  ;;  %v2309_v60 = vmul.f32 %v3616_v31, %v2307_v22  ;;  %v3618_v9 = vpop.eup %3617 }
 0x832   :  { %v2300_v25 = vadd.f32 1.0, %v3618_v9 }
 0x833   :  { %2312 = vrot.lane.b32.xlu0 %v2310_v46, %s3690_s9 }
 0x834   :  { %3619 = vrcp.f32 %v2300_v25 }
 0x841   :  { %v3620_v7 = vpop.eup %3619 }
 0x8a5   :  { %v2313_v44 = vpop.permute.xlu0 %2312 }
 0x8a6   :  { %v2315_v43 = vadd.f32 %v2313_v44, %v2309_v60 }
 0x8a8   :  { %3621 = vtanh.f32 %v2315_v43  ;;  %v2389_v30 = vrot.slane %v2315_v43, 6 }
 0x8b5   :  { %v3622_v56 = vpop.eup %3621 }
 0x8b6   :  { %v2317_v11 = vmul.f32 %v3622_v56, %v3620_v7 }
 0x8b8   :  { %v2318_v1 = vpack.c.bf16 %v2317_v11, %v2317_v11 }
 0x8ba   :  { %v2320_v33 = vrot.slane %v2318_v1, 2 }
 0x8bc   :  { %2321 = vrot.lane.b32.xlu1 %v2320_v33, %s3690_s9 }
 0x92e   :  { %v2322_v49 = vpop.permute.xlu1 %2321 }
 0x92f   :  { %3165 = vmatmul.mubr.msk.bf16.vlgmr.msra.gmra.mxu1 %vm2086_vm6, %v2322_v49 }
 0x930   :  { %2492 = vmatpush1.bf16.msra.mxu1 %v4774_v2  ;;  %2515 = vmatprep.mubr.bf16.mxu1 %v3689_v5 }
 0x931   :  { %2493 = vmatprep.subr.bf16.mxu1 %v4779_v4 }
 0x934   :  { %2494 = vmatpush1.bf16.msra.mxu1 %v4787_v3 }
 0x935   :  { %2495 = vmatprep.subr.bf16.mxu1 %v4792_v29 }
 0x938   :  { %2496 = vmatpush1.bf16.msra.mxu1 %v4799_v54 }
 0x939   :  { %2497 = vmatprep.subr.bf16.mxu1 %v4804_v19 }
 0x93c   :  { %2498 = vmatpush1.bf16.msra.mxu1 %v4811_v20 }
 0x93d   :  { %2655 = vmatprep.subr.bf16.mxu1 %v4764_v0 }
 0x9ef   :  { %v2360_v37 = vpop.f32.mrf.mxu1 }
 0x9f0   :  { %v2369_v53 = vrot.slane %v2360_v37, 2 }
 0x9f1   :  { %v2362_v41 = vpop.f32.mrf.mxu1 }
 0x9f2   :  { %v2373_v50 = vadd.f32 %v2369_v53, %v4862_v57  ;;  %v2370_v26 = vrot.slane %v2362_v41, 2 }
 0x9f3   :  { %v2364_v8 = vpop.f32.mrf.mxu1 }
 0x9f4   :  { %v3166_v16 = vmul.f32 -1.442695, %v2373_v50  ;;  %v2374_v21 = vadd.f32 %v2370_v26, %v4865_v17 }
 0x9f5   :  { %v2365_v48 = vpop.f32.mrf.mxu1 }
 0x9f6   :  { %3623 = vpow2.f32 %v3166_v16  ;;  %v3167_v34 = vmul.f32 -1.442695, %v2374_v21 }
 0x9f7   :  { %3625 = vtanh.f32 %v2374_v21 }
 0xa03   :  { %v3624_v13 = vpop.eup %3623 }
 0xa04   :  { %v2381_v63 = vadd.f32 1.0, %v3624_v13  ;;  %v3626_v45 = vpop.eup %3625 }
 0xa06   :  { %3627 = vrcp.f32 %v2381_v63 }
 0xa07   :  { %3629 = vpow2.f32 %v3167_v34 }
 0xa13   :  { %v3628_v47 = vpop.eup %3627 }
 0xa14   :  { %v2392_v0 = vmul.f32 %v3628_v47, %v3626_v45  ;;  %v2391_v28 = vmul.f32 %v3628_v47, %v2389_v30  ;;  %v3630_v57 = vpop.eup %3629 }
 0xa15   :  { %v2382_v59 = vadd.f32 1.0, %v3630_v57 }
 0xa16   :  { %2394 = vrot.lane.b32.xlu0 %v2392_v0, %s3690_s9 }
 0xa17   :  { %3631 = vrcp.f32 %v2382_v59 }
 0xa24   :  { %v3632_v17 = vpop.eup %3631 }
 0xa88   :  { %v2395_v23 = vpop.permute.xlu0 %2394 }
 0xa89   :  { %v2397_v51 = vadd.f32 %v2395_v23, %v2391_v28 }
 0xa8b   :  { %3633 = vtanh.f32 %v2397_v51  ;;  %v2465_v22 = vrot.slane %v2397_v51, 6 }
 0xa98   :  { %v3634_v36 = vpop.eup %3633 }
 0xa99   :  { %v2399_v32 = vmul.f32 %v3634_v36, %v3632_v17 }
 0xa9b   :  { %v2400_v12 = vpack.c.bf16 %v2399_v32, %v2399_v32 }
 0xa9d   :  { %v2402_v39 = vrot.slane %v2400_v12, 3 }
 0xa9f   :  { %2403 = vrot.lane.b32.xlu1 %v2402_v39, %s3690_s9 }
 0xb11   :  { %v2404_v58 = vpop.permute.xlu1 %2403 }
 0xb12   :  { %3168 = vmatmul.mubr.msk.bf16.vlgmr.msra.gmra.mxu0 %vm2086_vm6, %v2404_v58 }
 0xb13   :  { %2574 = vmatpush1.bf16.msra.mxu0 %v4774_v2  ;;  %2597 = vmatprep.mubr.bf16.mxu0 %v3689_v5 }
 0xb14   :  { %2575 = vmatprep.subr.bf16.mxu0 %v4779_v4 }
 0xb17   :  { %2576 = vmatpush1.bf16.msra.mxu0 %v4787_v3 }
 0xb18   :  { %2577 = vmatprep.subr.bf16.mxu0 %v4792_v29 }
 0xb1b   :  { %2578 = vmatpush1.bf16.msra.mxu0 %v4799_v54 }
 0xb1c   :  { %2579 = vmatprep.subr.bf16.mxu0 %v4804_v19 }
 0xb1f   :  { %2580 = vmatpush1.bf16.msra.mxu0 %v4811_v20 }
 0xbd2   :  { %v2442_v42 = vpop.f32.mrf.mxu0 }
 0xbd3   :  { %v2449_v27 = vadd.f32 %v2442_v42, %v4858_v24 }
 0xbd4   :  { %v2444_v14 = vpop.f32.mrf.mxu0 }
 0xbd5   :  { %v3169_v15 = vmul.f32 -1.442695, %v2449_v27  ;;  %v2450_v61 = vadd.f32 %v2444_v14, %v4860_v6 }
 0xbd6   :  { %v2446_v40 = vpop.f32.mrf.mxu0 }
 0xbd7   :  { %3635 = vpow2.f32 %v3169_v15  ;;  %v3170_v35 = vmul.f32 -1.442695, %v2450_v61 }
 0xbd8   :  { %v2447_v52 = vpop.f32.mrf.mxu0  ;;  %3637 = vtanh.f32 %v2450_v61 }
 0xbe4   :  { %v3636_v18 = vpop.eup %3635 }
 0xbe5   :  { %v2457_v55 = vadd.f32 1.0, %v3636_v18  ;;  %v3638_v62 = vpop.eup %3637 }
 0xbe7   :  { %3639 = vrcp.f32 %v2457_v55 }
 0xbe8   :  { %3641 = vpow2.f32 %v3170_v35 }
 0xbf4   :  { %v3640_v31 = vpop.eup %3639 }
 0xbf5   :  { %v2468_v46 = vmul.f32 %v3640_v31, %v3638_v62  ;;  %v2467_v60 = vmul.f32 %v3640_v31, %v2465_v22  ;;  %v3642_v9 = vpop.eup %3641 }
 0xbf6   :  { %v2458_v25 = vadd.f32 1.0, %v3642_v9 }
 0xbf7   :  { %2470 = vrot.lane.b32.xlu0 %v2468_v46, %s3690_s9 }
 0xbf8   :  { %3643 = vrcp.f32 %v2458_v25 }
 0xc05   :  { %v3644_v7 = vpop.eup %3643 }
 0xc69   :  { %v2471_v44 = vpop.permute.xlu0 %2470 }
 0xc6a   :  { %v2473_v43 = vadd.f32 %v2471_v44, %v2467_v60 }
 0xc6c   :  { %3645 = vtanh.f32 %v2473_v43 }
 0xc79   :  { %v3646_v56 = vpop.eup %3645 }
 0xc7a   :  { %v2475_v11 = vmul.f32 %v3646_v56, %v3644_v7 }
 0xc7c   :  { %v2476_v1 = vpack.c.bf16 %v2475_v11, %v2475_v11 }
 0xc7e   :  { %2478 = vrot.lane.b32.xlu1 %v2476_v1, %s3690_s9 }
 0xcf0   :  { %v2479_v33 = vpop.permute.xlu1 %2478 }
 0xcf1   :  { %3171 = vmatmul.mubr.msk.bf16.vlgmr.msra.gmra.mxu1 %vm2086_vm6, %v2479_v33 }
 0xcf2   :  { %2656 = vmatpush1.bf16.msra.mxu1 %v4774_v2  ;;  %2679 = vmatprep.mubr.bf16.mxu1 %v3689_v5 }
 0xcf3   :  { %2657 = vmatprep.subr.bf16.mxu1 %v4779_v4 }
 0xcf6   :  { %2658 = vmatpush1.bf16.msra.mxu1 %v4787_v3 }
 0xcf7   :  { %2659 = vmatprep.subr.bf16.mxu1 %v4792_v29 }
 0xcfa   :  { %2660 = vmatpush1.bf16.msra.mxu1 %v4799_v54 }
 0xcfb   :  { %2661 = vmatprep.subr.bf16.mxu1 %v4804_v19 }
 0xcfe   :  { %2662 = vmatpush1.bf16.msra.mxu1 %v4811_v20  ;;  %v2546_v20 = vrot.slane %v2473_v43, 6 }
 0xcff   :  { %3002 = vmatprep.subr.bf16.mxu1 %v3689_v5 }
 0xdb1   :  { %v2517_v49 = vpop.f32.mrf.mxu1 }
 0xdb2   :  { %v2526_v37 = vrot.slane %v2517_v49, 6 }
 0xdb3   :  { %v2519_v53 = vpop.f32.mrf.mxu1 }
 0xdb4   :  { %v2530_v2 = vadd.f32 %v2526_v37, %v4858_v24  ;;  %v2527_v3 = vrot.slane %v2519_v53, 6 }
 0xdb5   :  { %v2521_v41 = vpop.f32.mrf.mxu1 }
 0xdb6   :  { %v3172_v50 = vmul.f32 -1.442695, %v2530_v2  ;;  %v2531_v29 = vadd.f32 %v2527_v3, %v4860_v6 }
 0xdb7   :  { %v2522_v4 = vpop.f32.mrf.mxu1 }
 0xdb8   :  { %3647 = vpow2.f32 %v3172_v50  ;;  %v3173_v21 = vmul.f32 -1.442695, %v2531_v29 }
 0xdb9   :  { %3649 = vtanh.f32 %v2531_v29 }
 0xdc5   :  { %v3648_v8 = vpop.eup %3647 }
 0xdc6   :  { %v2538_v54 = vadd.f32 1.0, %v3648_v8  ;;  %v3650_v19 = vpop.eup %3649 }
 0xdc8   :  { %3651 = vrcp.f32 %v2538_v54 }
 0xdc9   :  { %3653 = vpow2.f32 %v3173_v21  ;;  %v3570_v21 = vld [vmem:[%s5050_s11] ss:$8 sps:$4 sm:$0xff]  }
 0xdd5   :  { %v3652_v16 = vpop.eup %3651 }
 0xdd6   :  { %v2549_v48 = vmul.f32 %v3652_v16, %v3650_v19  ;;  %v2548_v26 = vmul.f32 %v3652_v16, %v2546_v20  ;;  %v3654_v13 = vpop.eup %3653  ;;  %v3563_v19 = vld [vmem:[%s5050_s11 + $0x34] ss:$8 sps:$4 sm:$0xff]   ;;  %v3564_v20 = vld [vmem:[%s5050_s11 + $0x20] ss:$8 sps:$4 sm:$0xff]  }
 0xdd7   :  { %v2539_v63 = vadd.f32 1.0, %v3654_v13  ;;  %2797 = vmatprep.subr.bf16.mxu0 %v3563_v19  ;;  %v3569_v16 = vld [vmem:[%s5050_s11 + $0x14] ss:$8 sps:$4 sm:$0xff]  }
 0xdd8   :  { %2551 = vrot.lane.b32.xlu0 %v2549_v48, %s3690_s9  ;;  %v3567_v48 = vld [vmem:[%s5050_s11 + $0x10] ss:$8 sps:$4 sm:$0xff]  }
 0xdd9   :  { %3655 = vrcp.f32 %v2539_v63 }
 0xde6   :  { %v3656_v47 = vpop.eup %3655 }
 0xe4a   :  { %v2552_v45 = vpop.permute.xlu0 %2551 }
 0xe4b   :  { %v2554_v30 = vadd.f32 %v2552_v45, %v2548_v26  ;;  %v3572_v26 = vld [vmem:[%s5050_s11 + $0x4] ss:$8 sps:$4 sm:$0xff]  }
 0xe4d   :  { %3657 = vtanh.f32 %v2554_v30  ;;  %v2628_v40 = vrot.slane %v2554_v30, 6 }
 0xe5a   :  { %v3658_v0 = vpop.eup %3657 }
 0xe5b   :  { %v2556_v28 = vmul.f32 %v3658_v0, %v3656_v47 }
 0xe5d   :  { %v2557_v34 = vpack.c.bf16 %v2556_v28, %v2556_v28 }
 0xe5f   :  { %v2559_v57 = vrot.slane %v2557_v34, 1 }
 0xe61   :  { %2560 = vrot.lane.b32.xlu1 %v2559_v57, %s3690_s9 }
 0xed3   :  { %v2561_v59 = vpop.permute.xlu1 %2560 }
 0xed4   :  { %3174 = vmatmul.mubr.msk.bf16.vlgmr.msra.gmra.mxu0 %vm2086_vm6, %v2561_v59 }
 0xed5   :  { %2821 = vmatprep.mubr.bf16.mxu0 %v3689_v5 }
 0xf94   :  { %v2599_v23 = vpop.f32.mrf.mxu0 }
 0xf95   :  { %v2608_v51 = vrot.slane %v2599_v23, 4 }
 0xf96   :  { %v2601_v17 = vpop.f32.mrf.mxu0 }
 0xf97   :  { %v2612_v36 = vadd.f32 %v2608_v51, %v4858_v24  ;;  %v2609_v58 = vrot.slane %v2601_v17, 4  ;;  %v3573_v51 = vld [vmem:[%s5051_s15 + $0x38] sm:$0xff]   ;;  %v3574_v17 = vld [vmem:[%s5051_s15 + $0x30] sm:$0xff]  }
 0xf98   :  { %v2603_v32 = vpop.f32.mrf.mxu0 }
 0xf99   :  { %v3175_v12 = vmul.f32 -1.442695, %v2612_v36  ;;  %v2613_v42 = vadd.f32 %v2609_v58, %v4860_v6  ;;  %v3575_v36 = vld [vmem:[%s5051_s15 + $0x28] sm:$0xff]   ;;  %v3576_v32 = vld [vmem:[%s5051_s15 + $0x20] sm:$0xff]  }
 0xf9a   :  { %v2604_v39 = vpop.f32.mrf.mxu0  ;;  %v3579_v58 = vld [vmem:[%s5051_s15 + $0x8] sm:$0xff]  }
 0xf9b   :  { %3659 = vpow2.f32 %v3175_v12  ;;  %v3176_v55 = vmul.f32 -1.442695, %v2613_v42  ;;  %v3577_v12 = vld [vmem:[%s5051_s15 + $0x18] sm:$0xff]   ;;  %v3578_v39 = vld [vmem:[%s5051_s15 + $0x10] sm:$0xff]  }
 0xf9c   :  { %3661 = vtanh.f32 %v2613_v42  ;;  %v3580_v42 = vld [vmem:[%s5051_s15] sm:$0xff]  }
 0xfa8   :  { %v3660_v27 = vpop.eup %3659 }
 0xfa9   :  { %v2620_v14 = vadd.f32 1.0, %v3660_v27  ;;  %v3662_v15 = vpop.eup %3661  ;;  %v3581_v27 = vld [vmem:[%s5051_s15 + $0x48] sm:$0xff]  }
 0xfab   :  { %3663 = vrcp.f32 %v2620_v14  ;;  %v3582_v14 = vld [vmem:[%s5051_s15 + $0x40] sm:$0xff]  }
 0xfac   :  { %3665 = vpow2.f32 %v3176_v55 }
 0xfb8   :  { %v3664_v52 = vpop.eup %3663 }
 0xfb9   :  { %v2631_v61 = vmul.f32 %v3664_v52, %v3662_v15  ;;  %v2630_v18 = vmul.f32 %v3664_v52, %v2628_v40  ;;  %v3666_v62 = vpop.eup %3665  ;;  %v2730_v15 = vld [vmem:[%s5052_s12] sm:$0x3] }
 0xfba   :  { %v2621_v22 = vadd.f32 1.0, %v3666_v62  ;;  %v2735_v40 = vrot.slane %v2730_v15, %v4849_v10  ;;  %v2739_v52 = vrot.slane %v2730_v15, %v4854_v38 }
 0xfbb   :  { %2633 = vrot.lane.b32.xlu0 %v2631_v61, %s3690_s9 }
 0xfbc   :  { %3667 = vrcp.f32 %v2621_v22 }
 0xfc9   :  { %v3668_v60 = vpop.eup %3667 }
0x102d   :  { %v2634_v31 = vpop.permute.xlu0 %2633 }
0x102e   :  { %v2636_v46 = vadd.f32 %v2634_v31, %v2630_v18 }
0x1030   :  { %3669 = vtanh.f32 %v2636_v46  ;;  %v2710_v3 = vrot.slane %v2636_v46, 6 }
0x103d   :  { %v3670_v35 = vpop.eup %3669 }
0x103e   :  { %v2638_v9 = vmul.f32 %v3670_v35, %v3668_v60 }
0x1040   :  { %v2639_v25 = vpack.c.bf16 %v2638_v9, %v2638_v9 }
0x1042   :  { %v2641_v44 = vrot.slane %v2639_v25, 2 }
0x1044   :  { %2642 = vrot.lane.b32.xlu1 %v2641_v44, %s3690_s9 }
0x10b6   :  { %v2643_v43 = vpop.permute.xlu1 %2642 }
0x10b7   :  { %3177 = vmatmul.mubr.msk.bf16.vlgmr.msra.gmra.mxu1 %vm2086_vm6, %v2643_v43 }
0x10b8   :  { %3003 = vmatpush1.bf16.msra.mxu1 %v3573_v51 }
0x10b9   :  { %3004 = vmatprep.subr.bf16.mxu1 %v3689_v5 }
0x10bc   :  { %3005 = vmatpush1.bf16.msra.mxu1 %v3574_v17 }
0x10bd   :  { %3006 = vmatprep.subr.bf16.mxu1 %v3689_v5 }
0x10c0   :  { %3007 = vmatpush1.bf16.msra.mxu1 %v3575_v36 }
0x10c1   :  { %3008 = vmatprep.subr.bf16.mxu1 %v3689_v5 }
0x10c4   :  { %3009 = vmatpush1.bf16.msra.mxu1 %v3576_v32 }
0x10c5   :  { %3010 = vmatprep.subr.bf16.mxu1 %v3689_v5 }
0x10c8   :  { %3011 = vmatpush1.bf16.msra.mxu1 %v3577_v12 }
0x10c9   :  { %3012 = vmatprep.subr.bf16.mxu1 %v3689_v5 }
0x10cc   :  { %3013 = vmatpush1.bf16.msra.mxu1 %v3578_v39 }
0x10cd   :  { %3014 = vmatprep.subr.bf16.mxu1 %v3689_v5 }
0x10d0   :  { %3015 = vmatpush1.bf16.msra.mxu1 %v3579_v58 }
0x10d1   :  { %3016 = vmatprep.subr.bf16.mxu1 %v3689_v5 }
0x10d4   :  { %3017 = vmatpush1.bf16.msra.mxu1 %v3580_v42 }
0x10d5   :  { %3030 = vmatprep.subr.bf16.mxu1 %v3689_v5 }
0x10d8   :  { %3031 = vmatpush2.bf16.msra.mxu1 %v3581_v27 }
0x10d9   :  { %3032 = vmatprep.subr.bf16.mxu1 %v3689_v5 }
0x10dc   :  { %3033 = vmatpush2.bf16.msra.mxu1 %v3582_v14 }
0x1177   :  { %v2681_v7 = vpop.f32.mrf.mxu1 }
0x1178   :  { %v2690_v56 = vrot.slane %v2681_v7, 2 }
0x1179   :  { %v2683_v11 = vpop.f32.mrf.mxu1 }
0x117a   :  { %v2694_v1 = vadd.f32 %v2690_v56, %v4858_v24  ;;  %v2691_v53 = vrot.slane %v2683_v11, 2  ;;  %v3561_v24 = vld [vmem:[%s5050_s11 + $0x30] ss:$8 sps:$4 sm:$0xff]  }
0x117b   :  { %v2685_v33 = vpop.f32.mrf.mxu1  ;;  %2798 = vmatpush1.bf16.msra.mxu0 %v3561_v24 }
0x117c   :  { %v3178_v49 = vmul.f32 -1.442695, %v2694_v1  ;;  %v2695_v2 = vadd.f32 %v2691_v53, %v4860_v6  ;;  %v3566_v6 = vld [vmem:[%s5050_s11 + $0x24] ss:$8 sps:$4 sm:$0xff]  }
0x117d   :  { %v2686_v37 = vpop.f32.mrf.mxu1  ;;  %2799 = vmatprep.subr.bf16.mxu0 %v3566_v6 }
0x117e   :  { %3671 = vpow2.f32 %v3178_v49  ;;  %v3179_v13 = vmul.f32 -1.442695, %v2695_v2 }
0x117f   :  { %3673 = vtanh.f32 %v2695_v2  ;;  %2800 = vmatpush1.bf16.msra.mxu0 %v3564_v20 }
0x1180   :  { %2801 = vmatprep.subr.bf16.mxu0 %v3569_v16 }
0x1183   :  { %2802 = vmatpush1.bf16.msra.mxu0 %v3567_v48 }
0x1184   :  { %2803 = vmatprep.subr.bf16.mxu0 %v3572_v26 }
0x1187   :  { %2804 = vmatpush1.bf16.msra.mxu0 %v3570_v21 }
0x118b   :  { %v3672_v41 = vpop.eup %3671 }
0x118c   :  { %v2702_v50 = vadd.f32 1.0, %v3672_v41  ;;  %v3674_v4 = vpop.eup %3673 }
0x118e   :  { %3675 = vrcp.f32 %v2702_v50 }
0x118f   :  { %3677 = vpow2.f32 %v3179_v13 }
0x119b   :  { %v3676_v29 = vpop.eup %3675 }
0x119c   :  { %v2713_v8 = vmul.f32 %v3676_v29, %v3674_v4  ;;  %v2712_v54 = vmul.f32 %v3676_v29, %v2710_v3  ;;  %v3678_v63 = vpop.eup %3677 }
0x119d   :  { %v2703_v45 = vadd.f32 1.0, %v3678_v63 }
0x119e   :  { %2715 = vrot.lane.b32.xlu0 %v2713_v8, %s3690_s9 }
0x119f   :  { %3679 = vrcp.f32 %v2703_v45 }
0x11ac   :  { %v3680_v0 = vpop.eup %3679 }
0x1210   :  { %v2716_v30 = vpop.permute.xlu0 %2715 }
0x1211   :  { %v2718_v47 = vadd.f32 %v2716_v30, %v2712_v54 }
0x1213   :  { %3681 = vtanh.f32 %v2718_v47 }
0x1220   :  { %v3682_v28 = vpop.eup %3681 }
0x1221   :  { %v2720_v34 = vmul.f32 %v3682_v28, %v3680_v0  ;;  %v2830_v28 = vld [vmem:[%s5053_s13] sm:$0x3] }
0x1222   :  { %v2885_v17 = vrot.slane %v2830_v28, %v4854_v38 }
0x1223   :  { %v2721_v57 = vpack.c.bf16 %v2720_v34, %v2720_v34  ;;  %v2831_v34 = vld [vmem:[%s5054_s14] sm:$0x3] }
0x1224   :  { %v2894_v51 = vrot.slane %v2831_v34, %v4849_v10  ;;  %v2898_v39 = vrot.slane %v2831_v34, %v4854_v38 }
0x1225   :  { %v2743_v59 = vrot.slane %v2721_v57, 3  ;;  %v2881_v57 = vrot.slane %v2830_v28, %v4849_v10  ;;  %v3189_v10 = vld [vmem:[%s5055_s16] ss:$0 sm:$0xff] }
0x1227   :  { %2744 = vrot.lane.b32.xlu1 %v2743_v59, %s3690_s9 }
0x1299   :  { %v2745_v23 = vpop.permute.xlu1 %2744 }
0x129a   :  { %3188 = vmatmul.mubr.msk.bf16.vlgmr.msra.gmra.mxu0 %vm2086_vm6, %v2745_v23 }
0x135a   :  { %v2823_v61 = vpop.f32.mrf.mxu0 }
0x135b   :  { %v2824_v18 = vadd.f32 %v2823_v61, %v2735_v40 }
0x135c   :  { %v2825_v55 = vpop.f32.mrf.mxu0 }
0x135d   :  { %v2833_v62 = vsel %vm2832_vm7, %v2824_v18, 0.0  ;;  %v2826_v22 = vadd.f32 %v2825_v55, %v2739_v52 }
0x135e   :  { %v2834_v31 = vrot.slane %v2833_v62, 4  ;;  %v2827_v46 = vpop.f32.mrf.mxu0 }
0x135f   :  { %v2841_v5 = vsel %vm2840_vm0, %v2826_v22, 0.0 }
0x1360   :  { %v2835_v60 = vadd.f32 %v2834_v31, %v2833_v62  ;;  %v2842_v35 = vrot.slane %v2841_v5, 4  ;;  %v2828_v9 = vpop.f32.mrf.mxu0 }
0x1362   :  { %v2836_v25 = vrot.slane %v2835_v60, 2  ;;  %v2843_v44 = vadd.f32 %v2842_v35, %v2841_v5 }
0x1364   :  { %v2837_v43 = vadd.f32 %v2836_v25, %v2835_v60  ;;  %v2844_v7 = vrot.slane %v2843_v44, 2 }
0x1366   :  { %v2838_v56 = vrot.slane %v2837_v43, 1  ;;  %v2845_v11 = vadd.f32 %v2844_v7, %v2843_v44 }
0x1368   :  { %v2839_v1 = vadd.f32 %v2838_v56, %v2837_v43  ;;  %v2846_v33 = vrot.slane %v2845_v11, 1 }
0x136a   :  { %v2849_v49 = vmul.f32 0.5, %v2839_v1  ;;  %v2847_v37 = vadd.f32 %v2846_v33, %v2845_v11 }
0x136c   :  { %v2851_v53 = vsub.f32 %v2824_v18, %v2849_v49  ;;  %v2850_v2 = vmul.f32 0.5, %v2847_v37 }
0x136e   :  { %v2853_v41 = vmul.f32 %v2851_v53, %v2851_v53  ;;  %v2852_v50 = vsub.f32 %v2826_v22, %v2850_v2 }
0x1370   :  { %v2855_v4 = vsel %vm2832_vm7, %v2853_v41, 0.0  ;;  %v2854_v3 = vmul.f32 %v2852_v50, %v2852_v50 }
0x1371   :  { %v2856_v29 = vrot.slane %v2855_v4, 4 }
0x1372   :  { %v2862_v8 = vsel %vm2840_vm0, %v2854_v3, 0.0 }
0x1373   :  { %v2857_v54 = vadd.f32 %v2856_v29, %v2855_v4  ;;  %v2863_v24 = vrot.slane %v2862_v8, 4 }
0x1375   :  { %v2858_v19 = vrot.slane %v2857_v54, 2  ;;  %v2864_v6 = vadd.f32 %v2863_v24, %v2862_v8 }
0x1377   :  { %v2859_v20 = vadd.f32 %v2858_v19, %v2857_v54  ;;  %v2865_v16 = vrot.slane %v2864_v6, 2 }
0x1379   :  { %v2860_v48 = vrot.slane %v2859_v20, 1  ;;  %v2866_v26 = vadd.f32 %v2865_v16, %v2864_v6 }
0x137b   :  { %v2861_v21 = vadd.f32 %v2860_v48, %v2859_v20  ;;  %v2867_v13 = vrot.slane %v2866_v26, 1 }
0x137d   :  { %v2869_v63 = vmul.f32 0.5, %v2861_v21  ;;  %v2868_v45 = vadd.f32 %v2867_v13, %v2866_v26 }
0x137f   :  { %v2871_v30 = vadd.f32 1e-05, %v2869_v63  ;;  %v2870_v47 = vmul.f32 0.5, %v2868_v45 }
0x1381   :  { %3683 = vrsqrt.f32 %v2871_v30  ;;  %v2872_v0 = vadd.f32 1e-05, %v2870_v47 }
0x1383   :  { %3685 = vrsqrt.f32 %v2872_v0 }
0x138e   :  { %v3684_v59 = vpop.eup %3683 }
0x138f   :  { %v2875_v23 = vmul.f32 %v3684_v59, %v2851_v53 }
0x1390   :  { %v3686_v36 = vpop.eup %3685 }
0x1391   :  { %v2888_v32 = vmul.f32 %v2881_v57, %v2875_v23  ;;  %v2876_v12 = vmul.f32 %v3686_v36, %v2852_v50 }
0x1393   :  { %v2901_v58 = vadd.f32 %v2894_v51, %v2888_v32  ;;  %v2889_v42 = vmul.f32 %v2885_v17, %v2876_v12 }
0x1395   :  { %v2902_v27 = vadd.f32 %v2898_v39, %v2889_v42  ;;  %vm2903_vm1 = vcmp.ge.f32.partialorder %v2901_v58, 0.0  ;;  %v2905_v14 = vmul.f32 0.2, %v2901_v58 }
0x1397   :  { %vm2904_vm8 = vcmp.ge.f32.partialorder %v2902_v27, 0.0  ;;  %v2906_v15 = vmul.f32 0.2, %v2902_v27  ;;  %v2907_v40 = vsel %vm2903_vm1, %v2901_v58, %v2905_v14 }
0x1398   :  { %v2909_v18 = vpack.c.bf16 %v2907_v40, %v2907_v40 }
0x1399   :  { %v2908_v52 = vsel %vm2904_vm8, %v2902_v27, %v2906_v15 }
0x139a   :  { %v2910_v61 = vpack.c.bf16 %v2908_v52, %v2908_v52 }
0x139c   :  { %3200 = vmatprep.mubr.msk.bf16.mxu1 %vm2998_vm9, %v2910_v61 }
0x139d   :  { %3035 = vmatmul.mubr.bf16.vlgmr.msra.gmra.mxu1 %v2909_v18 }
0x145d   :  { %v3036_v55 = vpop.f32.mrf.mxu1 }
0x145e   :  { %v3037_v38 = vadd.f32 %v3189_v10, %v3036_v55 }
0x145f   :  { %v3038_v62 = vpop.f32.mrf.mxu1 }
0x1460   :  { %3043 = vst.msk [vmem:[%s5056_s17] sm:$0x3] %vm3042_vm10, %v3037_v38 }
0x1461   :  { %v3039_v22 = vpop.f32.mrf.mxu1 }
0x1463   :  { %v3040_v31 = vpop.f32.mrf.mxu1 }

</bundles_post_ra>
